<compile_context>
chip_gen: v7x
topology: tpu7x:2x2x1
jax: 0.10.0
libtpu: 0.0.40
codegen_flags: <defaults>
</compile_context>

<pallas_src>
import functools

import numpy as np

import jax
import jax.numpy as jnp
from jax.experimental import pallas as pl
from jax.experimental.pallas import tpu as pltpu

VMEM_SPEC = pl.BlockSpec(memory_space=pltpu.MemorySpace.VMEM)
SMEM_SPEC = pl.BlockSpec(memory_space=pltpu.MemorySpace.SMEM)


# ---------------------------------------------------------------------------
# Single fused kernel.
# ---------------------------------------------------------------------------
def _qvn_fused_kernel(gamma_ref, dcw_ref, tes_ref,
                      maps_ref, sens_re_ref, sens_im_ref,
                      mk_re_ref, mk_im_ref, mask_ref,
                      dcat_ref, tmask_ref, w_ref, b_ref,
                      out_ref,
                      xs_ref, xchan_ref, patch_ref,
                      *, n_echoes, n_coils, x_dim, y_dim):
    E, C = n_echoes, n_coils
    EC = E * C
    xy = x_dim * y_dim
    scaling = 1e-3
    f32 = jnp.float32
    bf16 = jnp.bfloat16

    maps = maps_ref[0:E, :]                            # [E, XY] unscaled maps
    r2s = maps[0:1, :] * (gamma_ref[0] * scaling)      # R2* * gamma0 * 1e-3
    s0 = maps[1:2, :] * gamma_ref[1]
    b0s = maps[2:3, :] * (gamma_ref[2] * scaling)      # B0  * gamma2 * 1e-3
    ph = maps[3:4, :] * gamma_ref[3]
    sre = sens_re_ref[...]                             # [C, XY]
    sim = sens_im_ref[...]

    # --- 1) MEGRE signal model, vectorized over echoes -----------------------
    nte = -tes_ref[...]                                # [E, 1]
    decay = jnp.exp(nte * r2s)                         # EUP, [E, XY]
    ang = nte * b0s                                    # computed once, reused
    cos_t = jnp.cos(ang)
    sin_t = jnp.sin(ang)
    sig_re = (s0 * cos_t - ph * sin_t) * decay
    sig_im = (s0 * sin_t + ph * cos_t) * decay
    sig_re = jnp.where(sig_re != sig_re, 0.0, sig_re)  # NaN -> 0
    sig_im = jnp.where(sig_im != sig_im, 0.0, sig_im)

    # --- sens_expand: complex coil expansion, written straight into the ------
    #     stacked matmul-LHS scratch  [x_re ; x_im]  ([2*EC, XY]); no concats.
    for e in range(E):
        sr = sig_re[e:e + 1, :]
        si = sig_im[e:e + 1, :]
        xs_ref[e * C:(e + 1) * C, :] = sr * sre - si * sim
        xs_ref[EC + e * C:EC + (e + 1) * C, :] = sr * sim + si * sre

    # --- 2) fft2 (uncentered, "backward"): ONE fused MXU matmul --------------
    dcat = dcat_ref[...]                               # bf16 [XY, 2XY] = [D_re | D_im]
    p = jnp.dot(xs_ref[...].astype(bf16), dcat, preferred_element_type=f32)
    k_re = p[0:EC, 0:xy] - p[EC:2 * EC, xy:2 * xy]
    k_im = p[0:EC, xy:2 * xy] + p[EC:2 * EC, 0:xy]

    # --- 3) soft data consistency (1/XY ifft scale folded into the weight) ---
    w_dc = mask_ref[...] * (dcw_ref[0] * (1.0 / xy))   # [1, XY]
    xs_ref[0:EC, :] = (k_re - mk_re_ref[...]) * w_dc
    xs_ref[EC:2 * EC, :] = (k_im - mk_im_ref[...]) * w_dc

    # --- 4) ifft2 = conj(forward)/XY, reusing the SAME fused RHS constant ----
    q = jnp.dot(xs_ref[...].astype(bf16), dcat, preferred_element_type=f32)
    img_re = q[0:EC, 0:xy] + q[EC:2 * EC, xy:2 * xy]
    img_im = q[EC:2 * EC, 0:xy] - q[0:EC, xy:2 * xy]

    # --- 5) sens_reduce: complex_mul(x, conj(sens)) summed over coils --------
    #     results land as rows of the conv-input scratch ([2E, XY]); no concats.
    for e in range(E):
        xr = img_re[e * C:(e + 1) * C, :]
        xi = img_im[e * C:(e + 1) * C, :]
        xchan_ref[e:e + 1, :] = jnp.sum(xr * sre + xi * sim, axis=0, keepdims=True)
        xchan_ref[E + e:E + e + 1, :] = jnp.sum(xi * sre - xr * sim, axis=0, keepdims=True)

    # --- 6) regularizer Conv2d(2E, 2E, 3, padding=1): im2col via lane rolls +
    #     host-precomputed boundary masks (centre tap unmasked), tap slabs are
    #     full-sublane stores into the patch scratch, then one matmul. --------
    x_chan = xchan_ref[...]                            # [2E, XY]
    cin = 2 * E
    for di in range(3):
        for dj in range(3):
            t = di * 3 + dj
            s = (di - 1) * y_dim + (dj - 1)            # flat shift for this tap
            if s == 0:
                patch_ref[t * cin:(t + 1) * cin, :] = x_chan
            else:
                shifted = pltpu.roll(x_chan, (-s) % xy, axis=1)
                patch_ref[t * cin:(t + 1) * cin, :] = shifted * tmask_ref[t:t + 1, :]
    conv = (jnp.dot(w_ref[...], patch_ref[...], preferred_element_type=f32)
            + b_ref[...])                              # [2E, XY]

    # --- 7) prediction = maps + model output (maps rows E..2E-1 are zero, so
    #     imaginary rows pass through); clamp channel 0 (re row 0, im row E). -
    pred = conv + maps_ref[...]                        # [2E, XY]
    out_ref[...] = pred                                # full-slab unmasked store
    out_ref[0:1, :] = jnp.maximum(pred[0:1, :], 0.0)
    out_ref[E:E + 1, :] = jnp.maximum(pred[E:E + 1, :], 0.0)


# ---------------------------------------------------------------------------
# Trace-time constants.
# ---------------------------------------------------------------------------
def _dft_cat_matrix(x_dim, y_dim):
    """[XY, 2*XY] bf16 constant [D_re | D_im] with D = kron(Fx, Fy)^T.
    vec_row(fft2(img)) = vec_row(img) @ D  (uncentered, norm='backward')."""
    def dft(n):
        k = np.arange(n)
        return np.exp(-2.0j * np.pi * np.outer(k, k) / n)
    d_t = np.kron(dft(x_dim), dft(y_dim)).T
    dcat = np.concatenate([np.real(d_t), np.imag(d_t)], axis=1)
    return jnp.asarray(dcat, dtype=jnp.bfloat16)


def _conv_tap_masks(x_dim, y_dim):
    """[9, XY] f32 zero-padding validity masks for the 3x3 im2col taps."""
    xy = x_dim * y_dim
    col = np.arange(xy)
    xc, yc = col // y_dim, col % y_dim
    m = np.zeros((9, xy), np.float32)
    for di in range(3):
        for dj in range(3):
            dx, dy = di - 1, dj - 1
            valid = ((xc + dx >= 0) & (xc + dx < x_dim)
                     & (yc + dy >= 0) & (yc + dy < y_dim))
            m[di * 3 + dj] = valid.astype(np.float32)
    return jnp.asarray(m)


# ---------------------------------------------------------------------------
# Wrapper: one-time relayout into lane-dense slabs, then a single pallas_call.
# ---------------------------------------------------------------------------
@jax.jit
def qvarnet_block_forward(masked_kspace, r2star, s0, b0, phi, tes, sens, mask,
                          gamma, dc_weight, conv_w, conv_b):
    B, E, C, X, Y, _ = masked_kspace.shape
    assert B == 1, "mridc qVarNetBlock semantics require batch == 1"
    assert E == 4, "4 echoes map onto the 4 quantitative-map channels"
    XY = X * Y
    f32 = jnp.float32
    # TODO(synk): for realistic MRI sizes (X*Y >~ 4096) switch the kron'd DFT
    # constant to separable 1D DFTs ([Y,Y] then transpose then [X,X]) so the
    # constants fit v7x's 64 MiB VMEM; the fused kron form is optimal here.
    assert XY <= 4096, "kron DFT constant only intended for small tiles"

    # prediction init (UNscaled maps) rows 0..3; zero rows 4..7 for the im part
    maps = jnp.stack([r2star[0], s0[0], b0[0], phi[0]],
                     axis=0).reshape(E, XY).astype(f32)
    maps8 = jnp.concatenate([maps, jnp.zeros_like(maps)], axis=0)   # [2E, XY]
    sens_re = sens[0, ..., 0].reshape(C, XY).astype(f32)
    sens_im = sens[0, ..., 1].reshape(C, XY).astype(f32)
    mk_re = masked_kspace[0, ..., 0].reshape(E * C, XY).astype(f32)
    mk_im = masked_kspace[0, ..., 1].reshape(E * C, XY).astype(f32)
    mask2d = mask.reshape(1, XY).astype(f32)

    dcat = _dft_cat_matrix(X, Y)          # bf16 [XY, 2*XY]
    tap_masks = _conv_tap_masks(X, Y)     # f32  [9, XY]

    # Conv2d(2E, 2E, 3, padding=1) weights in tap-major [cout, 9*cin] layout
    # (tap index t = di*3 + dj, matching the kernel's im2col ordering).
    cin = cout = 2 * E
    w_mat = jnp.transpose(conv_w, (0, 2, 3, 1)).reshape(cout, 9 * cin).astype(f32)
    b_col = conv_b.reshape(cout, 1).astype(f32)

    out = pl.pallas_call(
        functools.partial(_qvn_fused_kernel, n_echoes=E, n_coils=C,
                          x_dim=X, y_dim=Y),
        out_shape=jax.ShapeDtypeStruct((2 * E, XY), f32),
        in_specs=[SMEM_SPEC, SMEM_SPEC,                      # gamma, dc_weight
                  VMEM_SPEC,                                 # TEs column
                  VMEM_SPEC, VMEM_SPEC, VMEM_SPEC,           # maps, sens re/im
                  VMEM_SPEC, VMEM_SPEC, VMEM_SPEC,           # kspace re/im, mask
                  VMEM_SPEC, VMEM_SPEC,                      # DFT cat, tap masks
                  VMEM_SPEC, VMEM_SPEC],                     # conv W, bias
        out_specs=VMEM_SPEC,
        scratch_shapes=[pltpu.VMEM((2 * E * C, XY), f32),    # stacked matmul LHS
                        pltpu.VMEM((2 * E, XY), f32),        # reduced image
                        pltpu.VMEM((9 * 2 * E, XY), f32)],   # im2col patches
        # TODO(synk): when batching multiple slices/cascades, add a leading
        # "parallel" grid axis so v7x's second TensorCore is used.
    )(gamma.astype(f32), dc_weight.reshape(1).astype(f32),
      tes.reshape(E, 1).astype(f32),
      maps8, sens_re, sens_im, mk_re, mk_im, mask2d,
      dcat, tap_masks, w_mat, b_col)

    # single cheap final relayout back to the torch [1, 4, X, Y, 2] convention
    out_re = out[:E].reshape(E, X, Y)
    out_im = out[E:].reshape(E, X, Y)
    return jnp.stack([out_re, out_im], axis=-1)[None]


if __name__ == "__main__":
    E, C, X, Y = 4, 4, 16, 16
    key = jax.random.PRNGKey(0)
    ks = jax.random.split(key, 9)

    masked_kspace = jax.random.normal(ks[0], (1, E, C, X, Y, 2), dtype=jnp.float32)
    r2star_map_init = jax.random.uniform(ks[1], (1, X, Y), dtype=jnp.float32)
    s0_map_init = jax.random.uniform(ks[2], (1, X, Y), dtype=jnp.float32)
    b0_map_init = jax.random.normal(ks[3], (1, X, Y), dtype=jnp.float32)
    phi_map_init = jax.random.normal(ks[4], (1, X, Y), dtype=jnp.float32)
    sensitivity_maps = 0.5 * jax.random.normal(ks[5], (1, C, X, Y, 2), dtype=jnp.float32)
    sampling_mask = (jax.random.uniform(ks[6], (1, 1, 1, X, Y, 1)) > 0.5).astype(jnp.float32)

    TEs = jnp.array([3.0, 11.5, 20.0, 28.5], dtype=jnp.float32)   # MEGRE defaults
    gamma = jnp.array([150.0, 500.0, 20.0, 6.28], dtype=jnp.float32)
    dc_weight = jnp.ones((1,), dtype=jnp.float32)                 # nn.Parameter(torch.ones(1))

    # deterministic weights for the injected Conv2d(2E, 2E, 3, padding=1) model
    conv_w = 0.05 * jax.random.normal(ks[7], (2 * E, 2 * E, 3, 3), dtype=jnp.float32)
    conv_b = 0.01 * jax.random.normal(ks[8], (2 * E,), dtype=jnp.float32)

    out = qvarnet_block_forward(masked_kspace, r2star_map_init, s0_map_init,
                                b0_map_init, phi_map_init, TEs, sensitivity_maps,
                                sampling_mask, gamma, dc_weight, conv_w, conv_b)
    out = jax.block_until_ready(out)
    assert out.shape == (1, 4, X, Y, 2) and out.dtype == jnp.float32
    assert bool(jnp.all(out[:, 0] >= 0.0))   # R2* channel clamped
    print("KERNEL_OK")
</pallas_src>

<mosaic_0001>
module attributes {stable_mosaic.version = 11 : i64} {
  func.func @_qvn_fused_kernel(%arg0: memref<4xf32, #tpu.memory_space<smem>>, %arg1: memref<1xf32, #tpu.memory_space<smem>>, %arg2: memref<4x1xf32, #tpu.memory_space<vmem>>, %arg3: memref<8x256xf32, #tpu.memory_space<vmem>>, %arg4: memref<4x256xf32, #tpu.memory_space<vmem>>, %arg5: memref<4x256xf32, #tpu.memory_space<vmem>>, %arg6: memref<16x256xf32, #tpu.memory_space<vmem>>, %arg7: memref<16x256xf32, #tpu.memory_space<vmem>>, %arg8: memref<1x256xf32, #tpu.memory_space<vmem>>, %arg9: memref<256x512xbf16, #tpu.memory_space<vmem>>, %arg10: memref<9x256xf32, #tpu.memory_space<vmem>>, %arg11: memref<8x72xf32, #tpu.memory_space<vmem>>, %arg12: memref<8x1xf32, #tpu.memory_space<vmem>>, %arg13: memref<8x256xf32, #tpu.memory_space<vmem>>, %arg14: memref<32x256xf32, #tpu.memory_space<vmem>>, %arg15: memref<8x256xf32, #tpu.memory_space<vmem>>, %arg16: memref<72x256xf32, #tpu.memory_space<vmem>>) attributes {dimension_semantics = [], scalar_prefetch = 0 : i64, scratch_operands = 3 : i64, tpu.core_type = #tpu.core_type<tc>} {
    %c0 = arith.constant 0 : index
    %c0_0 = arith.constant 0 : index
    %0 = vector.load %arg3[%c0, %c0_0] : memref<8x256xf32, #tpu.memory_space<vmem>>, vector<4x256xf32>
    %1 = vector.extract_strided_slice %0 {offsets = [0, 0], sizes = [1, 256], strides = [1, 1]} : vector<4x256xf32> to vector<1x256xf32>
    %c0_1 = arith.constant 0 : index
    %2 = memref.load %arg0[%c0_1] : memref<4xf32, #tpu.memory_space<smem>>
    %cst = arith.constant 1.000000e-03 : f32
    %3 = arith.mulf %2, %cst : f32
    %4 = vector.broadcast %3 : f32 to vector<1x256xf32>
    %5 = arith.mulf %1, %4 : vector<1x256xf32>
    %6 = vector.extract_strided_slice %0 {offsets = [1, 0], sizes = [1, 256], strides = [1, 1]} : vector<4x256xf32> to vector<1x256xf32>
    %c1 = arith.constant 1 : index
    %7 = memref.load %arg0[%c1] : memref<4xf32, #tpu.memory_space<smem>>
    %8 = vector.broadcast %7 : f32 to vector<1x256xf32>
    %9 = arith.mulf %6, %8 : vector<1x256xf32>
    %10 = vector.extract_strided_slice %0 {offsets = [2, 0], sizes = [1, 256], strides = [1, 1]} : vector<4x256xf32> to vector<1x256xf32>
    %c2 = arith.constant 2 : index
    %11 = memref.load %arg0[%c2] : memref<4xf32, #tpu.memory_space<smem>>
    %cst_2 = arith.constant 1.000000e-03 : f32
    %12 = arith.mulf %11, %cst_2 : f32
    %13 = vector.broadcast %12 : f32 to vector<1x256xf32>
    %14 = arith.mulf %10, %13 : vector<1x256xf32>
    %15 = vector.extract_strided_slice %0 {offsets = [3, 0], sizes = [1, 256], strides = [1, 1]} : vector<4x256xf32> to vector<1x256xf32>
    %c3 = arith.constant 3 : index
    %16 = memref.load %arg0[%c3] : memref<4xf32, #tpu.memory_space<smem>>
    %17 = vector.broadcast %16 : f32 to vector<1x256xf32>
    %18 = arith.mulf %15, %17 : vector<1x256xf32>
    %c0_3 = arith.constant 0 : index
    %c0_4 = arith.constant 0 : index
    %19 = vector.load %arg4[%c0_3, %c0_4] : memref<4x256xf32, #tpu.memory_space<vmem>>, vector<4x256xf32>
    %c0_5 = arith.constant 0 : index
    %c0_6 = arith.constant 0 : index
    %20 = vector.load %arg5[%c0_5, %c0_6] : memref<4x256xf32, #tpu.memory_space<vmem>>, vector<4x256xf32>
    %c0_7 = arith.constant 0 : index
    %c0_8 = arith.constant 0 : index
    %21 = vector.load %arg2[%c0_7, %c0_8] : memref<4x1xf32, #tpu.memory_space<vmem>>, vector<4x1xf32>
    %cst_9 = arith.constant 0.000000e+00 : f32
    %22 = vector.broadcast %cst_9 : f32 to vector<4x1xf32>
    %23 = arith.subf %22, %21 : vector<4x1xf32>
    %24 = vector.broadcast %23 : vector<4x1xf32> to vector<4x256xf32>
    %25 = vector.broadcast %5 : vector<1x256xf32> to vector<4x256xf32>
    %26 = arith.mulf %24, %25 : vector<4x256xf32>
    %27 = math.exp %26 : vector<4x256xf32>
    %28 = vector.broadcast %23 : vector<4x1xf32> to vector<4x256xf32>
    %29 = vector.broadcast %14 : vector<1x256xf32> to vector<4x256xf32>
    %30 = arith.mulf %28, %29 : vector<4x256xf32>
    %31 = math.cos %30 : vector<4x256xf32>
    %32 = math.sin %30 : vector<4x256xf32>
    %33 = vector.broadcast %9 : vector<1x256xf32> to vector<4x256xf32>
    %34 = arith.mulf %33, %31 : vector<4x256xf32>
    %35 = vector.broadcast %18 : vector<1x256xf32> to vector<4x256xf32>
    %36 = arith.mulf %35, %32 : vector<4x256xf32>
    %37 = arith.subf %34, %36 : vector<4x256xf32>
    %38 = arith.mulf %37, %27 : vector<4x256xf32>
    %39 = vector.broadcast %9 : vector<1x256xf32> to vector<4x256xf32>
    %40 = arith.mulf %39, %32 : vector<4x256xf32>
    %41 = vector.broadcast %18 : vector<1x256xf32> to vector<4x256xf32>
    %42 = arith.mulf %41, %31 : vector<4x256xf32>
    %43 = arith.addf %40, %42 : vector<4x256xf32>
    %44 = arith.mulf %43, %27 : vector<4x256xf32>
    %45 = arith.cmpf one, %38, %38 : vector<4x256xf32>
    %cst_10 = arith.constant 0.000000e+00 : f32
    %46 = vector.broadcast %cst_10 : f32 to vector<4x256xf32>
    %47 = arith.select %45, %46, %38 : vector<4x256xi1>, vector<4x256xf32>
    %48 = arith.cmpf one, %44, %44 : vector<4x256xf32>
    %cst_11 = arith.constant 0.000000e+00 : f32
    %49 = vector.broadcast %cst_11 : f32 to vector<4x256xf32>
    %50 = arith.select %48, %49, %44 : vector<4x256xi1>, vector<4x256xf32>
    %51 = vector.extract_strided_slice %47 {offsets = [0, 0], sizes = [1, 256], strides = [1, 1]} : vector<4x256xf32> to vector<1x256xf32>
    %52 = vector.extract_strided_slice %50 {offsets = [0, 0], sizes = [1, 256], strides = [1, 1]} : vector<4x256xf32> to vector<1x256xf32>
    %53 = vector.broadcast %51 : vector<1x256xf32> to vector<4x256xf32>
    %54 = arith.mulf %53, %19 : vector<4x256xf32>
    %55 = vector.broadcast %52 : vector<1x256xf32> to vector<4x256xf32>
    %56 = arith.mulf %55, %20 : vector<4x256xf32>
    %57 = arith.subf %54, %56 : vector<4x256xf32>
    %c0_12 = arith.constant 0 : index
    %c0_13 = arith.constant 0 : index
    %58 = vector.load %arg14[%c0_12, %c0_13] : memref<32x256xf32, #tpu.memory_space<vmem>>, vector<4x256xf32>
    tpu.vector_store %arg14[%c0_12, %c0_13], %57 {strides = array<i32>} : memref<32x256xf32, #tpu.memory_space<vmem>>, vector<4x256xf32>,
    %59 = vector.broadcast %51 : vector<1x256xf32> to vector<4x256xf32>
    %60 = arith.mulf %59, %20 : vector<4x256xf32>
    %61 = vector.broadcast %52 : vector<1x256xf32> to vector<4x256xf32>
    %62 = arith.mulf %61, %19 : vector<4x256xf32>
    %63 = arith.addf %60, %62 : vector<4x256xf32>
    %c16 = arith.constant 16 : index
    %c0_14 = arith.constant 0 : index
    %64 = vector.load %arg14[%c16, %c0_14] : memref<32x256xf32, #tpu.memory_space<vmem>>, vector<4x256xf32>
    tpu.vector_store %arg14[%c16, %c0_14], %63 {strides = array<i32>} : memref<32x256xf32, #tpu.memory_space<vmem>>, vector<4x256xf32>,
    %65 = vector.extract_strided_slice %47 {offsets = [1, 0], sizes = [1, 256], strides = [1, 1]} : vector<4x256xf32> to vector<1x256xf32>
    %66 = vector.extract_strided_slice %50 {offsets = [1, 0], sizes = [1, 256], strides = [1, 1]} : vector<4x256xf32> to vector<1x256xf32>
    %67 = vector.broadcast %65 : vector<1x256xf32> to vector<4x256xf32>
    %68 = arith.mulf %67, %19 : vector<4x256xf32>
    %69 = vector.broadcast %66 : vector<1x256xf32> to vector<4x256xf32>
    %70 = arith.mulf %69, %20 : vector<4x256xf32>
    %71 = arith.subf %68, %70 : vector<4x256xf32>
    %c4 = arith.constant 4 : index
    %c0_15 = arith.constant 0 : index
    %72 = vector.load %arg14[%c4, %c0_15] : memref<32x256xf32, #tpu.memory_space<vmem>>, vector<4x256xf32>
    tpu.vector_store %arg14[%c4, %c0_15], %71 {strides = array<i32>} : memref<32x256xf32, #tpu.memory_space<vmem>>, vector<4x256xf32>,
    %73 = vector.broadcast %65 : vector<1x256xf32> to vector<4x256xf32>
    %74 = arith.mulf %73, %20 : vector<4x256xf32>
    %75 = vector.broadcast %66 : vector<1x256xf32> to vector<4x256xf32>
    %76 = arith.mulf %75, %19 : vector<4x256xf32>
    %77 = arith.addf %74, %76 : vector<4x256xf32>
    %c20 = arith.constant 20 : index
    %c0_16 = arith.constant 0 : index
    %78 = vector.load %arg14[%c20, %c0_16] : memref<32x256xf32, #tpu.memory_space<vmem>>, vector<4x256xf32>
    tpu.vector_store %arg14[%c20, %c0_16], %77 {strides = array<i32>} : memref<32x256xf32, #tpu.memory_space<vmem>>, vector<4x256xf32>,
    %79 = vector.extract_strided_slice %47 {offsets = [2, 0], sizes = [1, 256], strides = [1, 1]} : vector<4x256xf32> to vector<1x256xf32>
    %80 = vector.extract_strided_slice %50 {offsets = [2, 0], sizes = [1, 256], strides = [1, 1]} : vector<4x256xf32> to vector<1x256xf32>
    %81 = vector.broadcast %79 : vector<1x256xf32> to vector<4x256xf32>
    %82 = arith.mulf %81, %19 : vector<4x256xf32>
    %83 = vector.broadcast %80 : vector<1x256xf32> to vector<4x256xf32>
    %84 = arith.mulf %83, %20 : vector<4x256xf32>
    %85 = arith.subf %82, %84 : vector<4x256xf32>
    %c8 = arith.constant 8 : index
    %c0_17 = arith.constant 0 : index
    %86 = vector.load %arg14[%c8, %c0_17] : memref<32x256xf32, #tpu.memory_space<vmem>>, vector<4x256xf32>
    tpu.vector_store %arg14[%c8, %c0_17], %85 {strides = array<i32>} : memref<32x256xf32, #tpu.memory_space<vmem>>, vector<4x256xf32>,
    %87 = vector.broadcast %79 : vector<1x256xf32> to vector<4x256xf32>
    %88 = arith.mulf %87, %20 : vector<4x256xf32>
    %89 = vector.broadcast %80 : vector<1x256xf32> to vector<4x256xf32>
    %90 = arith.mulf %89, %19 : vector<4x256xf32>
    %91 = arith.addf %88, %90 : vector<4x256xf32>
    %c24 = arith.constant 24 : index
    %c0_18 = arith.constant 0 : index
    %92 = vector.load %arg14[%c24, %c0_18] : memref<32x256xf32, #tpu.memory_space<vmem>>, vector<4x256xf32>
    tpu.vector_store %arg14[%c24, %c0_18], %91 {strides = array<i32>} : memref<32x256xf32, #tpu.memory_space<vmem>>, vector<4x256xf32>,
    %93 = vector.extract_strided_slice %47 {offsets = [3, 0], sizes = [1, 256], strides = [1, 1]} : vector<4x256xf32> to vector<1x256xf32>
    %94 = vector.extract_strided_slice %50 {offsets = [3, 0], sizes = [1, 256], strides = [1, 1]} : vector<4x256xf32> to vector<1x256xf32>
    %95 = vector.broadcast %93 : vector<1x256xf32> to vector<4x256xf32>
    %96 = arith.mulf %95, %19 : vector<4x256xf32>
    %97 = vector.broadcast %94 : vector<1x256xf32> to vector<4x256xf32>
    %98 = arith.mulf %97, %20 : vector<4x256xf32>
    %99 = arith.subf %96, %98 : vector<4x256xf32>
    %c12 = arith.constant 12 : index
    %c0_19 = arith.constant 0 : index
    %100 = vector.load %arg14[%c12, %c0_19] : memref<32x256xf32, #tpu.memory_space<vmem>>, vector<4x256xf32>
    tpu.vector_store %arg14[%c12, %c0_19], %99 {strides = array<i32>} : memref<32x256xf32, #tpu.memory_space<vmem>>, vector<4x256xf32>,
    %101 = vector.broadcast %93 : vector<1x256xf32> to vector<4x256xf32>
    %102 = arith.mulf %101, %20 : vector<4x256xf32>
    %103 = vector.broadcast %94 : vector<1x256xf32> to vector<4x256xf32>
    %104 = arith.mulf %103, %19 : vector<4x256xf32>
    %105 = arith.addf %102, %104 : vector<4x256xf32>
    %c28 = arith.constant 28 : index
    %c0_20 = arith.constant 0 : index
    %106 = vector.load %arg14[%c28, %c0_20] : memref<32x256xf32, #tpu.memory_space<vmem>>, vector<4x256xf32>
    tpu.vector_store %arg14[%c28, %c0_20], %105 {strides = array<i32>} : memref<32x256xf32, #tpu.memory_space<vmem>>, vector<4x256xf32>,
    %c0_21 = arith.constant 0 : index
    %c0_22 = arith.constant 0 : index
    %107 = vector.load %arg9[%c0_21, %c0_22] : memref<256x512xbf16, #tpu.memory_space<vmem>>, vector<256x512xbf16>
    %c0_23 = arith.constant 0 : index
    %c0_24 = arith.constant 0 : index
    %108 = vector.load %arg14[%c0_23, %c0_24] : memref<32x256xf32, #tpu.memory_space<vmem>>, vector<32x256xf32>
    %109 = arith.truncf %108 : vector<32x256xf32> to vector<32x256xbf16>
    %cst_25 = arith.constant dense<0.000000e+00> : vector<32x512xf32>
    %110 = tpu.matmul %109, %107, %cst_25 {dimension_numbers = #tpu.dot_dimension_numbers<[1], [0], [0], [1], [0, 0, 1, 1], [], []>} : vector<32x256xbf16>, vector<256x512xbf16>, vector<32x512xf32> -> vector<32x512xf32>
    %111 = vector.extract_strided_slice %110 {offsets = [0, 0], sizes = [16, 256], strides = [1, 1]} : vector<32x512xf32> to vector<16x256xf32>
    %112 = vector.extract_strided_slice %110 {offsets = [16, 256], sizes = [16, 256], strides = [1, 1]} : vector<32x512xf32> to vector<16x256xf32>
    %113 = arith.subf %111, %112 : vector<16x256xf32>
    %114 = vector.extract_strided_slice %110 {offsets = [0, 256], sizes = [16, 256], strides = [1, 1]} : vector<32x512xf32> to vector<16x256xf32>
    %115 = vector.extract_strided_slice %110 {offsets = [16, 0], sizes = [16, 256], strides = [1, 1]} : vector<32x512xf32> to vector<16x256xf32>
    %116 = arith.addf %114, %115 : vector<16x256xf32>
    %c0_26 = arith.constant 0 : index
    %c0_27 = arith.constant 0 : index
    %117 = vector.load %arg8[%c0_26, %c0_27] : memref<1x256xf32, #tpu.memory_space<vmem>>, vector<1x256xf32>
    %c0_28 = arith.constant 0 : index
    %118 = memref.load %arg1[%c0_28] : memref<1xf32, #tpu.memory_space<smem>>
    %cst_29 = arith.constant 3.906250e-03 : f32
    %119 = arith.mulf %118, %cst_29 : f32
    %120 = vector.broadcast %119 : f32 to vector<1x256xf32>
    %121 = arith.mulf %117, %120 : vector<1x256xf32>
    %c0_30 = arith.constant 0 : index
    %c0_31 = arith.constant 0 : index
    %122 = vector.load %arg6[%c0_30, %c0_31] : memref<16x256xf32, #tpu.memory_space<vmem>>, vector<16x256xf32>
    %123 = arith.subf %113, %122 : vector<16x256xf32>
    %124 = vector.broadcast %121 : vector<1x256xf32> to vector<16x256xf32>
    %125 = arith.mulf %123, %124 : vector<16x256xf32>
    %c0_32 = arith.constant 0 : index
    %c0_33 = arith.constant 0 : index
    %126 = vector.load %arg14[%c0_32, %c0_33] : memref<32x256xf32, #tpu.memory_space<vmem>>, vector<16x256xf32>
    tpu.vector_store %arg14[%c0_32, %c0_33], %125 {strides = array<i32>} : memref<32x256xf32, #tpu.memory_space<vmem>>, vector<16x256xf32>,
    %c0_34 = arith.constant 0 : index
    %c0_35 = arith.constant 0 : index
    %127 = vector.load %arg7[%c0_34, %c0_35] : memref<16x256xf32, #tpu.memory_space<vmem>>, vector<16x256xf32>
    %128 = arith.subf %116, %127 : vector<16x256xf32>
    %129 = vector.broadcast %121 : vector<1x256xf32> to vector<16x256xf32>
    %130 = arith.mulf %128, %129 : vector<16x256xf32>
    %c16_36 = arith.constant 16 : index
    %c0_37 = arith.constant 0 : index
    %131 = vector.load %arg14[%c16_36, %c0_37] : memref<32x256xf32, #tpu.memory_space<vmem>>, vector<16x256xf32>
    tpu.vector_store %arg14[%c16_36, %c0_37], %130 {strides = array<i32>} : memref<32x256xf32, #tpu.memory_space<vmem>>, vector<16x256xf32>,
    %c0_38 = arith.constant 0 : index
    %c0_39 = arith.constant 0 : index
    %132 = vector.load %arg14[%c0_38, %c0_39] : memref<32x256xf32, #tpu.memory_space<vmem>>, vector<32x256xf32>
    %133 = arith.truncf %132 : vector<32x256xf32> to vector<32x256xbf16>
    %cst_40 = arith.constant dense<0.000000e+00> : vector<32x512xf32>
    %134 = tpu.matmul %133, %107, %cst_40 {dimension_numbers = #tpu.dot_dimension_numbers<[1], [0], [0], [1], [0, 0, 1, 1], [], []>} : vector<32x256xbf16>, vector<256x512xbf16>, vector<32x512xf32> -> vector<32x512xf32>
    %135 = vector.extract_strided_slice %134 {offsets = [0, 0], sizes = [16, 256], strides = [1, 1]} : vector<32x512xf32> to vector<16x256xf32>
    %136 = vector.extract_strided_slice %134 {offsets = [16, 256], sizes = [16, 256], strides = [1, 1]} : vector<32x512xf32> to vector<16x256xf32>
    %137 = arith.addf %135, %136 : vector<16x256xf32>
    %138 = vector.extract_strided_slice %134 {offsets = [16, 0], sizes = [16, 256], strides = [1, 1]} : vector<32x512xf32> to vector<16x256xf32>
    %139 = vector.extract_strided_slice %134 {offsets = [0, 256], sizes = [16, 256], strides = [1, 1]} : vector<32x512xf32> to vector<16x256xf32>
    %140 = arith.subf %138, %139 : vector<16x256xf32>
    %141 = vector.extract_strided_slice %137 {offsets = [0, 0], sizes = [4, 256], strides = [1, 1]} : vector<16x256xf32> to vector<4x256xf32>
    %142 = vector.extract_strided_slice %140 {offsets = [0, 0], sizes = [4, 256], strides = [1, 1]} : vector<16x256xf32> to vector<4x256xf32>
    %143 = arith.mulf %141, %19 : vector<4x256xf32>
    %144 = arith.mulf %142, %20 : vector<4x256xf32>
    %145 = arith.addf %143, %144 : vector<4x256xf32>
    %cst_41 = arith.constant dense<0.000000e+00> : vector<256xf32>
    %146 = vector.multi_reduction <add>, %145, %cst_41 [0] : vector<4x256xf32> to vector<256xf32>
    %147 = vector.shape_cast %146 : vector<256xf32> to vector<1x256xf32>
    %c0_42 = arith.constant 0 : index
    %c0_43 = arith.constant 0 : index
    %148 = vector.load %arg15[%c0_42, %c0_43] : memref<8x256xf32, #tpu.memory_space<vmem>>, vector<1x256xf32>
    tpu.vector_store %arg15[%c0_42, %c0_43], %147 {strides = array<i32>} : memref<8x256xf32, #tpu.memory_space<vmem>>, vector<1x256xf32>,
    %149 = arith.mulf %142, %19 : vector<4x256xf32>
    %150 = arith.mulf %141, %20 : vector<4x256xf32>
    %151 = arith.subf %149, %150 : vector<4x256xf32>
    %cst_44 = arith.constant dense<0.000000e+00> : vector<256xf32>
    %152 = vector.multi_reduction <add>, %151, %cst_44 [0] : vector<4x256xf32> to vector<256xf32>
    %153 = vector.shape_cast %152 : vector<256xf32> to vector<1x256xf32>
    %c4_45 = arith.constant 4 : index
    %c0_46 = arith.constant 0 : index
    %154 = vector.load %arg15[%c4_45, %c0_46] : memref<8x256xf32, #tpu.memory_space<vmem>>, vector<1x256xf32>
    tpu.vector_store %arg15[%c4_45, %c0_46], %153 {strides = array<i32>} : memref<8x256xf32, #tpu.memory_space<vmem>>, vector<1x256xf32>,
    %155 = vector.extract_strided_slice %137 {offsets = [4, 0], sizes = [4, 256], strides = [1, 1]} : vector<16x256xf32> to vector<4x256xf32>
    %156 = vector.extract_strided_slice %140 {offsets = [4, 0], sizes = [4, 256], strides = [1, 1]} : vector<16x256xf32> to vector<4x256xf32>
    %157 = arith.mulf %155, %19 : vector<4x256xf32>
    %158 = arith.mulf %156, %20 : vector<4x256xf32>
    %159 = arith.addf %157, %158 : vector<4x256xf32>
    %cst_47 = arith.constant dense<0.000000e+00> : vector<256xf32>
    %160 = vector.multi_reduction <add>, %159, %cst_47 [0] : vector<4x256xf32> to vector<256xf32>
    %161 = vector.shape_cast %160 : vector<256xf32> to vector<1x256xf32>
    %c1_48 = arith.constant 1 : index
    %c0_49 = arith.constant 0 : index
    %162 = vector.load %arg15[%c1_48, %c0_49] : memref<8x256xf32, #tpu.memory_space<vmem>>, vector<1x256xf32>
    tpu.vector_store %arg15[%c1_48, %c0_49], %161 {strides = array<i32>} : memref<8x256xf32, #tpu.memory_space<vmem>>, vector<1x256xf32>,
    %163 = arith.mulf %156, %19 : vector<4x256xf32>
    %164 = arith.mulf %155, %20 : vector<4x256xf32>
    %165 = arith.subf %163, %164 : vector<4x256xf32>
    %cst_50 = arith.constant dense<0.000000e+00> : vector<256xf32>
    %166 = vector.multi_reduction <add>, %165, %cst_50 [0] : vector<4x256xf32> to vector<256xf32>
    %167 = vector.shape_cast %166 : vector<256xf32> to vector<1x256xf32>
    %c5 = arith.constant 5 : index
    %c0_51 = arith.constant 0 : index
    %168 = vector.load %arg15[%c5, %c0_51] : memref<8x256xf32, #tpu.memory_space<vmem>>, vector<1x256xf32>
    tpu.vector_store %arg15[%c5, %c0_51], %167 {strides = array<i32>} : memref<8x256xf32, #tpu.memory_space<vmem>>, vector<1x256xf32>,
    %169 = vector.extract_strided_slice %137 {offsets = [8, 0], sizes = [4, 256], strides = [1, 1]} : vector<16x256xf32> to vector<4x256xf32>
    %170 = vector.extract_strided_slice %140 {offsets = [8, 0], sizes = [4, 256], strides = [1, 1]} : vector<16x256xf32> to vector<4x256xf32>
    %171 = arith.mulf %169, %19 : vector<4x256xf32>
    %172 = arith.mulf %170, %20 : vector<4x256xf32>
    %173 = arith.addf %171, %172 : vector<4x256xf32>
    %cst_52 = arith.constant dense<0.000000e+00> : vector<256xf32>
    %174 = vector.multi_reduction <add>, %173, %cst_52 [0] : vector<4x256xf32> to vector<256xf32>
    %175 = vector.shape_cast %174 : vector<256xf32> to vector<1x256xf32>
    %c2_53 = arith.constant 2 : index
    %c0_54 = arith.constant 0 : index
    %176 = vector.load %arg15[%c2_53, %c0_54] : memref<8x256xf32, #tpu.memory_space<vmem>>, vector<1x256xf32>
    tpu.vector_store %arg15[%c2_53, %c0_54], %175 {strides = array<i32>} : memref<8x256xf32, #tpu.memory_space<vmem>>, vector<1x256xf32>,
    %177 = arith.mulf %170, %19 : vector<4x256xf32>
    %178 = arith.mulf %169, %20 : vector<4x256xf32>
    %179 = arith.subf %177, %178 : vector<4x256xf32>
    %cst_55 = arith.constant dense<0.000000e+00> : vector<256xf32>
    %180 = vector.multi_reduction <add>, %179, %cst_55 [0] : vector<4x256xf32> to vector<256xf32>
    %181 = vector.shape_cast %180 : vector<256xf32> to vector<1x256xf32>
    %c6 = arith.constant 6 : index
    %c0_56 = arith.constant 0 : index
    %182 = vector.load %arg15[%c6, %c0_56] : memref<8x256xf32, #tpu.memory_space<vmem>>, vector<1x256xf32>
    tpu.vector_store %arg15[%c6, %c0_56], %181 {strides = array<i32>} : memref<8x256xf32, #tpu.memory_space<vmem>>, vector<1x256xf32>,
    %183 = vector.extract_strided_slice %137 {offsets = [12, 0], sizes = [4, 256], strides = [1, 1]} : vector<16x256xf32> to vector<4x256xf32>
    %184 = vector.extract_strided_slice %140 {offsets = [12, 0], sizes = [4, 256], strides = [1, 1]} : vector<16x256xf32> to vector<4x256xf32>
    %185 = arith.mulf %183, %19 : vector<4x256xf32>
    %186 = arith.mulf %184, %20 : vector<4x256xf32>
    %187 = arith.addf %185, %186 : vector<4x256xf32>
    %cst_57 = arith.constant dense<0.000000e+00> : vector<256xf32>
    %188 = vector.multi_reduction <add>, %187, %cst_57 [0] : vector<4x256xf32> to vector<256xf32>
    %189 = vector.shape_cast %188 : vector<256xf32> to vector<1x256xf32>
    %c3_58 = arith.constant 3 : index
    %c0_59 = arith.constant 0 : index
    %190 = vector.load %arg15[%c3_58, %c0_59] : memref<8x256xf32, #tpu.memory_space<vmem>>, vector<1x256xf32>
    tpu.vector_store %arg15[%c3_58, %c0_59], %189 {strides = array<i32>} : memref<8x256xf32, #tpu.memory_space<vmem>>, vector<1x256xf32>,
    %191 = arith.mulf %184, %19 : vector<4x256xf32>
    %192 = arith.mulf %183, %20 : vector<4x256xf32>
    %193 = arith.subf %191, %192 : vector<4x256xf32>
    %cst_60 = arith.constant dense<0.000000e+00> : vector<256xf32>
    %194 = vector.multi_reduction <add>, %193, %cst_60 [0] : vector<4x256xf32> to vector<256xf32>
    %195 = vector.shape_cast %194 : vector<256xf32> to vector<1x256xf32>
    %c7 = arith.constant 7 : index
    %c0_61 = arith.constant 0 : index
    %196 = vector.load %arg15[%c7, %c0_61] : memref<8x256xf32, #tpu.memory_space<vmem>>, vector<1x256xf32>
    tpu.vector_store %arg15[%c7, %c0_61], %195 {strides = array<i32>} : memref<8x256xf32, #tpu.memory_space<vmem>>, vector<1x256xf32>,
    %c0_62 = arith.constant 0 : index
    %c0_63 = arith.constant 0 : index
    %197 = vector.load %arg15[%c0_62, %c0_63] : memref<8x256xf32, #tpu.memory_space<vmem>>, vector<8x256xf32>
    %c17_i32 = arith.constant 17 : i32
    %198 = tpu.dynamic_rotate %197 by %c17_i32 dim 1 : vector<8x256xf32>, i32 -> vector<8x256xf32>
    %c0_64 = arith.constant 0 : index
    %c0_65 = arith.constant 0 : index
    %199 = vector.load %arg10[%c0_64, %c0_65] : memref<9x256xf32, #tpu.memory_space<vmem>>, vector<1x256xf32>
    %200 = vector.broadcast %199 : vector<1x256xf32> to vector<8x256xf32>
    %201 = arith.mulf %198, %200 : vector<8x256xf32>
    %c0_66 = arith.constant 0 : index
    %c0_67 = arith.constant 0 : index
    %202 = vector.load %arg16[%c0_66, %c0_67] : memref<72x256xf32, #tpu.memory_space<vmem>>, vector<8x256xf32>
    tpu.vector_store %arg16[%c0_66, %c0_67], %201 {strides = array<i32>} : memref<72x256xf32, #tpu.memory_space<vmem>>, vector<8x256xf32>,
    %c16_i32 = arith.constant 16 : i32
    %203 = tpu.dynamic_rotate %197 by %c16_i32 dim 1 : vector<8x256xf32>, i32 -> vector<8x256xf32>
    %c1_68 = arith.constant 1 : index
    %c0_69 = arith.constant 0 : index
    %204 = vector.load %arg10[%c1_68, %c0_69] : memref<9x256xf32, #tpu.memory_space<vmem>>, vector<1x256xf32>
    %205 = vector.broadcast %204 : vector<1x256xf32> to vector<8x256xf32>
    %206 = arith.mulf %203, %205 : vector<8x256xf32>
    %c8_70 = arith.constant 8 : index
    %c0_71 = arith.constant 0 : index
    %207 = vector.load %arg16[%c8_70, %c0_71] : memref<72x256xf32, #tpu.memory_space<vmem>>, vector<8x256xf32>
    tpu.vector_store %arg16[%c8_70, %c0_71], %206 {strides = array<i32>} : memref<72x256xf32, #tpu.memory_space<vmem>>, vector<8x256xf32>,
    %c15_i32 = arith.constant 15 : i32
    %208 = tpu.dynamic_rotate %197 by %c15_i32 dim 1 : vector<8x256xf32>, i32 -> vector<8x256xf32>
    %c2_72 = arith.constant 2 : index
    %c0_73 = arith.constant 0 : index
    %209 = vector.load %arg10[%c2_72, %c0_73] : memref<9x256xf32, #tpu.memory_space<vmem>>, vector<1x256xf32>
    %210 = vector.broadcast %209 : vector<1x256xf32> to vector<8x256xf32>
    %211 = arith.mulf %208, %210 : vector<8x256xf32>
    %c16_74 = arith.constant 16 : index
    %c0_75 = arith.constant 0 : index
    %212 = vector.load %arg16[%c16_74, %c0_75] : memref<72x256xf32, #tpu.memory_space<vmem>>, vector<8x256xf32>
    tpu.vector_store %arg16[%c16_74, %c0_75], %211 {strides = array<i32>} : memref<72x256xf32, #tpu.memory_space<vmem>>, vector<8x256xf32>,
    %c1_i32 = arith.constant 1 : i32
    %213 = tpu.dynamic_rotate %197 by %c1_i32 dim 1 : vector<8x256xf32>, i32 -> vector<8x256xf32>
    %c3_76 = arith.constant 3 : index
    %c0_77 = arith.constant 0 : index
    %214 = vector.load %arg10[%c3_76, %c0_77] : memref<9x256xf32, #tpu.memory_space<vmem>>, vector<1x256xf32>
    %215 = vector.broadcast %214 : vector<1x256xf32> to vector<8x256xf32>
    %216 = arith.mulf %213, %215 : vector<8x256xf32>
    %c24_78 = arith.constant 24 : index
    %c0_79 = arith.constant 0 : index
    %217 = vector.load %arg16[%c24_78, %c0_79] : memref<72x256xf32, #tpu.memory_space<vmem>>, vector<8x256xf32>
    tpu.vector_store %arg16[%c24_78, %c0_79], %216 {strides = array<i32>} : memref<72x256xf32, #tpu.memory_space<vmem>>, vector<8x256xf32>,
    %c32 = arith.constant 32 : index
    %c0_80 = arith.constant 0 : index
    %218 = vector.load %arg16[%c32, %c0_80] : memref<72x256xf32, #tpu.memory_space<vmem>>, vector<8x256xf32>
    tpu.vector_store %arg16[%c32, %c0_80], %197 {strides = array<i32>} : memref<72x256xf32, #tpu.memory_space<vmem>>, vector<8x256xf32>,
    %c255_i32 = arith.constant 255 : i32
    %219 = tpu.dynamic_rotate %197 by %c255_i32 dim 1 : vector<8x256xf32>, i32 -> vector<8x256xf32>
    %c5_81 = arith.constant 5 : index
    %c0_82 = arith.constant 0 : index
    %220 = vector.load %arg10[%c5_81, %c0_82] : memref<9x256xf32, #tpu.memory_space<vmem>>, vector<1x256xf32>
    %221 = vector.broadcast %220 : vector<1x256xf32> to vector<8x256xf32>
    %222 = arith.mulf %219, %221 : vector<8x256xf32>
    %c40 = arith.constant 40 : index
    %c0_83 = arith.constant 0 : index
    %223 = vector.load %arg16[%c40, %c0_83] : memref<72x256xf32, #tpu.memory_space<vmem>>, vector<8x256xf32>
    tpu.vector_store %arg16[%c40, %c0_83], %222 {strides = array<i32>} : memref<72x256xf32, #tpu.memory_space<vmem>>, vector<8x256xf32>,
    %c241_i32 = arith.constant 241 : i32
    %224 = tpu.dynamic_rotate %197 by %c241_i32 dim 1 : vector<8x256xf32>, i32 -> vector<8x256xf32>
    %c6_84 = arith.constant 6 : index
    %c0_85 = arith.constant 0 : index
    %225 = vector.load %arg10[%c6_84, %c0_85] : memref<9x256xf32, #tpu.memory_space<vmem>>, vector<1x256xf32>
    %226 = vector.broadcast %225 : vector<1x256xf32> to vector<8x256xf32>
    %227 = arith.mulf %224, %226 : vector<8x256xf32>
    %c48 = arith.constant 48 : index
    %c0_86 = arith.constant 0 : index
    %228 = vector.load %arg16[%c48, %c0_86] : memref<72x256xf32, #tpu.memory_space<vmem>>, vector<8x256xf32>
    tpu.vector_store %arg16[%c48, %c0_86], %227 {strides = array<i32>} : memref<72x256xf32, #tpu.memory_space<vmem>>, vector<8x256xf32>,
    %c240_i32 = arith.constant 240 : i32
    %229 = tpu.dynamic_rotate %197 by %c240_i32 dim 1 : vector<8x256xf32>, i32 -> vector<8x256xf32>
    %c7_87 = arith.constant 7 : index
    %c0_88 = arith.constant 0 : index
    %230 = vector.load %arg10[%c7_87, %c0_88] : memref<9x256xf32, #tpu.memory_space<vmem>>, vector<1x256xf32>
    %231 = vector.broadcast %230 : vector<1x256xf32> to vector<8x256xf32>
    %232 = arith.mulf %229, %231 : vector<8x256xf32>
    %c56 = arith.constant 56 : index
    %c0_89 = arith.constant 0 : index
    %233 = vector.load %arg16[%c56, %c0_89] : memref<72x256xf32, #tpu.memory_space<vmem>>, vector<8x256xf32>
    tpu.vector_store %arg16[%c56, %c0_89], %232 {strides = array<i32>} : memref<72x256xf32, #tpu.memory_space<vmem>>, vector<8x256xf32>,
    %c239_i32 = arith.constant 239 : i32
    %234 = tpu.dynamic_rotate %197 by %c239_i32 dim 1 : vector<8x256xf32>, i32 -> vector<8x256xf32>
    %c8_90 = arith.constant 8 : index
    %c0_91 = arith.constant 0 : index
    %235 = vector.load %arg10[%c8_90, %c0_91] : memref<9x256xf32, #tpu.memory_space<vmem>>, vector<1x256xf32>
    %236 = vector.broadcast %235 : vector<1x256xf32> to vector<8x256xf32>
    %237 = arith.mulf %234, %236 : vector<8x256xf32>
    %c64 = arith.constant 64 : index
    %c0_92 = arith.constant 0 : index
    %238 = vector.load %arg16[%c64, %c0_92] : memref<72x256xf32, #tpu.memory_space<vmem>>, vector<8x256xf32>
    tpu.vector_store %arg16[%c64, %c0_92], %237 {strides = array<i32>} : memref<72x256xf32, #tpu.memory_space<vmem>>, vector<8x256xf32>,
    %c0_93 = arith.constant 0 : index
    %c0_94 = arith.constant 0 : index
    %239 = vector.load %arg11[%c0_93, %c0_94] : memref<8x72xf32, #tpu.memory_space<vmem>>, vector<8x72xf32>
    %c0_95 = arith.constant 0 : index
    %c0_96 = arith.constant 0 : index
    %240 = vector.load %arg16[%c0_95, %c0_96] : memref<72x256xf32, #tpu.memory_space<vmem>>, vector<72x256xf32>
    %cst_97 = arith.constant dense<0.000000e+00> : vector<8x256xf32>
    %241 = tpu.matmul %239, %240, %cst_97 {dimension_numbers = #tpu.dot_dimension_numbers<[1], [0], [0], [1], [0, 0, 1, 1], [], []>} : vector<8x72xf32>, vector<72x256xf32>, vector<8x256xf32> -> vector<8x256xf32>
    %c0_98 = arith.constant 0 : index
    %c0_99 = arith.constant 0 : index
    %242 = vector.load %arg12[%c0_98, %c0_99] : memref<8x1xf32, #tpu.memory_space<vmem>>, vector<8x1xf32>
    %243 = vector.broadcast %242 : vector<8x1xf32> to vector<8x256xf32>
    %244 = arith.addf %241, %243 : vector<8x256xf32>
    %c0_100 = arith.constant 0 : index
    %c0_101 = arith.constant 0 : index
    %245 = vector.load %arg3[%c0_100, %c0_101] : memref<8x256xf32, #tpu.memory_space<vmem>>, vector<8x256xf32>
    %246 = arith.addf %244, %245 : vector<8x256xf32>
    %c0_102 = arith.constant 0 : index
    %c0_103 = arith.constant 0 : index
    %247 = vector.load %arg13[%c0_102, %c0_103] : memref<8x256xf32, #tpu.memory_space<vmem>>, vector<8x256xf32>
    tpu.vector_store %arg13[%c0_102, %c0_103], %246 {strides = array<i32>} : memref<8x256xf32, #tpu.memory_space<vmem>>, vector<8x256xf32>,
    %248 = vector.extract_strided_slice %246 {offsets = [0, 0], sizes = [1, 256], strides = [1, 1]} : vector<8x256xf32> to vector<1x256xf32>
    %cst_104 = arith.constant 0.000000e+00 : f32
    %249 = vector.broadcast %cst_104 : f32 to vector<1x256xf32>
    %250 = arith.maximumf %248, %249 : vector<1x256xf32>
    %c0_105 = arith.constant 0 : index
    %c0_106 = arith.constant 0 : index
    %251 = vector.load %arg13[%c0_105, %c0_106] : memref<8x256xf32, #tpu.memory_space<vmem>>, vector<1x256xf32>
    tpu.vector_store %arg13[%c0_105, %c0_106], %250 {strides = array<i32>} : memref<8x256xf32, #tpu.memory_space<vmem>>, vector<1x256xf32>,
    %252 = vector.extract_strided_slice %246 {offsets = [4, 0], sizes = [1, 256], strides = [1, 1]} : vector<8x256xf32> to vector<1x256xf32>
    %cst_107 = arith.constant 0.000000e+00 : f32
    %253 = vector.broadcast %cst_107 : f32 to vector<1x256xf32>
    %254 = arith.maximumf %252, %253 : vector<1x256xf32>
    %c4_108 = arith.constant 4 : index
    %c0_109 = arith.constant 0 : index
    %255 = vector.load %arg13[%c4_108, %c0_109] : memref<8x256xf32, #tpu.memory_space<vmem>>, vector<1x256xf32>
    tpu.vector_store %arg13[%c4_108, %c0_109], %254 {strides = array<i32>} : memref<8x256xf32, #tpu.memory_space<vmem>>, vector<1x256xf32>,
    return
  }
}

</mosaic_0001>

<bundles_post_ra>
// kernel: squeeze.4
= control target key start
LH: loop header
LB: loop body
LE: loop exit
PB: predicated region body
PF: predicated region fallthrough
CT: control target
= control target key end

     0   :  { %s15_s6 = smov 3  ;;  %s18_s7 = smov 12  ;;  %vm20_vm0 = vcmask 1043458   ;;  %vm25_vm1 = vcmask 1045508   ;;  %vm30_vm2 = vcmask 1047558   ;;  %vm4_vm3 = vcmask 1047556   ;;  %s364_s0 = inlined_call_operand.vmem [shape: f32[4,16,16], index: 0, kind: input, shape index: {}]   ;;  %s365_s1 = inlined_call_operand.vmem [shape: f32[4,256], index: 1, kind: output, shape index: {}]  }
   0x1   :  { %v193_v0 = vld [vmem:[%s364_s0 + $0x7] ss:$16 sm:%s15_s6]   ;;  %s23_s12 = smov 48  ;;  %s28_s13 = smov 192  ;;  %vm6_vm4 = vcmask 130048   ;;  %vm34_vm5 = vcmask 1048448  }
   0x2   :  { %v194_v1 = vld [vmem:[%s364_s0 + $0x7] ss:$16 sm:%s18_s7]   ;;  %v195_v3 = vld [vmem:[%s364_s0 - $0x31] ss:$16 sm:%s23_s12]   ;;  %s63_s18 = smov 3  ;;  %s66_s21 = smov 12 }
   0x3   :  { %v21_v2 = vsel %vm20_vm0, %v194_v1, %v193_v0  ;;  %v196_v4 = vld [vmem:[%s364_s0 - $0x31] ss:$16 sm:%s28_s13]   ;;  %v201_v6 = vld [vmem:[%s364_s0 + $0x5] ss:$16 sm:%s63_s18]   ;;  %s71_s22 = smov 48  ;;  %s76_s27 = smov 192 }
   0x4   :  { %v26_v5 = vsel %vm25_vm1, %v195_v3, %v21_v2  ;;  %v202_v8 = vld [vmem:[%s364_s0 + $0x5] ss:$16 sm:%s66_s21]   ;;  %v203_v9 = vld [vmem:[%s364_s0 - $0x33] ss:$16 sm:%s71_s22]   ;;  %s229_s28 = smov 112   ;;  %s39_s2 = smov 3 }
   0x5   :  { %v31_v7 = vsel %vm30_vm2, %v196_v4, %v26_v5  ;;  %v69_v10 = vsel %vm20_vm0, %v202_v8, %v201_v6  ;;  %v204_v11 = vld [vmem:[%s364_s0 - $0x33] ss:$16 sm:%s76_s27]   ;;  %s42_s3 = smov 12  ;;  %v197_v13 = vld [vmem:[%s364_s0 + $0x6] ss:$16 sm:%s39_s2]   ;;  %s47_s8 = smov 48 }
   0x6   :  { %32 = vrot.lane.b32.xlu0 %v31_v7, %s229_s28  ;;  %v74_v12 = vsel %vm25_vm1, %v203_v9, %v69_v10  ;;  %v198_v14 = vld [vmem:[%s364_s0 + $0x6] ss:$16 sm:%s42_s3]   ;;  %s52_s9 = smov 192  ;;  %s87_s14 = smov 3  ;;  %vm58_vm6 = vcmask 917248   ;;  %vm82_vm7 = vcmask 786048  }
   0x7   :  { %v79_v15 = vsel %vm30_vm2, %v204_v11, %v74_v12  ;;  %v45_v16 = vsel %vm20_vm0, %v198_v14, %v197_v13  ;;  %v199_v17 = vld [vmem:[%s364_s0 - $0x32] ss:$16 sm:%s47_s8]   ;;  %s230_s15 = smov 80   ;;  %v205_v20 = vld [vmem:[%s364_s0 + $0x4] ss:$16 sm:%s87_s14]   ;;  %s90_s18 = smov 12 }
   0x8   :  { %v200_v18 = vld [vmem:[%s364_s0 - $0x32] ss:$16 sm:%s52_s9]   ;;  %80 = vrot.lane.b32.xlu1 %v79_v15, %s230_s15  ;;  %v50_v19 = vsel %vm25_vm1, %v199_v17, %v45_v16  ;;  %s95_s19 = smov 48  ;;  %s100_s24 = smov 192  ;;  %vm106_vm8 = vcmask 654848   ;;  %vm130_vm9 = vcmask 523648  }
   0x9   :  { %v55_v21 = vsel %vm30_vm2, %v200_v18, %v50_v19  ;;  %v206_v22 = vld [vmem:[%s364_s0 + $0x4] ss:$16 sm:%s90_s18]   ;;  %v207_v23 = vld [vmem:[%s364_s0 - $0x34] ss:$16 sm:%s95_s19]   ;;  %s231_s25 = smov 96   ;;  %s111_s28 = smov 3 }
   0xa   :  { %56 = vrot.lane.b32.xlu0 %v55_v21, %s231_s25  ;;  %v93_v24 = vsel %vm20_vm0, %v206_v22, %v205_v20  ;;  %v208_v25 = vld [vmem:[%s364_s0 - $0x34] ss:$16 sm:%s100_s24]   ;;  %s114_s29 = smov 12  ;;  %s119_s5 = smov 48  ;;  %vm154_vm10 = vcmask 392448   ;;  %vm178_vm11 = vcmask 261248  }
   0xb   :  { %v98_v26 = vsel %vm25_vm1, %v207_v23, %v93_v24  ;;  %v209_v27 = vld [vmem:[%s364_s0 + $0x3] ss:$16 sm:%s111_s28]   ;;  %s124_s6 = smov 192  ;;  %v211_v31 = vld [vmem:[%s364_s0 - $0x35] ss:$16 sm:%s119_s5]   ;;  %s135_s11 = smov 3 }
   0xc   :  { %v210_v28 = vld [vmem:[%s364_s0 + $0x3] ss:$16 sm:%s114_s29]   ;;  %v103_v29 = vsel %vm30_vm2, %v208_v25, %v98_v26  ;;  %v212_v32 = vld [vmem:[%s364_s0 - $0x35] ss:$16 sm:%s124_s6]   ;;  %s232_s12 = smov 64   ;;  %s138_s15 = smov 12 }
   0xd   :  { %v117_v30 = vsel %vm20_vm0, %v210_v28, %v209_v27  ;;  %104 = vrot.lane.b32.xlu1 %v103_v29, %s232_s12  ;;  %v213_v34 = vld [vmem:[%s364_s0 + $0x2] ss:$16 sm:%s135_s11]   ;;  %s143_s16 = smov 48  ;;  %s148_s21 = smov 192 }
   0xe   :  { %v122_v33 = vsel %vm25_vm1, %v211_v31, %v117_v30  ;;  %v214_v36 = vld [vmem:[%s364_s0 + $0x2] ss:$16 sm:%s138_s15]   ;;  %v215_v37 = vld [vmem:[%s364_s0 - $0x36] ss:$16 sm:%s143_s16]   ;;  %s233_s22 = smov 48   ;;  %s159_s25 = smov 3 }
   0xf   :  { %v127_v35 = vsel %vm30_vm2, %v212_v32, %v122_v33  ;;  %v141_v38 = vsel %vm20_vm0, %v214_v36, %v213_v34  ;;  %v216_v39 = vld [vmem:[%s364_s0 - $0x36] ss:$16 sm:%s148_s21]   ;;  %s162_s26 = smov 12  ;;  %v217_v41 = vld [vmem:[%s364_s0 + $0x1] ss:$16 sm:%s159_s25]   ;;  %s167_s2 = smov 48 }
  0x10   :  { %128 = vrot.lane.b32.xlu0 %v127_v35, %s233_s22  ;;  %v146_v40 = vsel %vm25_vm1, %v215_v37, %v141_v38  ;;  %v218_v42 = vld [vmem:[%s364_s0 + $0x1] ss:$16 sm:%s162_s26]   ;;  %s172_s3 = smov 192  ;;  %s234_s8 = smov 32  }
  0x11   :  { %v151_v43 = vsel %vm30_vm2, %v216_v39, %v146_v40  ;;  %v165_v44 = vsel %vm20_vm0, %v218_v42, %v217_v41  ;;  %v219_v45 = vld [vmem:[%s364_s0 - $0x37] ss:$16 sm:%s167_s2]   ;;  %v2_v48 = vld [vmem:[%s364_s0] ss:$8 sm:$0xf]  }
  0x12   :  { %v220_v46 = vld [vmem:[%s364_s0 - $0x37] ss:$16 sm:%s172_s3]   ;;  %152 = vrot.lane.b32.xlu1 %v151_v43, %s234_s8  ;;  %v170_v47 = vsel %vm25_vm1, %v219_v45, %v165_v44  ;;  %v3_v49 = vld [vmem:[%s364_s0] ss:$8 sm:$0xf0]   ;;  %s235_s0 = smov 16  }
  0x13   :  { %v175_v50 = vsel %vm30_vm2, %v220_v46, %v170_v47  ;;  %v5_v51 = vsel %vm4_vm3, %v3_v49, %v2_v48 }
  0x14   :  { %176 = vrot.lane.b32.xlu0 %v175_v50, %s235_s0  ;;  %7 = vst.msk [vmem:[#allocation0] ss:$8 sm:$0x3] %vm6_vm4, %v5_v51   ;;  %9 = vst.msk [vmem:[#allocation0 - $0xf] ss:$8 sm:$0xc] %vm6_vm4, %v5_v51  }
  0x15   :  { %11 = vst.msk [vmem:[#allocation0 - $0x1e] ss:$8 sm:$0x30] %vm6_vm4, %v5_v51   ;;  %13 = vst.msk [vmem:[#allocation0 - $0x2d] ss:$8 sm:$0xc0] %vm6_vm4, %v5_v51  }
  0x78   :  { %v33_v52 = vpop.permute.xlu0 %32  }
  0x79   :  { %35 = vst.msk [vmem:[#allocation0] sm:$0xf] %vm34_vm5, %v33_v52   ;;  %37 = vst.msk [vmem:[#allocation0 + $0x4] sm:$0xf0] %vm34_vm5, %v33_v52  }
  0x7a   :  { %v81_v53 = vpop.permute.xlu1 %80  }
  0x7c   :  { %v57_v54 = vpop.permute.xlu0 %56  }
  0x7d   :  { %59 = vst.msk [vmem:[#allocation0] sm:$0xf] %vm58_vm6, %v57_v54   ;;  %61 = vst.msk [vmem:[#allocation0 + $0x4] sm:$0xf0] %vm58_vm6, %v57_v54  }
  0x7e   :  { %83 = vst.msk [vmem:[#allocation0] sm:$0xf] %vm82_vm7, %v81_v53   ;;  %85 = vst.msk [vmem:[#allocation0 + $0x4] sm:$0xf0] %vm82_vm7, %v81_v53  }
  0x7f   :  { %v105_v55 = vpop.permute.xlu1 %104  }
  0x80   :  { %107 = vst.msk [vmem:[#allocation0] sm:$0xf] %vm106_vm8, %v105_v55   ;;  %109 = vst.msk [vmem:[#allocation0 + $0x4] sm:$0xf0] %vm106_vm8, %v105_v55  }
  0x82   :  { %v129_v56 = vpop.permute.xlu0 %128  }
  0x83   :  { %131 = vst.msk [vmem:[#allocation0] sm:$0xf] %vm130_vm9, %v129_v56   ;;  %133 = vst.msk [vmem:[#allocation0 + $0x4] sm:$0xf0] %vm130_vm9, %v129_v56  }
  0x84   :  { %v153_v57 = vpop.permute.xlu1 %152  }
  0x85   :  { %155 = vst.msk [vmem:[#allocation0] sm:$0xf] %vm154_vm10, %v153_v57   ;;  %157 = vst.msk [vmem:[#allocation0 + $0x4] sm:$0xf0] %vm154_vm10, %v153_v57  }
  0x86   :  { %v177_v58 = vpop.permute.xlu0 %176  }
  0x87   :  { %179 = vst.msk [vmem:[#allocation0] sm:$0xf] %vm178_vm11, %v177_v58   ;;  %181 = vst.msk [vmem:[#allocation0 + $0x4] sm:$0xf0] %vm178_vm11, %v177_v58  }
  0x8e   :  { %v185_v59 = vld [vmem:[#allocation0] sm:$0xf]  ;;  %v189_v60 = vld [vmem:[#allocation0 + $0x8] sm:$0xf] }
  0x8f   :  { %187 = vst [vmem:[%s365_s1] sm:$0xf] %v185_v59  ;;  %221 = vst [vmem:[%s365_s1 + $0x4] sm:$0xf] %v189_v60 }

// kernel: squeeze.6
= control target key start
LH: loop header
LB: loop body
LE: loop exit
PB: predicated region body
PF: predicated region fallthrough
CT: control target
= control target key end

     0   :  { %vm65_vm0 = vcmask 1043458   ;;  %s105_s6 = smov 3  ;;  %vm70_vm1 = vcmask 1045508   ;;  %vm75_vm2 = vcmask 1047558   ;;  %s108_s9 = smov 12  ;;  %vm4_vm3 = vcmask 1047556   ;;  %s1498_s0 = inlined_call_operand.vmem [shape: f32[4,4,16,16], index: 0, kind: input, shape index: {}]   ;;  %s1499_s1 = inlined_call_operand.vmem [shape: f32[16,256], index: 1, kind: output, shape index: {}]  }
   0x1   :  { %v726_v0 = vld [vmem:[%s1498_s0 + $0x87] ss:$16 sm:%s105_s6]   ;;  %s113_s10 = smov 48  ;;  %s118_s15 = smov 192  ;;  %vm6_vm4 = vcmask 130048   ;;  %vm79_vm5 = vcmask 1048448  }
   0x2   :  { %v727_v1 = vld [vmem:[%s1498_s0 + $0x87] ss:$16 sm:%s108_s9]   ;;  %s60_s16 = smov 3  ;;  %s63_s21 = smov 12  ;;  %vm170_vm6 = vcmask 917248   ;;  %vm261_vm7 = vcmask 786048  }
   0x3   :  { %v728_v2 = vld [vmem:[%s1498_s0 + $0x87] ss:$16 sm:%s113_s10]   ;;  %v111_v3 = vsel %vm65_vm0, %v727_v1, %v726_v0  ;;  %s68_s22 = smov 48  ;;  %s73_s27 = smov 192  ;;  %vm352_vm8 = vcmask 654848   ;;  %vm443_vm9 = vcmask 523648  }
   0x4   :  { %v729_v4 = vld [vmem:[%s1498_s0 + $0x87] ss:$16 sm:%s118_s15]   ;;  %v116_v6 = vsel %vm70_vm1, %v728_v2, %v111_v3  ;;  %s128_s28 = smov 3  ;;  %s131_s4 = smov 12  ;;  %vm534_vm10 = vcmask 392448   ;;  %vm625_vm11 = vcmask 261248  }
   0x5   :  { %v717_v5 = vld [vmem:[%s1498_s0 + $0x7] ss:$16 sm:%s60_s16]   ;;  %v121_v9 = vsel %vm75_vm2, %v729_v4, %v116_v6  ;;  %v731_v12 = vld [vmem:[%s1498_s0 + $0x8f] ss:$16 sm:%s128_s28]   ;;  %s136_s5 = smov 48  ;;  %s857_s6 = smov 112  }
   0x6   :  { %v718_v7 = vld [vmem:[%s1498_s0 + $0x7] ss:$16 sm:%s63_s21]   ;;  %122 = vrot.lane.b32.xlu1 %v121_v9, %s857_s6  ;;  %s141_s9 = smov 192  ;;  %s82_s10 = smov 3 }
   0x7   :  { %v719_v8 = vld [vmem:[%s1498_s0 + $0x7] ss:$16 sm:%s68_s22]   ;;  %v66_v10 = vsel %vm65_vm0, %v718_v7, %v717_v5  ;;  %v732_v14 = vld [vmem:[%s1498_s0 + $0x8f] ss:$16 sm:%s131_s4]   ;;  %s85_s15 = smov 12  ;;  %s90_s16 = smov 48 }
   0x8   :  { %v720_v11 = vld [vmem:[%s1498_s0 + $0x7] ss:$16 sm:%s73_s27]   ;;  %v71_v13 = vsel %vm70_vm1, %v719_v8, %v66_v10  ;;  %v134_v16 = vsel %vm65_vm0, %v732_v14, %v731_v12  ;;  %v733_v17 = vld [vmem:[%s1498_s0 + $0x8f] ss:$16 sm:%s136_s5]   ;;  %s95_s19 = smov 192  ;;  %s173_s24 = smov 3 }
   0x9   :  { %v76_v15 = vsel %vm75_vm2, %v720_v11, %v71_v13  ;;  %v734_v18 = vld [vmem:[%s1498_s0 + $0x8f] ss:$16 sm:%s141_s9]   ;;  %v139_v19 = vsel %vm70_vm1, %v733_v17, %v134_v16  ;;  %s176_s25 = smov 12  ;;  %s181_s28 = smov 48  ;;  %v740_v27 = vld [vmem:[%s1498_s0 + $0xe] ss:$16 sm:%s173_s24]  }
   0xa   :  { %77 = vrot.lane.b32.xlu0 %v76_v15, %s857_s6  ;;  %v721_v20 = vld [vmem:[%s1498_s0 + $0xf] ss:$16 sm:%s82_s10]   ;;  %v144_v21 = vsel %vm75_vm2, %v734_v18, %v139_v19  ;;  %s186_s29 = smov 192  ;;  %s151_s5 = smov 3 }
   0xb   :  { %v722_v22 = vld [vmem:[%s1498_s0 + $0xf] ss:$16 sm:%s85_s15]   ;;  %145 = vrot.lane.b32.xlu1 %v144_v21, %s857_s6  ;;  %s154_s7 = smov 12  ;;  %s159_s12 = smov 48 }
   0xc   :  { %v723_v23 = vld [vmem:[%s1498_s0 + $0xf] ss:$16 sm:%s90_s16]   ;;  %v88_v24 = vsel %vm65_vm0, %v722_v22, %v721_v20  ;;  %v741_v28 = vld [vmem:[%s1498_s0 + $0xe] ss:$16 sm:%s176_s25]   ;;  %s164_s13 = smov 192  ;;  %s219_s15 = smov 3 }
   0xd   :  { %v724_v25 = vld [vmem:[%s1498_s0 + $0xf] ss:$16 sm:%s95_s19]   ;;  %v93_v26 = vsel %vm70_vm1, %v723_v23, %v88_v24  ;;  %v179_v30 = vsel %vm65_vm0, %v741_v28, %v740_v27  ;;  %v742_v31 = vld [vmem:[%s1498_s0 + $0xe] ss:$16 sm:%s181_s28]   ;;  %s222_s16 = smov 12  ;;  %s227_s21 = smov 48 }
   0xe   :  { %v98_v29 = vsel %vm75_vm2, %v724_v25, %v93_v26  ;;  %v743_v32 = vld [vmem:[%s1498_s0 + $0xe] ss:$16 sm:%s186_s29]   ;;  %v184_v33 = vsel %vm70_vm1, %v742_v31, %v179_v30  ;;  %v736_v34 = vld [vmem:[%s1498_s0 + $0x6] ss:$16 sm:%s151_s5]   ;;  %s232_s22 = smov 192  ;;  %s858_s23 = smov 96  }
   0xf   :  { %99 = vrot.lane.b32.xlu0 %v98_v29, %s857_s6  ;;  %v189_v35 = vsel %vm75_vm2, %v743_v32, %v184_v33  ;;  %v737_v36 = vld [vmem:[%s1498_s0 + $0x6] ss:$16 sm:%s154_s7]   ;;  %s196_s26 = smov 3  ;;  %s199_s2 = smov 12 }
  0x10   :  { %v738_v37 = vld [vmem:[%s1498_s0 + $0x6] ss:$16 sm:%s159_s12]   ;;  %190 = vrot.lane.b32.xlu1 %v189_v35, %s858_s23  ;;  %v157_v38 = vsel %vm65_vm0, %v737_v36, %v736_v34  ;;  %s204_s3 = smov 48  ;;  %s209_s9 = smov 192 }
  0x11   :  { %v739_v39 = vld [vmem:[%s1498_s0 + $0x6] ss:$16 sm:%s164_s13]   ;;  %v162_v40 = vsel %vm70_vm1, %v738_v37, %v157_v38  ;;  %v750_v41 = vld [vmem:[%s1498_s0 + $0x8e] ss:$16 sm:%s219_s15]   ;;  %s264_s12 = smov 3  ;;  %s267_s13 = smov 12 }
  0x12   :  { %v751_v42 = vld [vmem:[%s1498_s0 + $0x8e] ss:$16 sm:%s222_s16]   ;;  %v167_v43 = vsel %vm75_vm2, %v739_v39, %v162_v40  ;;  %v745_v48 = vld [vmem:[%s1498_s0 + $0x86] ss:$16 sm:%s196_s26]   ;;  %s272_s17 = smov 48  ;;  %s277_s18 = smov 192 }
  0x13   :  { %v225_v44 = vsel %vm65_vm0, %v751_v42, %v750_v41  ;;  %v752_v45 = vld [vmem:[%s1498_s0 + $0x8e] ss:$16 sm:%s227_s21]   ;;  %168 = vrot.lane.b32.xlu0 %v167_v43, %s858_s23  ;;  %s242_s21 = smov 3  ;;  %s245_s27 = smov 12 }
  0x14   :  { %v753_v46 = vld [vmem:[%s1498_s0 + $0x8e] ss:$16 sm:%s232_s22]   ;;  %v230_v47 = vsel %vm70_vm1, %v752_v45, %v225_v44  ;;  %v746_v50 = vld [vmem:[%s1498_s0 + $0x86] ss:$16 sm:%s199_s2]   ;;  %s250_s28 = smov 48  ;;  %s255_s4 = smov 192 }
  0x15   :  { %v235_v49 = vsel %vm75_vm2, %v753_v46, %v230_v47  ;;  %v747_v51 = vld [vmem:[%s1498_s0 + $0x86] ss:$16 sm:%s204_s3]   ;;  %v202_v52 = vsel %vm65_vm0, %v746_v50, %v745_v48  ;;  %v759_v55 = vld [vmem:[%s1498_s0 + $0xd] ss:$16 sm:%s264_s12]   ;;  %s310_s7 = smov 3  ;;  %s313_s8 = smov 12 }
  0x16   :  { %236 = vrot.lane.b32.xlu1 %v235_v49, %s858_s23  ;;  %v748_v53 = vld [vmem:[%s1498_s0 + $0x86] ss:$16 sm:%s209_s9]   ;;  %v207_v54 = vsel %vm70_vm1, %v747_v51, %v202_v52  ;;  %s323_s6 = smov 192  ;;  %s859_s14 = smov 80  }
  0x17   :  { %v760_v56 = vld [vmem:[%s1498_s0 + $0xd] ss:$16 sm:%s267_s13]   ;;  %v212_v57 = vsel %vm75_vm2, %v748_v53, %v207_v54  ;;  %v755_v62 = vld [vmem:[%s1498_s0 + $0x5] ss:$16 sm:%s242_s21]   ;;  %s318_s13 = smov 48  ;;  %s290_s22 = smov 12 }
  0x18   :  { %v270_v58 = vsel %vm65_vm0, %v760_v56, %v759_v55  ;;  %v761_v59 = vld [vmem:[%s1498_s0 + $0xd] ss:$16 sm:%s272_s17]   ;;  %213 = vrot.lane.b32.xlu0 %v212_v57, %s858_s23  ;;  %s287_s17 = smov 3  ;;  %s295_s24 = smov 48 }
  0x19   :  { %v762_v60 = vld [vmem:[%s1498_s0 + $0xd] ss:$16 sm:%s277_s18]   ;;  %v275_v61 = vsel %vm70_vm1, %v761_v59, %v270_v58  ;;  %v756_v0 = vld [vmem:[%s1498_s0 + $0x5] ss:$16 sm:%s245_s27]   ;;  %s300_s29 = smov 192  ;;  %s355_s3 = smov 3 }
  0x1a   :  { %v280_v63 = vsel %vm75_vm2, %v762_v60, %v275_v61  ;;  %v757_v1 = vld [vmem:[%s1498_s0 + $0x5] ss:$16 sm:%s250_s28]   ;;  %v248_v2 = vsel %vm65_vm0, %v756_v0, %v755_v62  ;;  %v769_v5 = vld [vmem:[%s1498_s0 + $0x8d] ss:$16 sm:%s310_s7]   ;;  %s363_s9 = smov 48  ;;  %s368_s10 = smov 192 }
  0x1b   :  { %281 = vrot.lane.b32.xlu1 %v280_v63, %s859_s14  ;;  %v758_v3 = vld [vmem:[%s1498_s0 + $0x5] ss:$16 sm:%s255_s4]   ;;  %v253_v4 = vsel %vm70_vm1, %v757_v1, %v248_v2  ;;  %s358_s4 = smov 12  ;;  %s336_s18 = smov 12 }
  0x1c   :  { %v770_v6 = vld [vmem:[%s1498_s0 + $0x8d] ss:$16 sm:%s313_s8]   ;;  %v258_v7 = vsel %vm75_vm2, %v758_v3, %v253_v4  ;;  %v764_v12 = vld [vmem:[%s1498_s0 + $0x85] ss:$16 sm:%s287_s17]   ;;  %s341_s19 = smov 48  ;;  %s346_s25 = smov 192 }
  0x1d   :  { %v316_v8 = vsel %vm65_vm0, %v770_v6, %v769_v5  ;;  %v771_v9 = vld [vmem:[%s1498_s0 + $0x8d] ss:$16 sm:%s318_s13]   ;;  %259 = vrot.lane.b32.xlu0 %v258_v7, %s859_s14  ;;  %s333_s13 = smov 3  ;;  %s401_s27 = smov 3 }
  0x1e   :  { %v772_v10 = vld [vmem:[%s1498_s0 + $0x8d] ss:$16 sm:%s323_s6]   ;;  %v321_v11 = vsel %vm70_vm1, %v771_v9, %v316_v8  ;;  %v765_v14 = vld [vmem:[%s1498_s0 + $0x85] ss:$16 sm:%s290_s22]   ;;  %s404_s28 = smov 12  ;;  %s414_s23 = smov 192 }
  0x1f   :  { %v326_v13 = vsel %vm75_vm2, %v772_v10, %v321_v11  ;;  %v766_v15 = vld [vmem:[%s1498_s0 + $0x85] ss:$16 sm:%s295_s24]   ;;  %v293_v16 = vsel %vm65_vm0, %v765_v14, %v764_v12  ;;  %v778_v19 = vld [vmem:[%s1498_s0 + $0xc] ss:$16 sm:%s355_s3]   ;;  %s860_s5 = smov 64   ;;  %s381_s6 = smov 12 }
  0x20   :  { %327 = vrot.lane.b32.xlu1 %v326_v13, %s859_s14  ;;  %v767_v17 = vld [vmem:[%s1498_s0 + $0x85] ss:$16 sm:%s300_s29]   ;;  %v298_v18 = vsel %vm70_vm1, %v766_v15, %v293_v16  ;;  %s386_s15 = smov 48  ;;  %s391_s20 = smov 192 }
  0x21   :  { %v779_v20 = vld [vmem:[%s1498_s0 + $0xc] ss:$16 sm:%s358_s4]   ;;  %v303_v21 = vsel %vm75_vm2, %v767_v17, %v298_v18  ;;  %v774_v26 = vld [vmem:[%s1498_s0 + $0x4] ss:$16 sm:%s333_s13]   ;;  %s409_s4 = smov 48  ;;  %s446_s24 = smov 3 }
  0x22   :  { %v361_v22 = vsel %vm65_vm0, %v779_v20, %v778_v19  ;;  %v780_v23 = vld [vmem:[%s1498_s0 + $0xc] ss:$16 sm:%s363_s9]   ;;  %304 = vrot.lane.b32.xlu0 %v303_v21, %s859_s14  ;;  %s378_s9 = smov 3  ;;  %s454_s29 = smov 48 }
  0x23   :  { %v781_v24 = vld [vmem:[%s1498_s0 + $0xc] ss:$16 sm:%s368_s10]   ;;  %v366_v25 = vsel %vm70_vm1, %v780_v23, %v361_v22  ;;  %v775_v28 = vld [vmem:[%s1498_s0 + $0x4] ss:$16 sm:%s336_s18]   ;;  %s459_s30 = smov 192  ;;  %s427_s10 = smov 12 }
  0x24   :  { %v371_v27 = vsel %vm75_vm2, %v781_v24, %v366_v25  ;;  %v776_v29 = vld [vmem:[%s1498_s0 + $0x4] ss:$16 sm:%s341_s19]   ;;  %v339_v30 = vsel %vm65_vm0, %v775_v28, %v774_v26  ;;  %v788_v33 = vld [vmem:[%s1498_s0 + $0x8c] ss:$16 sm:%s401_s27]   ;;  %s432_s11 = smov 48  ;;  %s437_s16 = smov 192 }
  0x25   :  { %372 = vrot.lane.b32.xlu1 %v371_v27, %s860_s5  ;;  %v777_v31 = vld [vmem:[%s1498_s0 + $0x4] ss:$16 sm:%s346_s25]   ;;  %v344_v32 = vsel %vm70_vm1, %v776_v29, %v339_v30  ;;  %s449_s25 = smov 12  ;;  %s492_s18 = smov 3 }
  0x26   :  { %v789_v34 = vld [vmem:[%s1498_s0 + $0x8c] ss:$16 sm:%s404_s28]   ;;  %v349_v35 = vsel %vm75_vm2, %v777_v31, %v344_v32  ;;  %v783_v40 = vld [vmem:[%s1498_s0 + $0x84] ss:$16 sm:%s378_s9]   ;;  %s495_s19 = smov 12  ;;  %s505_s14 = smov 192 }
  0x27   :  { %v407_v36 = vsel %vm65_vm0, %v789_v34, %v788_v33  ;;  %v790_v37 = vld [vmem:[%s1498_s0 + $0x8c] ss:$16 sm:%s409_s4]   ;;  %350 = vrot.lane.b32.xlu0 %v349_v35, %s860_s5  ;;  %s424_s4 = smov 3  ;;  %s861_s26 = smov 48  }
  0x28   :  { %v791_v38 = vld [vmem:[%s1498_s0 + $0x8c] ss:$16 sm:%s414_s23]   ;;  %v412_v39 = vsel %vm70_vm1, %v790_v37, %v407_v36  ;;  %v784_v42 = vld [vmem:[%s1498_s0 + $0x84] ss:$16 sm:%s381_s6]   ;;  %s472_s23 = smov 12  ;;  %s477_s7 = smov 48 }
  0x29   :  { %v417_v41 = vsel %vm75_vm2, %v791_v38, %v412_v39  ;;  %v785_v43 = vld [vmem:[%s1498_s0 + $0x84] ss:$16 sm:%s386_s15]   ;;  %v384_v44 = vsel %vm65_vm0, %v784_v42, %v783_v40  ;;  %v797_v47 = vld [vmem:[%s1498_s0 + $0xb] ss:$16 sm:%s446_s24]   ;;  %s482_s12 = smov 192  ;;  %s537_s15 = smov 3 }
  0x2a   :  { %418 = vrot.lane.b32.xlu1 %v417_v41, %s860_s5  ;;  %v786_v45 = vld [vmem:[%s1498_s0 + $0x84] ss:$16 sm:%s391_s20]   ;;  %v389_v46 = vsel %vm70_vm1, %v785_v43, %v384_v44  ;;  %s545_s20 = smov 48  ;;  %s550_s21 = smov 192 }
  0x2b   :  { %v798_v48 = vld [vmem:[%s1498_s0 + $0xb] ss:$16 sm:%s449_s25]   ;;  %v394_v49 = vsel %vm75_vm2, %v786_v45, %v389_v46  ;;  %v793_v54 = vld [vmem:[%s1498_s0 + $0x3] ss:$16 sm:%s424_s4]   ;;  %s500_s25 = smov 48  ;;  %s523_s2 = smov 48 }
  0x2c   :  { %v452_v50 = vsel %vm65_vm0, %v798_v48, %v797_v47  ;;  %v799_v51 = vld [vmem:[%s1498_s0 + $0xb] ss:$16 sm:%s454_s29]   ;;  %395 = vrot.lane.b32.xlu0 %v394_v49, %s860_s5  ;;  %s469_s29 = smov 3  ;;  %s528_s8 = smov 192 }
  0x2d   :  { %v800_v52 = vld [vmem:[%s1498_s0 + $0xb] ss:$16 sm:%s459_s30]   ;;  %v457_v53 = vsel %vm70_vm1, %v799_v51, %v452_v50  ;;  %v794_v56 = vld [vmem:[%s1498_s0 + $0x3] ss:$16 sm:%s427_s10]   ;;  %s518_s30 = smov 12  ;;  %s583_s10 = smov 3 }
  0x2e   :  { %v462_v55 = vsel %vm75_vm2, %v800_v52, %v457_v53  ;;  %v795_v57 = vld [vmem:[%s1498_s0 + $0x3] ss:$16 sm:%s432_s11]   ;;  %v430_v58 = vsel %vm65_vm0, %v794_v56, %v793_v54  ;;  %v807_v61 = vld [vmem:[%s1498_s0 + $0x8b] ss:$16 sm:%s492_s18]   ;;  %s586_s11 = smov 12  ;;  %s596_s5 = smov 192 }
  0x2f   :  { %463 = vrot.lane.b32.xlu1 %v462_v55, %s861_s26  ;;  %v796_v59 = vld [vmem:[%s1498_s0 + $0x3] ss:$16 sm:%s437_s16]   ;;  %v435_v60 = vsel %vm70_vm1, %v795_v57, %v430_v58  ;;  %s540_s16 = smov 12  ;;  %s862_s17 = smov 32  }
  0x30   :  { %v808_v62 = vld [vmem:[%s1498_s0 + $0x8b] ss:$16 sm:%s495_s19]   ;;  %v440_v63 = vsel %vm75_vm2, %v796_v59, %v435_v60  ;;  %v802_v4 = vld [vmem:[%s1498_s0 + $0x83] ss:$16 sm:%s469_s29]   ;;  %s568_s27 = smov 48  ;;  %s573_s3 = smov 192 }
  0x31   :  { %v498_v0 = vsel %vm65_vm0, %v808_v62, %v807_v61  ;;  %v809_v1 = vld [vmem:[%s1498_s0 + $0x8b] ss:$16 sm:%s500_s25]   ;;  %441 = vrot.lane.b32.xlu0 %v440_v63, %s861_s26  ;;  %s515_s25 = smov 3  ;;  %s641_s13 = smov 192 }
  0x32   :  { %v810_v2 = vld [vmem:[%s1498_s0 + $0x8b] ss:$16 sm:%s505_s14]   ;;  %v503_v3 = vsel %vm70_vm1, %v809_v1, %v498_v0  ;;  %v803_v6 = vld [vmem:[%s1498_s0 + $0x83] ss:$16 sm:%s472_s23]   ;;  %s563_s14 = smov 12  ;;  %s609_s24 = smov 12 }
  0x33   :  { %v508_v5 = vsel %vm75_vm2, %v810_v2, %v503_v3  ;;  %v804_v7 = vld [vmem:[%s1498_s0 + $0x83] ss:$16 sm:%s477_s7]   ;;  %v475_v8 = vsel %vm65_vm0, %v803_v6, %v802_v4  ;;  %v816_v11 = vld [vmem:[%s1498_s0 + $0xa] ss:$16 sm:%s537_s15]   ;;  %s628_s7 = smov 3  ;;  %s677_s4 = smov 12 }
  0x34   :  { %509 = vrot.lane.b32.xlu1 %v508_v5, %s861_s26  ;;  %v805_v9 = vld [vmem:[%s1498_s0 + $0x83] ss:$16 sm:%s482_s12]   ;;  %v480_v10 = vsel %vm70_vm1, %v804_v7, %v475_v8  ;;  %s636_s12 = smov 48  ;;  %v2_v38 = vld [vmem:[%s1498_s0] ss:$8 sm:$0xf]  }
  0x35   :  { %v817_v12 = vld [vmem:[%s1498_s0 + $0xa] ss:$16 sm:%s540_s16]   ;;  %v485_v13 = vsel %vm75_vm2, %v805_v9, %v480_v10  ;;  %v812_v18 = vld [vmem:[%s1498_s0 + $0x2] ss:$16 sm:%s515_s25]   ;;  %s591_s16 = smov 48  ;;  %s614_s25 = smov 48 }
  0x36   :  { %v543_v14 = vsel %vm65_vm0, %v817_v12, %v816_v11  ;;  %v818_v15 = vld [vmem:[%s1498_s0 + $0xa] ss:$16 sm:%s545_s20]   ;;  %486 = vrot.lane.b32.xlu0 %v485_v13, %s861_s26  ;;  %s560_s20 = smov 3  ;;  %v3_v48 = vld [vmem:[%s1498_s0] ss:$8 sm:$0xf0]  }
  0x37   :  { %v819_v16 = vld [vmem:[%s1498_s0 + $0xa] ss:$16 sm:%s550_s21]   ;;  %v548_v17 = vsel %vm70_vm1, %v818_v15, %v543_v14  ;;  %v813_v20 = vld [vmem:[%s1498_s0 + $0x2] ss:$16 sm:%s518_s30]   ;;  %s619_s30 = smov 192  ;;  %v5_v52 = vsel %vm4_vm3, %v3_v48, %v2_v38  ;;  %s664_s26 = smov 192 }
  0x38   :  { %v553_v19 = vsel %vm75_vm2, %v819_v16, %v548_v17  ;;  %v814_v21 = vld [vmem:[%s1498_s0 + $0x2] ss:$16 sm:%s523_s2]   ;;  %v521_v22 = vsel %vm65_vm0, %v813_v20, %v812_v18  ;;  %v826_v25 = vld [vmem:[%s1498_s0 + $0x8a] ss:$16 sm:%s583_s10]   ;;  %s674_s2 = smov 3 }
  0x39   :  { %554 = vrot.lane.b32.xlu1 %v553_v19, %s862_s17  ;;  %v815_v23 = vld [vmem:[%s1498_s0 + $0x2] ss:$16 sm:%s528_s8]   ;;  %v526_v24 = vsel %vm70_vm1, %v814_v21, %v521_v22  ;;  %s631_s8 = smov 12  ;;  %7 = vst.msk [vmem:[%s1499_s1] ss:$8 sm:$0x3] %vm6_vm4, %v5_v52  }
  0x3a   :  { %v827_v26 = vld [vmem:[%s1498_s0 + $0x8a] ss:$16 sm:%s586_s11]   ;;  %v531_v27 = vsel %vm75_vm2, %v815_v23, %v526_v24  ;;  %v821_v32 = vld [vmem:[%s1498_s0 + $0x82] ss:$16 sm:%s560_s20]   ;;  %s682_s11 = smov 48 }
  0x3b   :  { %v589_v28 = vsel %vm65_vm0, %v827_v26, %v826_v25  ;;  %v828_v29 = vld [vmem:[%s1498_s0 + $0x8a] ss:$16 sm:%s591_s16]   ;;  %532 = vrot.lane.b32.xlu0 %v531_v27, %s862_s17  ;;  %s606_s16 = smov 3  ;;  %696 = vst.msk [vmem:[%s1499_s1 - $0xf] ss:$8 sm:$0xc] %vm6_vm4, %v5_v52  }
  0x3c   :  { %v829_v30 = vld [vmem:[%s1498_s0 + $0x8a] ss:$16 sm:%s596_s5]   ;;  %v594_v31 = vsel %vm70_vm1, %v828_v29, %v589_v28  ;;  %v822_v34 = vld [vmem:[%s1498_s0 + $0x82] ss:$16 sm:%s563_s14]  }
  0x3d   :  { %v599_v33 = vsel %vm75_vm2, %v829_v30, %v594_v31  ;;  %v823_v35 = vld [vmem:[%s1498_s0 + $0x82] ss:$16 sm:%s568_s27]   ;;  %v566_v36 = vsel %vm65_vm0, %v822_v34, %v821_v32  ;;  %v835_v40 = vld [vmem:[%s1498_s0 + $0x9] ss:$16 sm:%s628_s7]  }
  0x3e   :  { %600 = vrot.lane.b32.xlu1 %v599_v33, %s862_s17  ;;  %v824_v37 = vld [vmem:[%s1498_s0 + $0x82] ss:$16 sm:%s573_s3]   ;;  %v571_v39 = vsel %vm70_vm1, %v823_v35, %v566_v36  ;;  %697 = vst.msk [vmem:[%s1499_s1 - $0x1e] ss:$8 sm:$0x30] %vm6_vm4, %v5_v52   ;;  %s659_s3 = smov 48 }
  0x3f   :  { %v836_v41 = vld [vmem:[%s1498_s0 + $0x9] ss:$16 sm:%s631_s8]   ;;  %v576_v42 = vsel %vm75_vm2, %v824_v37, %v571_v39  ;;  %v831_v47 = vld [vmem:[%s1498_s0 + $0x1] ss:$16 sm:%s606_s16]   ;;  %s651_s16 = smov 3 }
  0x40   :  { %v634_v43 = vsel %vm65_vm0, %v836_v41, %v835_v40  ;;  %v837_v44 = vld [vmem:[%s1498_s0 + $0x9] ss:$16 sm:%s636_s12]   ;;  %577 = vrot.lane.b32.xlu0 %v576_v42, %s862_s17  ;;  %s687_s12 = smov 192  ;;  %698 = vst.msk [vmem:[%s1499_s1 - $0x2d] ss:$8 sm:$0xc0] %vm6_vm4, %v5_v52  }
  0x41   :  { %v838_v45 = vld [vmem:[%s1498_s0 + $0x9] ss:$16 sm:%s641_s13]   ;;  %v639_v46 = vsel %vm70_vm1, %v837_v44, %v634_v43  ;;  %v832_v50 = vld [vmem:[%s1498_s0 + $0x1] ss:$16 sm:%s609_s24]   ;;  %s863_s13 = smov 16   ;;  %s654_s17 = smov 12 }
  0x42   :  { %v644_v49 = vsel %vm75_vm2, %v838_v45, %v639_v46  ;;  %v833_v51 = vld [vmem:[%s1498_s0 + $0x1] ss:$16 sm:%s614_s25]   ;;  %v612_v53 = vsel %vm65_vm0, %v832_v50, %v831_v47  ;;  %v699_v55 = vld [vmem:[%s1498_s0 + $0x40] ss:$8 sm:$0xf]  }
  0x43   :  { %645 = vrot.lane.b32.xlu1 %v644_v49, %s863_s13  ;;  %v834_v54 = vld [vmem:[%s1498_s0 + $0x1] ss:$16 sm:%s619_s30]   ;;  %v617_v56 = vsel %vm70_vm1, %v833_v51, %v612_v53  ;;  %v700_v1 = vld [vmem:[%s1498_s0 + $0x40] ss:$8 sm:$0xf0]  }
  0x44   :  { %v845_v57 = vld [vmem:[%s1498_s0 + $0x89] ss:$16 sm:%s674_s2]   ;;  %v622_v59 = vsel %vm75_vm2, %v834_v54, %v617_v56  ;;  %v840_v0 = vld [vmem:[%s1498_s0 + $0x81] ss:$16 sm:%s651_s16]   ;;  %v19_v5 = vsel %vm4_vm3, %v700_v1, %v699_v55 }
  0x45   :  { %v846_v58 = vld [vmem:[%s1498_s0 + $0x89] ss:$16 sm:%s677_s4]   ;;  %623 = vrot.lane.b32.xlu0 %v622_v59, %s863_s13  ;;  %701 = vst.msk [vmem:[%s1499_s1 + $0x4] ss:$8 sm:$0x3] %vm6_vm4, %v19_v5  }
  0x46   :  { %v680_v60 = vsel %vm65_vm0, %v846_v58, %v845_v57  ;;  %v847_v61 = vld [vmem:[%s1498_s0 + $0x89] ss:$16 sm:%s682_s11]   ;;  %v841_v3 = vld [vmem:[%s1498_s0 + $0x81] ss:$16 sm:%s654_s17]  }
  0x47   :  { %v848_v62 = vld [vmem:[%s1498_s0 + $0x89] ss:$16 sm:%s687_s12]   ;;  %v685_v63 = vsel %vm70_vm1, %v847_v61, %v680_v60  ;;  %v842_v4 = vld [vmem:[%s1498_s0 + $0x81] ss:$16 sm:%s659_s3]   ;;  %v657_v6 = vsel %vm65_vm0, %v841_v3, %v840_v0 }
  0x48   :  { %v690_v2 = vsel %vm75_vm2, %v848_v62, %v685_v63  ;;  %v843_v7 = vld [vmem:[%s1498_s0 + $0x81] ss:$16 sm:%s664_s26]   ;;  %702 = vst.msk [vmem:[%s1499_s1 - $0xb] ss:$8 sm:$0xc] %vm6_vm4, %v19_v5   ;;  %v662_v9 = vsel %vm70_vm1, %v842_v4, %v657_v6 }
  0x49   :  { %691 = vrot.lane.b32.xlu1 %v690_v2, %s863_s13  ;;  %703 = vst.msk [vmem:[%s1499_s1 - $0x1a] ss:$8 sm:$0x30] %vm6_vm4, %v19_v5   ;;  %704 = vst.msk [vmem:[%s1499_s1 - $0x29] ss:$8 sm:$0xc0] %vm6_vm4, %v19_v5   ;;  %v667_v12 = vsel %vm75_vm2, %v843_v7, %v662_v9 }
  0x4a   :  { %v705_v8 = vld [vmem:[%s1498_s0 + $0x80] ss:$8 sm:$0xf]   ;;  %668 = vrot.lane.b32.xlu0 %v667_v12, %s863_s13 }
  0x4b   :  { %v706_v10 = vld [vmem:[%s1498_s0 + $0x80] ss:$8 sm:$0xf0]  }
  0x4c   :  { %v711_v11 = vld [vmem:[%s1498_s0 + $0xc0] ss:$8 sm:$0xf]   ;;  %v34_v13 = vsel %vm4_vm3, %v706_v10, %v705_v8 }
  0x4d   :  { %v712_v14 = vld [vmem:[%s1498_s0 + $0xc0] ss:$8 sm:$0xf0]   ;;  %707 = vst.msk [vmem:[%s1499_s1 + $0x10] ss:$8 sm:$0x3] %vm6_vm4, %v34_v13  }
  0x4e   :  { %708 = vst.msk [vmem:[%s1499_s1 + $0x1] ss:$8 sm:$0xc] %vm6_vm4, %v34_v13   ;;  %709 = vst.msk [vmem:[%s1499_s1 - $0xe] ss:$8 sm:$0x30] %vm6_vm4, %v34_v13   ;;  %v49_v15 = vsel %vm4_vm3, %v712_v14, %v711_v11 }
  0x4f   :  { %710 = vst.msk [vmem:[%s1499_s1 - $0x1d] ss:$8 sm:$0xc0] %vm6_vm4, %v34_v13   ;;  %713 = vst.msk [vmem:[%s1499_s1 + $0x14] ss:$8 sm:$0x3] %vm6_vm4, %v49_v15  }
  0x50   :  { %714 = vst.msk [vmem:[%s1499_s1 + $0x5] ss:$8 sm:$0xc] %vm6_vm4, %v49_v15   ;;  %715 = vst.msk [vmem:[%s1499_s1 - $0xa] ss:$8 sm:$0x30] %vm6_vm4, %v49_v15  }
  0x51   :  { %716 = vst.msk [vmem:[%s1499_s1 - $0x19] ss:$8 sm:$0xc0] %vm6_vm4, %v49_v15  }
  0x78   :  { %v123_v16 = vpop.permute.xlu1 %122  }
  0x79   :  { %730 = vst.msk [vmem:[%s1499_s1 + $0x10] sm:$0xff] %vm79_vm5, %v123_v16  }
  0x7c   :  { %v78_v17 = vpop.permute.xlu0 %77  }
  0x7d   :  { %80 = vst.msk [vmem:[%s1499_s1] sm:$0xff] %vm79_vm5, %v78_v17   ;;  %v146_v18 = vpop.permute.xlu1 %145  }
  0x7e   :  { %735 = vst.msk [vmem:[%s1499_s1 + $0x18] sm:$0xff] %vm79_vm5, %v146_v18  }
  0x81   :  { %v100_v19 = vpop.permute.xlu0 %99  }
  0x82   :  { %725 = vst.msk [vmem:[%s1499_s1 + $0x8] sm:$0xff] %vm79_vm5, %v100_v19   ;;  %v191_v20 = vpop.permute.xlu1 %190  }
  0x83   :  { %744 = vst.msk [vmem:[%s1499_s1 + $0x8] sm:$0xff] %vm170_vm6, %v191_v20  }
  0x85   :  { %v169_v21 = vpop.permute.xlu0 %168  }
  0x86   :  { %171 = vst.msk [vmem:[%s1499_s1] sm:$0xff] %vm170_vm6, %v169_v21  }
  0x88   :  { %v237_v22 = vpop.permute.xlu1 %236  }
  0x89   :  { %754 = vst.msk [vmem:[%s1499_s1 + $0x18] sm:$0xff] %vm170_vm6, %v237_v22  }
  0x8a   :  { %v214_v23 = vpop.permute.xlu0 %213  }
  0x8b   :  { %749 = vst.msk [vmem:[%s1499_s1 + $0x10] sm:$0xff] %vm170_vm6, %v214_v23  }
  0x8d   :  { %v282_v24 = vpop.permute.xlu1 %281  }
  0x8e   :  { %763 = vst.msk [vmem:[%s1499_s1 + $0x8] sm:$0xff] %vm261_vm7, %v282_v24  }
  0x8f   :  { %v260_v25 = vpop.permute.xlu0 %259  }
  0x90   :  { %262 = vst.msk [vmem:[%s1499_s1] sm:$0xff] %vm261_vm7, %v260_v25  }
  0x92   :  { %v328_v26 = vpop.permute.xlu1 %327  }
  0x93   :  { %773 = vst.msk [vmem:[%s1499_s1 + $0x18] sm:$0xff] %vm261_vm7, %v328_v26  }
  0x94   :  { %v305_v27 = vpop.permute.xlu0 %304  }
  0x95   :  { %768 = vst.msk [vmem:[%s1499_s1 + $0x10] sm:$0xff] %vm261_vm7, %v305_v27  }
  0x97   :  { %v373_v28 = vpop.permute.xlu1 %372  }
  0x98   :  { %782 = vst.msk [vmem:[%s1499_s1 + $0x8] sm:$0xff] %vm352_vm8, %v373_v28  }
  0x99   :  { %v351_v29 = vpop.permute.xlu0 %350  }
  0x9a   :  { %353 = vst.msk [vmem:[%s1499_s1] sm:$0xff] %vm352_vm8, %v351_v29  }
  0x9c   :  { %v419_v30 = vpop.permute.xlu1 %418  }
  0x9d   :  { %792 = vst.msk [vmem:[%s1499_s1 + $0x18] sm:$0xff] %vm352_vm8, %v419_v30  }
  0x9e   :  { %v396_v31 = vpop.permute.xlu0 %395  }
  0x9f   :  { %787 = vst.msk [vmem:[%s1499_s1 + $0x10] sm:$0xff] %vm352_vm8, %v396_v31  }
  0xa1   :  { %v464_v32 = vpop.permute.xlu1 %463  }
  0xa2   :  { %801 = vst.msk [vmem:[%s1499_s1 + $0x8] sm:$0xff] %vm443_vm9, %v464_v32  }
  0xa3   :  { %v442_v33 = vpop.permute.xlu0 %441  }
  0xa4   :  { %444 = vst.msk [vmem:[%s1499_s1] sm:$0xff] %vm443_vm9, %v442_v33  }
  0xa6   :  { %v510_v34 = vpop.permute.xlu1 %509  }
  0xa7   :  { %811 = vst.msk [vmem:[%s1499_s1 + $0x18] sm:$0xff] %vm443_vm9, %v510_v34  }
  0xa8   :  { %v487_v35 = vpop.permute.xlu0 %486  }
  0xa9   :  { %806 = vst.msk [vmem:[%s1499_s1 + $0x10] sm:$0xff] %vm443_vm9, %v487_v35  }
  0xab   :  { %v555_v36 = vpop.permute.xlu1 %554  }
  0xac   :  { %820 = vst.msk [vmem:[%s1499_s1 + $0x8] sm:$0xff] %vm534_vm10, %v555_v36  }
  0xad   :  { %v533_v37 = vpop.permute.xlu0 %532  }
  0xae   :  { %535 = vst.msk [vmem:[%s1499_s1] sm:$0xff] %vm534_vm10, %v533_v37  }
  0xb0   :  { %v601_v38 = vpop.permute.xlu1 %600  }
  0xb1   :  { %830 = vst.msk [vmem:[%s1499_s1 + $0x18] sm:$0xff] %vm534_vm10, %v601_v38  }
  0xb2   :  { %v578_v39 = vpop.permute.xlu0 %577  }
  0xb3   :  { %825 = vst.msk [vmem:[%s1499_s1 + $0x10] sm:$0xff] %vm534_vm10, %v578_v39  }
  0xb5   :  { %v646_v40 = vpop.permute.xlu1 %645  }
  0xb6   :  { %839 = vst.msk [vmem:[%s1499_s1 + $0x8] sm:$0xff] %vm625_vm11, %v646_v40  }
  0xb7   :  { %v624_v41 = vpop.permute.xlu0 %623  }
  0xb8   :  { %626 = vst.msk [vmem:[%s1499_s1] sm:$0xff] %vm625_vm11, %v624_v41  }
  0xbb   :  { %v692_v42 = vpop.permute.xlu1 %691  }
  0xbc   :  { %849 = vst.msk [vmem:[%s1499_s1 + $0x18] sm:$0xff] %vm625_vm11, %v692_v42   ;;  %v669_v43 = vpop.permute.xlu0 %668  }
  0xbd   :  { %844 = vst.msk [vmem:[%s1499_s1 + $0x10] sm:$0xff] %vm625_vm11, %v669_v43  }

// kernel: qvarnet_block_forward.1
= control target key start
LH: loop header
LB: loop body
LE: loop exit
PB: predicated region body
PF: predicated region fallthrough
CT: control target
= control target key end

     0   :  { %19 = vsyncpa [#allocation7], 0  ;;  %s3285_s0 = inlined_call_operand.vmem [shape: f32[4], index: 0, kind: input, shape index: {}]   ;;  %s3286_s1 = inlined_call_operand.<no memory space> [shape: f32[1], index: 1, kind: input, shape index: {}]   ;;  %s3287_s2 = inlined_call_operand.vmem [shape: f32[4,1], index: 2, kind: input, shape index: {}]   ;;  %s3288_s3 = inlined_call_operand.vmem [shape: f32[8,256], index: 3, kind: input, shape index: {}]   ;;  %s3289_s4 = inlined_call_operand.vmem [shape: f32[4,256], index: 4, kind: input, shape index: {}]   ;;  %s3290_s5 = inlined_call_operand.vmem [shape: f32[4,256], index: 5, kind: input, shape index: {}]   ;;  %s3291_s6 = inlined_call_operand.vmem [shape: f32[16,256], index: 6, kind: input, shape index: {}]   ;;  %s3292_s7 = inlined_call_operand.vmem [shape: f32[16,256], index: 7, kind: input, shape index: {}]   ;;  %s3293_s8 = inlined_call_operand.vmem [shape: f32[1,256], index: 8, kind: input, shape index: {}]   ;;  %s3294_s9 = inlined_call_operand.vmem [shape: bf16[256,512], index: 9, kind: input, shape index: {}]   ;;  %s3295_s10 = inlined_call_operand.vmem [shape: f32[9,256], index: 10, kind: input, shape index: {}]   ;;  %s3296_s11 = inlined_call_operand.vmem [shape: f32[8,72], index: 11, kind: input, shape index: {}]   ;;  %s3297_s12 = inlined_call_operand.vmem [shape: f32[8,1], index: 12, kind: input, shape index: {}]   ;;  %s3298_s13 = inlined_call_operand.vmem [shape: f32[8,256], index: 13, kind: output, shape index: {}]  }
   0x1   :  { %s26_s27 = sshll.u32 %s3285_s0, 4  ;;  %s27_s27 = int_to_ptr.vmem [resolvable:$true] %s26_s27 }
   0x2   :  { %s2372_s28 = scalar_lea.vmem %s27_s27, 16  ;;  %p2377_p1 = scmp.lt.s32.totalorder %s27_s27, %s27_s27 }
   0x3   :  { %p2373_p0 = scmp.ne.s32.totalorder %s27_s27, %s2372_s28  ;;  %p2378_p2 = scmp.lt.s32.totalorder %s2372_s28, %s2372_s28 }
   0x5   :  { %p2379_p3 = por %p2378_p2, %p2377_p1 }
   0x7   :  { %p2380_p4 = pnand %p2379_p3, %p2373_p0 }
   0x9   :  { %2383 = shalt.err (!%p2380_p4)
}
   0xa   :  { %s2386_s29 = smov [#allocation6]  }
   0xb   :  { %29 = dma.vmem_to_smem %s27_s27, 16, %s2386_s29, [#allocation7]  }
   0xc   :  { %2384 = dma.done.wait [#allocation7], 16  }
   0xd   :  { %2385 = vsyncadd [#allocation7], 4294967280 }
   0xe   :  { %57 = sfence }
   0xf   :  { %v80_v0 = vld [vmem:[%s3287_s2] sm:$0xf]  ;;  %v2387_v1 = vmov 0   ;;  %v2262_v3 = vld [vmem:[%s3294_s9 + $0x4] ss:$16 sps:$4 sm:$0xff]   ;;  %s2118_s14 = sld [smem:[#allocation6 + $0x3]]  ;;  %v87_v15 = vlaneseq }
  0x10   :  { %2258 = vset.pattern.permute.xlu0 %v2387_v1  ;;  %v81_v2 = vsub.f32 0.0, %v80_v0  ;;  %2259 = vset.pattern.permute.xlu1 %v2387_v1  ;;  %v2264_v4 = vld [vmem:[%s3294_s9] ss:$16 sps:$4 sm:$0xff]   ;;  %v2265_v5 = vld [vmem:[%s3294_s9 + $0x24] ss:$16 sps:$4 sm:$0xff]   ;;  %s2117_s24 = sld [smem:[#allocation6 + $0x2]] }
  0x11   :  { %1119 = vmatprep.subr.bf16.mxu0 %v2262_v3  ;;  %1293 = vmatprep.subr.bf16.mxu1 %v2262_v3  ;;  %v2267_v6 = vld [vmem:[%s3294_s9 + $0x20] ss:$16 sps:$4 sm:$0xff]   ;;  %v2268_v7 = vld [vmem:[%s3294_s9 + $0x44] ss:$16 sps:$4 sm:$0xff]   ;;  %v2523_v19 = vshrl.u32 %v87_v15, 7  ;;  %s60_s29 = sld [smem:[#allocation6]] }
  0x12   :  { %84 = vperm.xlu0 %2258, %v81_v2   ;;  %1120 = vmatpush1.bf16.msra.mxu0 %v2264_v4  ;;  %v2270_v8 = vld [vmem:[%s3294_s9 + $0x40] ss:$16 sps:$4 sm:$0xff]   ;;  %v2271_v9 = vld [vmem:[%s3294_s9 + $0x64] ss:$16 sps:$4 sm:$0xff]   ;;  %v2533_v21 = vld [vmem:[%s3288_s3 + $0x8] sm:$0xf] }
  0x13   :  { %1294 = vmatpush1.bf16.msra.mxu1 %v2264_v4  ;;  %1121 = vmatprep.subr.bf16.mxu0 %v2265_v5  ;;  %v2273_v10 = vld [vmem:[%s3294_s9 + $0x60] ss:$16 sps:$4 sm:$0xff]   ;;  %v2274_v11 = vld [vmem:[%s3294_s9 + $0x84] ss:$16 sps:$4 sm:$0xff]   ;;  %v2536_v22 = vsub.s32 3, %v2523_v19  ;;  %v2598_v45 = vsub.s32 2, %v2523_v19 }
  0x14   :  { %1295 = vmatprep.subr.bf16.mxu1 %v2265_v5  ;;  %v2276_v12 = vld [vmem:[%s3294_s9 + $0x80] ss:$16 sps:$4 sm:$0xff]   ;;  %v2277_v13 = vld [vmem:[%s3294_s9 + $0xa4] ss:$16 sps:$4 sm:$0xff]   ;;  %v2312_v51 = vld [vmem:[%s3294_s9 + $0xc] ss:$16 sps:$4 sm:$0xff]  }
  0x15   :  { %v2279_v14 = vld [vmem:[%s3294_s9 + $0xa0] ss:$16 sps:$4 sm:$0xff]   ;;  %v2280_v16 = vld [vmem:[%s3294_s9 + $0xc4] ss:$16 sps:$4 sm:$0xff]   ;;  %v75_v17 = vstv %s2118_s14  ;;  %s2673_s14 = sld [smem:[#allocation6 + $0x1]]  ;;  %s2397_s0 = smov 15  }
  0x16   :  { %1122 = vmatpush1.bf16.msra.mxu0 %v2267_v6  ;;  %v2282_v18 = vld [vmem:[%s3294_s9 + $0xc0] ss:$16 sps:$4 sm:$0xff]   ;;  %v77_v24 = vmul.f32 %v75_v17, %v2533_v21  ;;  %v2283_v25 = vld [vmem:[%s3294_s9 + $0xe4] ss:$16 sps:$4 sm:$0xff]   ;;  %s70_s15 = smul.f32 0.001, %s2117_s24 }
  0x17   :  { %1296 = vmatpush1.bf16.msra.mxu1 %v2267_v6  ;;  %1123 = vmatprep.subr.bf16.mxu0 %v2268_v7  ;;  %v2528_v20 = vld [vmem:[%s3288_s3] sm:$0xf]  ;;  %v2286_v29 = vld [vmem:[%s3294_s9 + $0x104] ss:$16 sps:$4 sm:$0xff]   ;;  %s61_s30 = smul.f32 0.001, %s60_s29 }
  0x18   :  { %1297 = vmatprep.subr.bf16.mxu1 %v2268_v7  ;;  %v76_v23 = vmul.f32 %v75_v17, %v2528_v20  ;;  %v2285_v26 = vld [vmem:[%s3294_s9 + $0xe0] ss:$16 sps:$4 sm:$0xff]   ;;  %v2550_v28 = vrot.slane %v77_v24, %v2536_v22  ;;  %v2289_v31 = vld [vmem:[%s3294_s9 + $0x124] ss:$16 sps:$4 sm:$0xff]   ;;  %v71_v41 = vstv %s70_s15  ;;  %v2391_v24 = vmov 2102212464  }
  0x19   :  { %v2288_v30 = vld [vmem:[%s3294_s9 + $0x100] ss:$16 sps:$4 sm:$0xff]   ;;  %v2292_v33 = vld [vmem:[%s3294_s9 + $0x144] ss:$16 sps:$4 sm:$0xff]   ;;  %v72_v46 = vmul.f32 %v71_v41, %v2528_v20  ;;  %v73_v47 = vmul.f32 %v71_v41, %v2533_v21  ;;  %s2398_s15 = smov 1   ;;  %s2399_s16 = smov 127  }
  0x1a   :  { %1124 = vmatpush1.bf16.msra.mxu0 %v2270_v8  ;;  %v2547_v27 = vrot.slane %v76_v23, %v2536_v22  ;;  %v2291_v32 = vld [vmem:[%s3294_s9 + $0x120] ss:$16 sps:$4 sm:$0xff]   ;;  %v2295_v35 = vld [vmem:[%s3294_s9 + $0x164] ss:$16 sps:$4 sm:$0xff]   ;;  %s2400_s17 = smov 113  }
  0x1b   :  { %1298 = vmatpush1.bf16.msra.mxu1 %v2270_v8  ;;  %1125 = vmatprep.subr.bf16.mxu0 %v2271_v9  ;;  %v2294_v34 = vld [vmem:[%s3294_s9 + $0x140] ss:$16 sps:$4 sm:$0xff]   ;;  %v2298_v37 = vld [vmem:[%s3294_s9 + $0x184] ss:$16 sps:$4 sm:$0xff]   ;;  %v104_v49 = vrot.slane %v72_v46, %v2598_v45  ;;  %v108_v50 = vrot.slane %v73_v47, %v2598_v45 }
  0x1c   :  { %1299 = vmatprep.subr.bf16.mxu1 %v2271_v9  ;;  %v2297_v36 = vld [vmem:[%s3294_s9 + $0x160] ss:$16 sps:$4 sm:$0xff]   ;;  %v2301_v39 = vld [vmem:[%s3294_s9 + $0x1a4] ss:$16 sps:$4 sm:$0xff]  }
  0x1d   :  { %v2300_v38 = vld [vmem:[%s3294_s9 + $0x180] ss:$16 sps:$4 sm:$0xff]   ;;  %v2304_v42 = vld [vmem:[%s3294_s9 + $0x1c4] ss:$16 sps:$4 sm:$0xff]  }
  0x1e   :  { %1126 = vmatpush1.bf16.msra.mxu0 %v2273_v10  ;;  %v2303_v40 = vld [vmem:[%s3294_s9 + $0x1a0] ss:$16 sps:$4 sm:$0xff]   ;;  %v2307_v44 = vld [vmem:[%s3294_s9 + $0x1e4] ss:$16 sps:$4 sm:$0xff]  }
  0x1f   :  { %1300 = vmatpush1.bf16.msra.mxu1 %v2273_v10  ;;  %1127 = vmatprep.subr.bf16.mxu0 %v2274_v11  ;;  %v2306_v43 = vld [vmem:[%s3294_s9 + $0x1c0] ss:$16 sps:$4 sm:$0xff]  }
  0x20   :  { %1301 = vmatprep.subr.bf16.mxu1 %v2274_v11  ;;  %v2309_v48 = vld [vmem:[%s3294_s9 + $0x1e0] ss:$16 sps:$4 sm:$0xff]   ;;  %v2388_v11 = vmov 683565275  }
  0x22   :  { %1128 = vmatpush1.bf16.msra.mxu0 %v2276_v12 }
  0x23   :  { %1302 = vmatpush1.bf16.msra.mxu1 %v2276_v12  ;;  %1129 = vmatprep.subr.bf16.mxu0 %v2277_v13 }
  0x24   :  { %1303 = vmatprep.subr.bf16.mxu1 %v2277_v13 }
  0x26   :  { %1130 = vmatpush1.bf16.msra.mxu0 %v2279_v14 }
  0x27   :  { %1304 = vmatpush1.bf16.msra.mxu1 %v2279_v14  ;;  %1131 = vmatprep.subr.bf16.mxu0 %v2280_v16 }
  0x28   :  { %1305 = vmatprep.subr.bf16.mxu1 %v2280_v16  ;;  %v2389_v16 = vmov 2475754826  }
  0x2a   :  { %1132 = vmatpush1.bf16.msra.mxu0 %v2282_v18 }
  0x2b   :  { %1306 = vmatpush1.bf16.msra.mxu1 %v2282_v18  ;;  %1133 = vmatprep.subr.bf16.mxu0 %v2283_v25  ;;  %v2390_v18 = vmov 2131351028  }
  0x2c   :  { %1307 = vmatprep.subr.bf16.mxu1 %v2283_v25 }
  0x2e   :  { %1134 = vmatpush1.bf16.msra.mxu0 %v2285_v26 }
  0x2f   :  { %1308 = vmatpush1.bf16.msra.mxu1 %v2285_v26  ;;  %1135 = vmatprep.subr.bf16.mxu0 %v2286_v29  ;;  %v2392_v26 = vmov 920167782  }
  0x30   :  { %1309 = vmatprep.subr.bf16.mxu1 %v2286_v29 }
  0x32   :  { %1136 = vmatpush1.bf16.msra.mxu0 %v2288_v30 }
  0x33   :  { %1310 = vmatpush1.bf16.msra.mxu1 %v2288_v30  ;;  %1137 = vmatprep.subr.bf16.mxu0 %v2289_v31 }
  0x34   :  { %1311 = vmatprep.subr.bf16.mxu1 %v2289_v31 }
  0x36   :  { %1138 = vmatpush1.bf16.msra.mxu0 %v2291_v32 }
  0x37   :  { %1312 = vmatpush1.bf16.msra.mxu1 %v2291_v32  ;;  %1139 = vmatprep.subr.bf16.mxu0 %v2292_v33 }
  0x38   :  { %1313 = vmatprep.subr.bf16.mxu1 %v2292_v33 }
  0x3a   :  { %1140 = vmatpush1.bf16.msra.mxu0 %v2294_v34 }
  0x3b   :  { %1314 = vmatpush1.bf16.msra.mxu1 %v2294_v34  ;;  %1141 = vmatprep.subr.bf16.mxu0 %v2295_v35 }
  0x3c   :  { %1315 = vmatprep.subr.bf16.mxu1 %v2295_v35  ;;  %v2393_v35 = vmov 1326507024  }
  0x3e   :  { %1142 = vmatpush1.bf16.msra.mxu0 %v2297_v36 }
  0x3f   :  { %1316 = vmatpush1.bf16.msra.mxu1 %v2297_v36  ;;  %1143 = vmatprep.subr.bf16.mxu0 %v2298_v37 }
  0x40   :  { %1317 = vmatprep.subr.bf16.mxu1 %v2298_v37 }
  0x42   :  { %1144 = vmatpush1.bf16.msra.mxu0 %v2300_v38 }
  0x43   :  { %1318 = vmatpush1.bf16.msra.mxu1 %v2300_v38  ;;  %1145 = vmatprep.subr.bf16.mxu0 %v2301_v39 }
  0x44   :  { %1319 = vmatprep.subr.bf16.mxu1 %v2301_v39 }
  0x46   :  { %1146 = vmatpush1.bf16.msra.mxu0 %v2303_v40 }
  0x47   :  { %1320 = vmatpush1.bf16.msra.mxu1 %v2303_v40  ;;  %1147 = vmatprep.subr.bf16.mxu0 %v2304_v42 }
  0x48   :  { %1321 = vmatprep.subr.bf16.mxu1 %v2304_v42 }
  0x4a   :  { %1148 = vmatpush1.bf16.msra.mxu0 %v2306_v43 }
  0x4b   :  { %1322 = vmatpush1.bf16.msra.mxu1 %v2306_v43  ;;  %1149 = vmatprep.subr.bf16.mxu0 %v2307_v44 }
  0x4c   :  { %1323 = vmatprep.subr.bf16.mxu1 %v2307_v44 }
  0x4e   :  { %1150 = vmatpush1.bf16.msra.mxu0 %v2309_v48 }
  0x4f   :  { %1324 = vmatpush1.bf16.msra.mxu1 %v2309_v48  ;;  %1172 = vmatprep.subr.bf16.mxu0 %v2312_v51 }
  0x50   :  { %1346 = vmatprep.subr.bf16.mxu1 %v2312_v51 }
  0x91   :  { %v2610_v52 = vpop.permute.xlu0 %84 }
  0x92   :  { %v2613_v53 = vmul.f32 %v104_v49, %v2610_v52  ;;  %v2616_v54 = vmul.f32 %v108_v50, %v2610_v52 }
  0x94   :  { %v111_v55 = vand.u32 2147483647, %v2613_v53  ;;  %v114_v56 = vand.u32 2139095040, %v2613_v53  ;;  %v217_v57 = vand.u32 2139095040, %v2616_v54  ;;  %v214_v60 = vand.u32 2147483647, %v2616_v54 }
  0x95   :  { %vm113_vm14 = vcmp.lt.s32.totalorder %v2613_v53, 0 }
  0x96   :  { %v115_v58 = vshrl.u32 %v114_v56, 23  ;;  %v118_v59 = vand.u32 8388607, %v111_v55  ;;  %v218_v61 = vshrl.u32 %v217_v57, 23  ;;  %v2626_v2 = vand.u32 8388607, %v214_v60 }
  0x97   :  { %vm112_vm15 = vcmp.le.f32.partialorder %v111_v55, 0.7853982 }
  0x98   :  { %v2119_v62 = vadd.s32 4294967169, %v115_v58  ;;  %v2123_v63 = vadd.s32 4294967169, %v218_v61  ;;  %v119_v1 = vor.u32 8388608, %v118_v59  ;;  %v222_v9 = vor.u32 8388608, %v2626_v2 }
  0x9a   :  { %v121_v0 = vadd.s32 1, %v2119_v62  ;;  %v224_v3 = vadd.s32 1, %v2123_v63  ;;  %v2628_v8 = vshll.u32 %v119_v1, 8 }
  0x9c   :  { %vm122_vm0 = vcmp.gt.s32.totalorder %v121_v0, 0  ;;  %vm225_vm1 = vcmp.gt.s32.totalorder %v224_v3, 0 }
  0x9d   :  { %v123_v4 = vsel %vm122_vm0, %v121_v0, 0  ;;  %v226_v7 = vsel %vm225_vm1, %v224_v3, 0  ;;  %vm216_vm0 = vcmp.lt.s32.totalorder %v2616_v54, 0  ;;  %vm215_vm1 = vcmp.le.f32.partialorder %v214_v60, 0.7853982 }
  0x9e   :  { %v124_v5 = vshrl.u32 %v123_v4, 5  ;;  %v125_v6 = vand.u32 31, %v123_v4  ;;  %v2631_v13 = vshrl.u32 %v226_v7, 5  ;;  %v228_v14 = vand.u32 31, %v226_v7 }
  0xa0   :  { %v126_v10 = vsub.s32 32, %v125_v6  ;;  %v128_v12 = vshll.u32 %v2388_v11, %v125_v6  ;;  %v131_v17 = vshll.u32 %v2389_v16, %v125_v6  ;;  %v134_v23 = vshll.u32 %v2390_v18, %v125_v6 }
  0xa1   :  { %v137_v25 = vshll.u32 %v2391_v24, %v125_v6  ;;  %v140_v29 = vshll.u32 %v2392_v26, %v125_v6  ;;  %vm143_vm2 = vcmp.lt.s32.totalorder %v124_v5, 1  ;;  %vm144_vm3 = vcmp.lt.s32.totalorder %v124_v5, 2 }
  0xa2   :  { %v129_v30 = vshrl.u32 %v2389_v16, %v126_v10  ;;  %v132_v31 = vshrl.u32 %v2390_v18, %v126_v10  ;;  %v135_v32 = vshrl.u32 %v2391_v24, %v126_v10  ;;  %v127_v33 = vshrl.u32 %v2388_v11, %v126_v10 }
  0xa3   :  { %v138_v34 = vshrl.u32 %v2392_v26, %v126_v10  ;;  %v141_v36 = vshrl.u32 %v2393_v35, %v126_v10  ;;  %v229_v40 = vsub.s32 32, %v228_v14  ;;  %vm145_vm4 = vcmp.lt.s32.totalorder %v124_v5, 3 }
  0xa4   :  { %v130_v37 = vor.u32 %v129_v30, %v128_v12  ;;  %v133_v38 = vor.u32 %v132_v31, %v131_v17  ;;  %v136_v39 = vor.u32 %v135_v32, %v134_v23  ;;  %vm146_vm5 = vcmp.lt.s32.totalorder %v124_v5, 4 }
  0xa5   :  { %v139_v41 = vor.u32 %v138_v34, %v137_v25  ;;  %v142_v42 = vor.u32 %v141_v36, %v140_v29  ;;  %v231_v51 = vshll.u32 %v2388_v11, %v228_v14  ;;  %v232_v58 = vshrl.u32 %v2389_v16, %v229_v40 }
  0xa6   :  { %v147_v43 = vsel %vm143_vm2, %v127_v33, %v130_v37  ;;  %v148_v44 = vsel %vm146_vm5, %v136_v39, 2102212464  ;;  %v151_v46 = vsel %vm143_vm2, %v130_v37, %v133_v38  ;;  %v155_v47 = vsel %vm143_vm2, %v133_v38, %v136_v39 }
  0xa7   :  { %v149_v48 = vsel %vm145_vm4, %v133_v38, %v148_v44  ;;  %v152_v49 = vsel %vm146_vm5, %v139_v41, 920167782  ;;  %v156_v50 = vsel %vm146_vm5, %v142_v42, 1326507024  ;;  %v234_v59 = vshll.u32 %v2389_v16, %v228_v14 }
  0xa8   :  { %v153_v56 = vsel %vm145_vm4, %v136_v39, %v152_v49  ;;  %v157_v57 = vsel %vm145_vm4, %v139_v41, %v156_v50  ;;  %v150_v61 = vsel %vm144_vm3, %v147_v43, %v149_v48  ;;  %v235_v0 = vshrl.u32 %v2390_v18, %v229_v40 }
  0xa9   :  { %v154_v62 = vsel %vm144_vm3, %v151_v46, %v153_v56  ;;  %v158_v63 = vsel %vm144_vm3, %v155_v47, %v157_v57  ;;  %v233_v6 = vor.u32 %v232_v58, %v231_v51  ;;  %v237_v10 = vshll.u32 %v2390_v18, %v228_v14 }
  0xaa   :  { %v2640_v1 = vmul.u32.u64.low %v2628_v8, %v158_v63  ;;  %v2641_v2 = vmul.u32.u64.high %v2628_v8, %v158_v63, %v2640_v1  ;;  %v2644_v3 = vmul.u32.u64.low %v2628_v8, %v154_v62  ;;  %v2645_v4 = vmul.u32.u64.high %v2628_v8, %v154_v62, %v2644_v3 }
  0xab   :  { %v236_v7 = vor.u32 %v235_v0, %v234_v59  ;;  %v238_v12 = vshrl.u32 %v2391_v24, %v229_v40  ;;  %v240_v16 = vshll.u32 %v2391_v24, %v228_v14  ;;  %v241_v17 = vshrl.u32 %v2392_v26, %v229_v40 }
  0xac   :  { %v244_v23 = vshrl.u32 %v2393_v35, %v229_v40  ;;  %v262_v25 = vshll.u32 %v222_v9, 8  ;;  %v166_v5 = vmul.u32 %v2628_v8, %v150_v61  ;;  %v230_v29 = vshrl.u32 %v2388_v11, %v229_v40 }
  0xad   :  { %v239_v30 = vor.u32 %v238_v12, %v237_v10  ;;  %v243_v31 = vshll.u32 %v2392_v26, %v228_v14  ;;  %vm168_vm6 = vc.u32 %v2641_v2, %v2644_v3  ;;  %v169_v32 = vadd.s32 1, %v2645_v4 }
  0xae   :  { %v242_v33 = vor.u32 %v241_v17, %v240_v16  ;;  %vm246_vm7 = vcmp.lt.s32.totalorder %v2631_v13, 1  ;;  %vm248_vm8 = vcmp.lt.s32.totalorder %v2631_v13, 3  ;;  %vm249_vm9 = vcmp.lt.s32.totalorder %v2631_v13, 4 }
  0xaf   :  { %v245_v34 = vor.u32 %v244_v23, %v243_v31  ;;  %v254_v18 = vsel %vm246_vm7, %v233_v6, %v236_v7  ;;  %v170_v9 = vsel %vm168_vm6, %v169_v32, %v2645_v4  ;;  %v251_v24 = vsel %vm249_vm9, %v239_v30, 2102212464 }
  0xb0   :  { %v255_v8 = vsel %vm249_vm9, %v242_v33, 920167782  ;;  %v258_v11 = vsel %vm246_vm7, %v236_v7, %v239_v30  ;;  %v171_v35 = vadd.s32 %v170_v9, %v166_v5  ;;  %vm247_vm10 = vcmp.lt.s32.totalorder %v2631_v13, 2 }
  0xb1   :  { %v256_v14 = vsel %vm248_vm8, %v239_v30, %v255_v8  ;;  %v259_v26 = vsel %vm249_vm9, %v245_v34, 1326507024  ;;  %v250_v36 = vsel %vm246_vm7, %v230_v29, %v233_v6  ;;  %v252_v37 = vsel %vm248_vm8, %v236_v7, %v251_v24 }
  0xb2   :  { %v257_v38 = vsel %vm247_vm10, %v254_v18, %v256_v14  ;;  %v260_v39 = vsel %vm248_vm8, %v242_v33, %v259_v26  ;;  %v172_v40 = vadd.s32 536870912, %v171_v35  ;;  %v253_v48 = vsel %vm247_vm10, %v250_v36, %v252_v37 }
  0xb3   :  { %v261_v41 = vsel %vm247_vm10, %v258_v11, %v260_v39  ;;  %v2655_v42 = vmul.u32.u64.low %v262_v25, %v257_v38  ;;  %v2656_v43 = vmul.u32.u64.high %v262_v25, %v257_v38, %v2655_v42  ;;  %v269_v13 = vmul.u32 %v262_v25, %v253_v48 }
  0xb4   :  { %v2658_v44 = vmul.u32.u64.low %v262_v25, %v261_v41  ;;  %v2659_v46 = vmul.u32.u64.high %v262_v25, %v261_v41, %v2658_v44  ;;  %v173_v47 = vshrl.u32 %v172_v40, 30  ;;  %v167_v10 = vadd.s32 %v2644_v3, %v2641_v2 }
  0xb5   :  { %v272_v50 = vadd.s32 1, %v2656_v43  ;;  %v62_v32 = vstv %s61_s30  ;;  %v2669_v18 = vsub.s32 0, %v2523_v19  ;;  %vm203_vm8 = vweird.f32 %v2613_v53 }
  0xb6   :  { %v174_v49 = vshll.u32 %v173_v47, 30  ;;  %vm271_vm11 = vc.u32 %v2659_v46, %v2655_v42  ;;  %v63_v9 = vmul.f32 %v62_v32, %v2528_v20  ;;  %v270_v8 = vadd.s32 %v2655_v42, %v2659_v46 }
  0xb7   :  { %v273_v56 = vsel %vm271_vm11, %v272_v50, %v2656_v43  ;;  %v197_v26 = vsub.s32 4, %v173_v47  ;;  %vm306_vm9 = vweird.f32 %v2616_v54 }
  0xb8   :  { %v175_v51 = vsub.s32 %v171_v35, %v174_v49  ;;  %v274_v57 = vadd.s32 %v273_v56, %v269_v13  ;;  %v90_v39 = vrot.slane %v63_v9, %v2669_v18 }
  0xb9   :  { %v198_v44 = vsel %vm113_vm14, %v197_v26, %v173_v47 }
  0xba   :  { %v177_v58 = vsub.s32 0, %v175_v51  ;;  %v275_v59 = vadd.s32 536870912, %v274_v57  ;;  %v95_v49 = vmul.f32 %v90_v39, %v2610_v52  ;;  %v200_v50 = vsel %vm112_vm15, 0, %v198_v44 }
  0xbb   :  { %v410_v55 = vadd.s32 3, %v200_v50 }
  0xbc   :  { %v2120_v61 = vmin.u32 %v177_v58, %v175_v51  ;;  %v2664_v62 = vshrl.u32 %v275_v59, 30  ;;  %v66_v59 = vstv %s2673_s14  ;;  %s2396_s14 = smov 16  }
  0xbe   :  { %v179_v63 = vclz %v2120_v61  ;;  %v277_v0 = vshll.u32 %v2664_v62, 30  ;;  %v300_v56 = vsub.s32 4, %v2664_v62  ;;  %v97_v61 = vmul.f32 1.442695, %v95_v49 }
  0xc0   :  { %v2121_v1 = vadd.s32 4294967294, %v179_v63  ;;  %v278_v4 = vsub.s32 %v274_v57, %v277_v0  ;;  %v64_v57 = vmul.f32 %v62_v32, %v2533_v21  ;;  %v2686_v63 = vsub.s32 1, %v2523_v19 }
  0xc1   :  { %v301_v0 = vsel %vm216_vm0, %v300_v56, %v2664_v62  ;;  %v68_v62 = vmul.f32 %v66_v59, %v2533_v21  ;;  %v2700_v21 = vld [vmem:[%s3289_s4] sm:$0xff]  ;;  %s2402_s4 = smov 112  }
  0xc2   :  { %vm2122_vm12 = vcmp.lt.s32.totalorder %v2121_v1, 0  ;;  %v280_v7 = vsub.s32 0, %v278_v4  ;;  %v2713_v39 = vcombine.high %v2700_v21, %v2700_v21 }
  0xc3   :  { %v182_v6 = vsel %vm2122_vm12, 0, %v2121_v1  ;;  %v67_v1 = vmul.f32 %v66_v59, %v2528_v20 }
  0xc4   :  { %v183_v12 = vsub.s32 32, %v182_v6  ;;  %v187_v16 = vsub.s32 4294967266, %v182_v6  ;;  %v2124_v17 = vmin.u32 %v280_v7, %v278_v4  ;;  %v184_v23 = vshll.u32 %v175_v51, %v182_v6 }
  0xc5   :  { %v204_v7 = vand.u32 3, %v200_v50 }
  0xc6   :  { %v185_v25 = vshrl.u32 %v167_v10, %v183_v12  ;;  %v188_v5 = vadd.s32 127, %v187_v16  ;;  %v282_v29 = vclz %v2124_v17  ;;  %v411_v12 = vand.u32 3, %v410_v55 }
  0xc7   :  { %v303_v16 = vsel %vm215_vm1, 0, %v301_v0  ;;  %vm209_vm2 = vcmp.eq.s32.totalorder %v204_v7, 2  ;;  %vm206_vm4 = vcmp.eq.s32.totalorder %v204_v7, 0  ;;  %vm205_vm6 = vcmp.lt.s32.totalorder %v204_v7, 2 }
  0xc8   :  { %v186_v30 = vor.u32 %v185_v25, %v184_v23  ;;  %v189_v31 = vshll.u32 %v188_v5, 23  ;;  %v2125_v33 = vadd.s32 4294967294, %v282_v29  ;;  %v528_v5 = vrot.slane %v67_v1, %v2686_v63 }
  0xc9   :  { %vm416_vm3 = vcmp.eq.s32.totalorder %v411_v12, 2  ;;  %v514_v60 = vadd.s32 3, %v303_v16  ;;  %vm413_vm5 = vcmp.eq.s32.totalorder %v411_v12, 0  ;;  %vm412_vm7 = vcmp.lt.s32.totalorder %v411_v12, 2 }
  0xca   :  { %v190_v34 = vor.u32 4788187, %v189_v31  ;;  %vm2126_vm13 = vcmp.lt.s32.totalorder %v2125_v33, 0  ;;  %v193_v3 = vcvt.s32.f32 %v186_v30 }
  0xcb   :  { %v285_v24 = vsel %vm2126_vm13, 0, %v2125_v33 }
  0xcc   :  { %v191_v2 = vand.u32 2147483647, %v190_v34  ;;  %v286_v11 = vsub.s32 32, %v285_v24  ;;  %v290_v35 = vsub.s32 4294967266, %v285_v24  ;;  %v287_v36 = vshll.u32 %v278_v4, %v285_v24 }
  0xcd   :  { %v94_v4 = vrot.slane %v64_v57, %v2669_v18  ;;  %v307_v24 = vand.u32 3, %v303_v16 }
  0xce   :  { %v194_v14 = vmul.f32 %v193_v3, %v191_v2  ;;  %v288_v37 = vshrl.u32 %v270_v8, %v286_v11  ;;  %v291_v38 = vadd.s32 127, %v290_v35  ;;  %v515_v11 = vand.u32 3, %v514_v60 }
  0xcf   :  { %v96_v20 = vmul.f32 %v94_v4, %v2610_v52  ;;  %v2705_v52 = vld [vmem:[%s3290_s5] sm:$0xff]  ;;  %vm308_vm10 = vcmp.lt.s32.totalorder %v307_v24, 2  ;;  %vm309_vm11 = vcmp.eq.s32.totalorder %v307_v24, 0  ;;  %vm312_vm12 = vcmp.eq.s32.totalorder %v307_v24, 2  ;;  %s1235_s5 = smul.f32 0.00390625, %s3286_s1 }
  0xd0   :  { %v195_v40 = vxor.u32 2147483648, %v194_v14  ;;  %v289_v41 = vor.u32 %v288_v37, %v287_v36  ;;  %v292_v43 = vshll.u32 %v291_v38, 23  ;;  %v532_v38 = vrot.slane %v68_v62, %v2686_v63 }
  0xd1   :  { %v99_v34 = vmul.f32 1.442695, %v96_v20  ;;  %vm520_vm13 = vcmp.eq.s32.totalorder %v515_v11, 2 }
  0xd2   :  { %v196_v42 = vsel %vm113_vm14, %v195_v40, %v194_v14  ;;  %v293_v48 = vor.u32 4788187, %v292_v43  ;;  %v296_v51 = vcvt.s32.f32 %v289_v41  ;;  %vm516_vm14 = vcmp.lt.s32.totalorder %v515_v11, 2 }
  0xd3   :  { %v199_v46 = vsel %vm112_vm15, %v2613_v53, %v196_v42  ;;  %v2717_v53 = vcombine.high %v2705_v52, %v2705_v52  ;;  %vm517_vm15 = vcmp.eq.s32.totalorder %v515_v11, 0 }
  0xd4   :  { %2360 = vcosq.f32 %v199_v46  ;;  %v294_v13 = vand.u32 2147483647, %v293_v48 }
  0xd5   :  { %2362 = vsinq.f32 %v199_v46 }
  0xd6   :  { %v297_v58 = vmul.f32 %v296_v51, %v294_v13  ;;  %2364 = vpow2.f32 %v97_v61 }
  0xd8   :  { %v298_v47 = vxor.u32 2147483648, %v297_v58 }
  0xda   :  { %v299_v6 = vsel %vm216_vm0, %v298_v47, %v297_v58 }
  0xdb   :  { %v302_v10 = vsel %vm215_vm1, %v2616_v54, %v299_v6 }
  0xdc   :  { %2366 = vcosq.f32 %v302_v10 }
  0xdd   :  { %2368 = vsinq.f32 %v302_v10 }
  0xde   :  { %v2361_v17 = vpop.eup %2360  ;;  %2370 = vpow2.f32 %v99_v34 }
  0xdf   :  { %v2363_v23 = vpop.eup %2362  ;;  %v210_v25 = vxor.u32 2147483648, %v2361_v17 }
  0xe0   :  { %v207_v29 = vxor.u32 2147483648, %v2363_v23  ;;  %v2365_v37 = vpop.eup %2364 }
  0xe1   :  { %v211_v30 = vsel %vm209_vm2, %v210_v25, %v2363_v23  ;;  %v418_v31 = vsel %vm416_vm3, %v210_v25, %v2363_v23 }
  0xe2   :  { %v208_v32 = vsel %vm206_vm4, %v2361_v17, %v207_v29  ;;  %v415_v33 = vsel %vm413_vm5, %v2361_v17, %v207_v29  ;;  %vm1413_vm4 = vcmask 1043456   ;;  %vm3110_vm5 = vcmp.lt.s32.totalorder %v87_v15, 256 }
  0xe3   :  { %v212_v9 = vsel %vm205_vm6, %v208_v32, %v211_v30  ;;  %v419_v2 = vsel %vm412_vm7, %v415_v33, %v418_v31 }
  0xe4   :  { %v213_v3 = vsel %vm203_vm8, nan, %v212_v9  ;;  %v420_v8 = vsel %vm203_vm8, nan, %v419_v2 }
  0xe5   :  { %v533_v35 = vmul.f32 %v528_v5, %v213_v3  ;;  %v543_v14 = vmul.f32 %v2547_v27, %v420_v8  ;;  %v549_v26 = vmul.f32 %v528_v5, %v420_v8  ;;  %v551_v36 = vmul.f32 %v2547_v27, %v213_v3 }
  0xe6   :  { %v2367_v40 = vpop.eup %2366 }
  0xe7   :  { %v545_v41 = vsub.f32 %v533_v35, %v543_v14  ;;  %v553_v43 = vadd.f32 %v551_v36, %v549_v26  ;;  %v2369_v42 = vpop.eup %2368  ;;  %v313_v27 = vxor.u32 2147483648, %v2367_v40 }
  0xe8   :  { %v310_v44 = vxor.u32 2147483648, %v2369_v42  ;;  %v2371_v25 = vpop.eup %2370 }
  0xe9   :  { %v547_v46 = vmul.f32 %v2365_v37, %v545_v41  ;;  %v555_v48 = vmul.f32 %v2365_v37, %v553_v43  ;;  %v314_v49 = vsel %vm312_vm12, %v313_v27, %v2369_v42  ;;  %v522_v50 = vsel %vm520_vm13, %v313_v27, %v2369_v42 }
  0xea   :  { %v311_v13 = vsel %vm309_vm11, %v2367_v40, %v310_v44  ;;  %v519_v51 = vsel %vm517_vm15, %v2367_v40, %v310_v44 }
  0xeb   :  { %vm557_vm0 = vcmp.ne.f32.partialorder %v547_v46, %v547_v46  ;;  %vm561_vm1 = vcmp.ne.f32.partialorder %v555_v48, %v555_v48  ;;  %v315_v56 = vsel %vm308_vm10, %v311_v13, %v314_v49  ;;  %v523_v57 = vsel %vm516_vm14, %v519_v51, %v522_v50 }
  0xec   :  { %v2721_v58 = vsel %vm557_vm0, 0.0, %v547_v46  ;;  %v2723_v59 = vsel %vm561_vm1, 0.0, %v555_v48  ;;  %v316_v61 = vsel %vm306_vm9, nan, %v315_v56  ;;  %v524_v55 = vsel %vm306_vm9, nan, %v523_v57 }
  0xed   :  { %v568_v47 = vrot.slane %v2721_v58, %v2669_v18  ;;  %v581_v0 = vrot.slane %v2723_v59, %v2669_v18  ;;  %v534_v1 = vmul.f32 %v532_v38, %v316_v61  ;;  %v544_v4 = vmul.f32 %v2550_v28, %v524_v55 }
  0xee   :  { %v550_v6 = vmul.f32 %v532_v38, %v524_v55  ;;  %v552_v7 = vmul.f32 %v2550_v28, %v316_v61  ;;  %v606_v62 = vrot.slane %v2721_v58, %v2686_v63  ;;  %v616_v20 = vrot.slane %v2723_v59, %v2686_v63 }
  0xef   :  { %v576_v10 = vmul.f32 %v568_v47, %v2700_v21  ;;  %v589_v12 = vmul.f32 %v581_v0, %v2705_v52  ;;  %v595_v16 = vmul.f32 %v568_v47, %v2705_v52  ;;  %v597_v54 = vmul.f32 %v581_v0, %v2700_v21 }
  0xf0   :  { %v546_v17 = vsub.f32 %v534_v1, %v544_v4  ;;  %v554_v23 = vadd.f32 %v552_v7, %v550_v6  ;;  %v650_v28 = vrot.slane %v2721_v58, %v2598_v45  ;;  %v660_v60 = vrot.slane %v2723_v59, %v2598_v45 }
  0xf1   :  { %v591_v5 = vsub.f32 %v576_v10, %v589_v12  ;;  %v599_v29 = vadd.f32 %v597_v54, %v595_v16  ;;  %v611_v32 = vmul.f32 %v606_v62, %v2700_v21  ;;  %v621_v33 = vmul.f32 %v616_v20, %v2705_v52 }
  0xf2   :  { %v548_v30 = vmul.f32 %v2371_v25, %v546_v17  ;;  %v556_v31 = vmul.f32 %v2371_v25, %v554_v23  ;;  %v633_v34 = vmul.f32 %v606_v62, %v2705_v52  ;;  %v635_v9 = vmul.f32 %v616_v20, %v2700_v21 }
  0xf3   :  { %593 = vst [vmem:[#allocation2] sm:$0xf] %v591_v5  ;;  %601 = vst [vmem:[#allocation2 + $0x20] sm:$0xf] %v599_v29  ;;  %v655_v2 = vmul.f32 %v650_v28, %v2700_v21  ;;  %v665_v3 = vmul.f32 %v660_v60, %v2705_v52  ;;  %v623_v24 = vsub.f32 %v611_v32, %v621_v33  ;;  %vm1989_vm14 = vcmask 588800  }
  0xf4   :  { %vm558_vm2 = vcmp.ne.f32.partialorder %v548_v30, %v548_v30  ;;  %vm562_vm3 = vcmp.ne.f32.partialorder %v556_v31, %v556_v31  ;;  %v671_v8 = vmul.f32 %v650_v28, %v2705_v52  ;;  %v637_v14 = vadd.f32 %v635_v9, %v633_v34 }
  0xf5   :  { %v560_v11 = vsel %vm558_vm2, 0.0, %v548_v30  ;;  %v564_v35 = vsel %vm562_vm3, 0.0, %v556_v31  ;;  %v667_v26 = vsub.f32 %v655_v2, %v665_v3  ;;  %v627_v41 = vrot.slane %v623_v24, 4 }
  0xf6   :  { %v572_v36 = vrot.slane %v560_v11, %v2669_v18  ;;  %v585_v37 = vrot.slane %v564_v35, %v2669_v18  ;;  %v610_v38 = vrot.slane %v560_v11, %v2686_v63  ;;  %v620_v40 = vrot.slane %v564_v35, %v2686_v63 }
  0xf7   :  { %v641_v43 = vrot.slane %v637_v14, 4  ;;  %v654_v42 = vrot.slane %v560_v11, %v2598_v45  ;;  %v664_v27 = vrot.slane %v564_v35, %v2598_v45  ;;  %669 = vst [vmem:[#allocation2 + $0x10] sm:$0xf] %v667_v26  ;;  %631 = vst [vmem:[#allocation2] sm:$0xf0] %v627_v41  ;;  %v673_v4 = vmul.f32 %v660_v60, %v2700_v21 }
  0xf8   :  { %v577_v44 = vmul.f32 %v2713_v39, %v572_v36  ;;  %v590_v46 = vmul.f32 %v2717_v53, %v585_v37  ;;  %v596_v48 = vmul.f32 %v2717_v53, %v572_v36  ;;  %v598_v49 = vmul.f32 %v585_v37, %v2713_v39 }
  0xf9   :  { %v612_v50 = vmul.f32 %v610_v38, %v2713_v39  ;;  %v622_v13 = vmul.f32 %v620_v40, %v2717_v53  ;;  %v634_v51 = vmul.f32 %v610_v38, %v2717_v53  ;;  %v636_v56 = vmul.f32 %v620_v40, %v2713_v39  ;;  %645 = vst [vmem:[#allocation2 + $0x20] sm:$0xf0] %v641_v43  ;;  %v2792_v38 = vld [vmem:[%s3294_s9 + $0x8] ss:$16 sps:$4 sm:$0xff]   ;;  %v2797_v40 = vld [vmem:[%s3294_s9 + $0x2c] ss:$16 sps:$4 sm:$0xff]  }
  0xfa   :  { %v592_v45 = vsub.f32 %v577_v44, %v590_v46  ;;  %v600_v57 = vadd.f32 %v598_v49, %v596_v48  ;;  %v656_v61 = vmul.f32 %v654_v42, %v2713_v39  ;;  %v666_v55 = vmul.f32 %v664_v27, %v2717_v53  ;;  %v2807_v43 = vld [vmem:[%s3294_s9 + $0x28] ss:$16 sps:$4 sm:$0xff]   ;;  %v2825_v49 = vld [vmem:[%s3294_s9 + $0x6c] ss:$16 sps:$4 sm:$0xff]  }
  0xfb   :  { %v624_v47 = vsub.f32 %v612_v50, %v622_v13  ;;  %v638_v0 = vadd.f32 %v636_v56, %v634_v51  ;;  %v672_v1 = vmul.f32 %v654_v42, %v2717_v53  ;;  %v674_v7 = vmul.f32 %v664_v27, %v2713_v39  ;;  %v2813_v42 = vld [vmem:[%s3294_s9 + $0x4c] ss:$16 sps:$4 sm:$0xff]   ;;  %v2819_v46 = vld [vmem:[%s3294_s9 + $0x48] ss:$16 sps:$4 sm:$0xff]  }
  0xfc   :  { %594 = vst [vmem:[#allocation2 + $0x8] sm:$0xf] %v592_v45  ;;  %602 = vst [vmem:[#allocation2 + $0x28] sm:$0xf] %v600_v57  ;;  %v668_v6 = vsub.f32 %v656_v61, %v666_v55  ;;  %v682_v10 = vrot.slane %v2721_v58, %v2536_v22  ;;  %v686_v12 = vrot.slane %v560_v11, %v2536_v22  ;;  %v2831_v50 = vld [vmem:[%s3294_s9 + $0x68] ss:$16 sps:$4 sm:$0xff]  }
  0xfd   :  { %v628_v16 = vrot.slane %v624_v47, 4  ;;  %v642_v54 = vrot.slane %v638_v0, 4  ;;  %v675_v17 = vadd.f32 %v673_v4, %v671_v8  ;;  %v692_v23 = vrot.slane %v2723_v59, %v2536_v22  ;;  %v2837_v13 = vld [vmem:[%s3294_s9 + $0x8c] ss:$16 sps:$4 sm:$0xff]   ;;  %v2843_v51 = vld [vmem:[%s3294_s9 + $0x88] ss:$16 sps:$4 sm:$0xff]  }
  0xfe   :  { %670 = vst [vmem:[#allocation2 + $0x18] sm:$0xf] %v668_v6  ;;  %v676_v62 = vadd.f32 %v674_v7, %v672_v1  ;;  %v687_v20 = vmul.f32 %v682_v10, %v2700_v21  ;;  %v688_v25 = vmul.f32 %v686_v12, %v2713_v39  ;;  %v696_v5 = vrot.slane %v564_v35, %v2536_v22  ;;  %v787_v24 = vld [vmem:[#allocation2] sm:$0xff]  ;;  %v2849_v56 = vld [vmem:[%s3294_s9 + $0xac] ss:$16 sps:$4 sm:$0xff]  }
  0xff   :  { %632 = vst [vmem:[#allocation2 + $0x8] sm:$0xf0] %v628_v16  ;;  %646 = vst [vmem:[#allocation2 + $0x28] sm:$0xf0] %v642_v54  ;;  %v697_v58 = vmul.f32 %v692_v23, %v2705_v52  ;;  %v709_v29 = vmul.f32 %v682_v10, %v2705_v52  ;;  %v710_v28 = vmul.f32 %v686_v12, %v2717_v53  ;;  %v2855_v45 = vld [vmem:[%s3294_s9 + $0xa8] ss:$16 sps:$4 sm:$0xff]  }
 0x100   :  { %677 = vst [vmem:[#allocation2 + $0x30] sm:$0xf] %v675_v17  ;;  %v711_v60 = vmul.f32 %v692_v23, %v2700_v21  ;;  %678 = vst [vmem:[#allocation2 + $0x38] sm:$0xf] %v676_v62  ;;  %v698_v59 = vmul.f32 %v696_v5, %v2717_v53  ;;  %v712_v30 = vmul.f32 %v696_v5, %v2713_v39  ;;  %v791_v27 = vld [vmem:[#allocation2 + $0x20] sm:$0xff] }
 0x101   :  { %v699_v31 = vsub.f32 %v687_v20, %v697_v58  ;;  %v2861_v57 = vld [vmem:[%s3294_s9 + $0xcc] ss:$16 sps:$4 sm:$0xff]   ;;  %v2867_v61 = vld [vmem:[%s3294_s9 + $0xc8] ss:$16 sps:$4 sm:$0xff]  }
 0x102   :  { %v713_v32 = vadd.f32 %v711_v60, %v709_v29  ;;  %v700_v33 = vsub.f32 %v688_v25, %v698_v59  ;;  %v714_v22 = vadd.f32 %v712_v30, %v710_v28  ;;  %v2873_v55 = vld [vmem:[%s3294_s9 + $0xec] ss:$16 sps:$4 sm:$0xff]   ;;  %v2879_v47 = vld [vmem:[%s3294_s9 + $0xe8] ss:$16 sps:$4 sm:$0xff]   ;;  %v1233_v30 = vld [vmem:[%s3293_s8] sm:$0x3] }
 0x103   :  { %v703_v34 = vrot.slane %v699_v31, 4  ;;  %v2885_v0 = vld [vmem:[%s3294_s9 + $0x10c] ss:$16 sps:$4 sm:$0xff]   ;;  %v2891_v1 = vld [vmem:[%s3294_s9 + $0x108] ss:$16 sps:$4 sm:$0xff]   ;;  %v1236_v31 = vstv %s1235_s5  ;;  %s2403_s5 = smov 111  }
 0x104   :  { %v717_v9 = vrot.slane %v713_v32, 4  ;;  %v704_v2 = vrot.slane %v700_v33, 4  ;;  %v718_v3 = vrot.slane %v714_v22, 4  ;;  %v2897_v4 = vld [vmem:[%s3294_s9 + $0x12c] ss:$16 sps:$4 sm:$0xff]   ;;  %v1237_v32 = vmul.f32 %v1236_v31, %v1233_v30  ;;  %v1265_v33 = vld [vmem:[%s3292_s7] sm:$0xff] }
 0x105   :  { %707 = vst [vmem:[#allocation2 + $0x10] sm:$0xf0] %v703_v34  ;;  %v2903_v6 = vld [vmem:[%s3294_s9 + $0x128] ss:$16 sps:$4 sm:$0xff]   ;;  %v2909_v7 = vld [vmem:[%s3294_s9 + $0x14c] ss:$16 sps:$4 sm:$0xff]  }
 0x106   :  { %721 = vst [vmem:[#allocation2 + $0x30] sm:$0xf0] %v717_v9  ;;  %708 = vst [vmem:[#allocation2 + $0x18] sm:$0xf0] %v704_v2  ;;  %v788_v8 = vld [vmem:[#allocation2 + $0x8] sm:$0xff]  ;;  %v1250_v22 = vrot.slane %v1237_v32, %v2669_v18  ;;  %v1254_v2 = vrot.slane %v1237_v32, %v2686_v63  ;;  %v1238_v32 = vld [vmem:[%s3291_s6] sm:$0xff] }
 0x107   :  { %722 = vst [vmem:[#allocation2 + $0x38] sm:$0xf0] %v718_v3  ;;  %v792_v26 = vld [vmem:[#allocation2 + $0x28] sm:$0xff]  ;;  %v1267_v3 = vld [vmem:[%s3292_s7 + $0x10] sm:$0xff] }
 0x108   :  { %v2915_v10 = vld [vmem:[%s3294_s9 + $0x148] ss:$16 sps:$4 sm:$0xff]   ;;  %v2921_v12 = vld [vmem:[%s3294_s9 + $0x16c] ss:$16 sps:$4 sm:$0xff]  }
 0x109   :  { %v2927_v16 = vld [vmem:[%s3294_s9 + $0x168] ss:$16 sps:$4 sm:$0xff]   ;;  %v2933_v54 = vld [vmem:[%s3294_s9 + $0x18c] ss:$16 sps:$4 sm:$0xff]  }
 0x10a   :  { %v2939_v17 = vld [vmem:[%s3294_s9 + $0x188] ss:$16 sps:$4 sm:$0xff]   ;;  %v2945_v23 = vld [vmem:[%s3294_s9 + $0x1ac] ss:$16 sps:$4 sm:$0xff]  }
 0x10b   :  { %v2951_v62 = vld [vmem:[%s3294_s9 + $0x1a8] ss:$16 sps:$4 sm:$0xff]   ;;  %v2957_v20 = vld [vmem:[%s3294_s9 + $0x1cc] ss:$16 sps:$4 sm:$0xff]  }
 0x10c   :  { %v789_v11 = vld [vmem:[#allocation2 + $0x10] sm:$0xff]  ;;  %v2963_v25 = vld [vmem:[%s3294_s9 + $0x1c8] ss:$16 sps:$4 sm:$0xff]   ;;  %v2969_v5 = vld [vmem:[%s3294_s9 + $0x1ec] ss:$16 sps:$4 sm:$0xff]  }
 0x10d   :  { %v790_v35 = vld [vmem:[#allocation2 + $0x18] sm:$0xff]  ;;  %v2787_v14 = vpack.c.bf16 %v789_v11, %v787_v24  ;;  %v793_v44 = vld [vmem:[#allocation2 + $0x30] sm:$0xff]  ;;  %v1266_v34 = vld [vmem:[%s3292_s7 + $0x8] sm:$0xff] }
 0x10e   :  { %v794_v36 = vld [vmem:[#allocation2 + $0x38] sm:$0xff]  ;;  %v796_v37 = vpack.c.bf16 %v790_v35, %v788_v8  ;;  %v797_v48 = vpack.c.bf16 %v793_v44, %v791_v27 }
 0x10f   :  { %v2799_v41 = vpack.c.bf16 %v794_v36, %v792_v26  ;;  %v2975_v58 = vld [vmem:[%s3294_s9 + $0x1e8] ss:$16 sps:$4 sm:$0xff]  }
 0x110   :  { %1151 = vmatprep.mubr.bf16.mxu0 %v796_v37  ;;  %v1268_v11 = vld [vmem:[%s3292_s7 + $0x18] sm:$0xff] }
 0x111   :  { %1152 = vmatmul.mubr.bf16.vlgmr.msra.gmra.mrb[0].mxu0 %v2787_v14 }
 0x112   :  { %1173 = vmatpush1.bf16.msra.mxu0 %v2792_v38  ;;  %1161 = vmatprep.mubr.bf16.mxu0 %v2799_v41 }
 0x113   :  { %1174 = vmatprep.subr.bf16.mxu0 %v2797_v40 }
 0x116   :  { %1175 = vmatpush1.bf16.msra.mxu0 %v2807_v43 }
 0x117   :  { %1176 = vmatprep.subr.bf16.mxu0 %v2813_v42 }
 0x119   :  { %1162 = vmatmul.mubr.bf16.gmra.mrb[4].mxu0 %v797_v48 }
 0x11a   :  { %1177 = vmatpush1.bf16.msra.mxu0 %v2819_v46  ;;  %1204 = vmatprep.mubr.bf16.mxu0 %v796_v37 }
 0x11b   :  { %1178 = vmatprep.subr.bf16.mxu0 %v2825_v49 }
 0x11e   :  { %1179 = vmatpush1.bf16.msra.mxu0 %v2831_v50 }
 0x11f   :  { %1180 = vmatprep.subr.bf16.mxu0 %v2837_v13 }
 0x122   :  { %1181 = vmatpush1.bf16.msra.mxu0 %v2843_v51 }
 0x123   :  { %1182 = vmatprep.subr.bf16.mxu0 %v2849_v56 }
 0x126   :  { %1183 = vmatpush1.bf16.msra.mxu0 %v2855_v45 }
 0x127   :  { %1184 = vmatprep.subr.bf16.mxu0 %v2861_v57 }
 0x12a   :  { %1185 = vmatpush1.bf16.msra.mxu0 %v2867_v61 }
 0x12b   :  { %1186 = vmatprep.subr.bf16.mxu0 %v2873_v55 }
 0x12e   :  { %1187 = vmatpush1.bf16.msra.mxu0 %v2879_v47 }
 0x12f   :  { %1188 = vmatprep.subr.bf16.mxu0 %v2885_v0 }
 0x132   :  { %1189 = vmatpush1.bf16.msra.mxu0 %v2891_v1 }
 0x133   :  { %1190 = vmatprep.subr.bf16.mxu0 %v2897_v4 }
 0x136   :  { %1191 = vmatpush1.bf16.msra.mxu0 %v2903_v6 }
 0x137   :  { %1192 = vmatprep.subr.bf16.mxu0 %v2909_v7 }
 0x13a   :  { %1193 = vmatpush1.bf16.msra.mxu0 %v2915_v10 }
 0x13b   :  { %1194 = vmatprep.subr.bf16.mxu0 %v2921_v12 }
 0x13e   :  { %1195 = vmatpush1.bf16.msra.mxu0 %v2927_v16 }
 0x13f   :  { %1196 = vmatprep.subr.bf16.mxu0 %v2933_v54 }
 0x142   :  { %1197 = vmatpush1.bf16.msra.mxu0 %v2939_v17 }
 0x143   :  { %1198 = vmatprep.subr.bf16.mxu0 %v2945_v23 }
 0x146   :  { %1199 = vmatpush1.bf16.msra.mxu0 %v2951_v62 }
 0x147   :  { %1200 = vmatprep.subr.bf16.mxu0 %v2957_v20 }
 0x14a   :  { %1201 = vmatpush1.bf16.msra.mxu0 %v2963_v25 }
 0x14b   :  { %1202 = vmatprep.subr.bf16.mxu0 %v2969_v5 }
 0x14e   :  { %1203 = vmatpush1.bf16.msra.mxu0 %v2975_v58 }
 0x151   :  { %1205 = vmatmul.mubr.bf16.vlgmr.msra.gmra.mrb[4].mxu0 %v2787_v14 }
 0x152   :  { %1214 = vmatprep.mubr.bf16.mxu0 %v2799_v41 }
 0x159   :  { %1215 = vmatmul.mubr.bf16.gmra.mrb[8].mxu0 %v797_v48 }
 0x1e4   :  { %v1153_v29 = vpop.f32.mrb[0].mxu0 }
 0x1e5   :  { %v1155_v28 = vpop.f32.mrb[1].mxu0 }
 0x1e6   :  { %v1157_v60 = vpop.f32.mrb[2].mxu0 }
 0x1e7   :  { %v1159_v59 = vpop.f32.mrb[3].mxu0 }
 0x224   :  { %v1206_v9 = vpop.f32.mrb[4].mxu0 }
 0x225   :  { %v1269_v24 = vsub.f32 %v1206_v9, %v1265_v33  ;;  %v1208_v8 = vpop.f32.mrb[5].mxu0 }
 0x226   :  { %v1270_v35 = vsub.f32 %v1208_v8, %v1266_v34  ;;  %v1210_v14 = vpop.f32.mrb[6].mxu0 }
 0x227   :  { %v1273_v26 = vmul.f32 %v1269_v24, %v1250_v22  ;;  %v1271_v36 = vsub.f32 %v1210_v14, %v1267_v3  ;;  %v1212_v37 = vpop.f32.mrb[7].mxu0  ;;  %v1239_v3 = vld [vmem:[%s3291_s6 + $0x8] sm:$0xff] }
 0x228   :  { %v1274_v41 = vmul.f32 %v1270_v35, %v1254_v2  ;;  %v1272_v27 = vsub.f32 %v1212_v37, %v1268_v11  ;;  %v1240_v11 = vld [vmem:[%s3291_s6 + $0x10] sm:$0xff] }
 0x229   :  { %1277 = vst [vmem:[#allocation2 + $0x20] sm:$0xff] %v1273_v26  ;;  %v1275_v44 = vmul.f32 %v1271_v36, %v1250_v22  ;;  %v1241_v36 = vld [vmem:[%s3291_s6 + $0x18] sm:$0xff]  ;;  %s2395_s6 = smov 17  }
 0x22a   :  { %1278 = vst [vmem:[#allocation2 + $0x28] sm:$0xff] %v1274_v41  ;;  %v1276_v48 = vmul.f32 %v1272_v27, %v1254_v2 }
 0x22b   :  { %1279 = vst [vmem:[#allocation2 + $0x30] sm:$0xff] %v1275_v44  ;;  %v3001_v30 = vpack.c.bf16 %v1275_v44, %v1273_v26 }
 0x22c   :  { %1280 = vst [vmem:[#allocation2 + $0x38] sm:$0xff] %v1276_v48  ;;  %v1216_v31 = vpop.f32.mrb[8].mxu0  ;;  %v1292_v33 = vpack.c.bf16 %v1276_v48, %v1274_v41 }
 0x22d   :  { %v1225_v34 = vsub.f32 %v1153_v29, %v1216_v31  ;;  %v1218_v9 = vpop.f32.mrb[9].mxu0 }
 0x22e   :  { %v1226_v24 = vsub.f32 %v1155_v28, %v1218_v9  ;;  %v1220_v8 = vpop.f32.mrb[10].mxu0 }
 0x22f   :  { %v1242_v35 = vsub.f32 %v1225_v34, %v1238_v32  ;;  %v1227_v14 = vsub.f32 %v1157_v60, %v1220_v8  ;;  %v1222_v26 = vpop.f32.mrb[11].mxu0 }
 0x230   :  { %v1243_v37 = vsub.f32 %v1226_v24, %v1239_v3  ;;  %v1228_v29 = vsub.f32 %v1159_v59, %v1222_v26 }
 0x231   :  { %v1257_v41 = vmul.f32 %v1250_v22, %v1242_v35  ;;  %v1244_v27 = vsub.f32 %v1227_v14, %v1240_v11 }
 0x232   :  { %v1258_v44 = vmul.f32 %v1254_v2, %v1243_v37  ;;  %v1245_v48 = vsub.f32 %v1228_v29, %v1241_v36 }
 0x233   :  { %1261 = vst [vmem:[#allocation2] sm:$0xff] %v1257_v41  ;;  %v1259_v28 = vmul.f32 %v1250_v22, %v1244_v27 }
 0x234   :  { %1262 = vst [vmem:[#allocation2 + $0x8] sm:$0xff] %v1258_v44  ;;  %v1260_v31 = vmul.f32 %v1254_v2, %v1245_v48 }
 0x235   :  { %1263 = vst [vmem:[#allocation2 + $0x10] sm:$0xff] %v1259_v28  ;;  %v1289_v9 = vpack.c.bf16 %v1259_v28, %v1257_v41 }
 0x236   :  { %1264 = vst [vmem:[#allocation2 + $0x18] sm:$0xff] %v1260_v31  ;;  %v1290_v32 = vpack.c.bf16 %v1260_v31, %v1258_v44 }
 0x238   :  { %1325 = vmatprep.mubr.bf16.mxu1 %v1290_v32 }
 0x239   :  { %1326 = vmatmul.mubr.bf16.vlgmr.msra.gmra.mrb[0].mxu1 %v1289_v9 }
 0x23a   :  { %1347 = vmatpush1.bf16.msra.mxu1 %v2792_v38  ;;  %1335 = vmatprep.mubr.bf16.mxu1 %v1292_v33 }
 0x23b   :  { %1348 = vmatprep.subr.bf16.mxu1 %v2797_v40 }
 0x23e   :  { %1349 = vmatpush1.bf16.msra.mxu1 %v2807_v43 }
 0x23f   :  { %1350 = vmatprep.subr.bf16.mxu1 %v2813_v42 }
 0x241   :  { %1336 = vmatmul.mubr.bf16.gmra.mrb[4].mxu1 %v3001_v30 }
 0x242   :  { %1351 = vmatpush1.bf16.msra.mxu1 %v2819_v46  ;;  %1378 = vmatprep.mubr.bf16.mxu1 %v1290_v32  ;;  %v2394_v46 = vmov 1966171168  }
 0x243   :  { %1352 = vmatprep.subr.bf16.mxu1 %v2825_v49  ;;  %v1432_v49 = vunpack.c.l.s4 %v2394_v46 }
 0x246   :  { %1353 = vmatpush1.bf16.msra.mxu1 %v2831_v50  ;;  %v1433_v50 = vunpack.c.0.s8 %v1432_v49 }
 0x247   :  { %1354 = vmatprep.subr.bf16.mxu1 %v2837_v13 }
 0x24a   :  { %1355 = vmatpush1.bf16.msra.mxu1 %v2843_v51 }
 0x24b   :  { %1356 = vmatprep.subr.bf16.mxu1 %v2849_v56 }
 0x24e   :  { %1357 = vmatpush1.bf16.msra.mxu1 %v2855_v45  ;;  %v3050_v45 = vcombine.low %v2700_v21, %v2700_v21 }
 0x24f   :  { %1358 = vmatprep.subr.bf16.mxu1 %v2861_v57  ;;  %v3054_v57 = vcombine.low %v2705_v52, %v2705_v52 }
 0x252   :  { %1359 = vmatpush1.bf16.msra.mxu1 %v2867_v61 }
 0x253   :  { %1360 = vmatprep.subr.bf16.mxu1 %v2873_v55 }
 0x256   :  { %1361 = vmatpush1.bf16.msra.mxu1 %v2879_v47 }
 0x257   :  { %1362 = vmatprep.subr.bf16.mxu1 %v2885_v0  ;;  %v3057_v0 = vsub.s32 %v1433_v50, %v2523_v19 }
 0x25a   :  { %1363 = vmatpush1.bf16.msra.mxu1 %v2891_v1 }
 0x25b   :  { %1364 = vmatprep.subr.bf16.mxu1 %v2897_v4 }
 0x25e   :  { %1365 = vmatpush1.bf16.msra.mxu1 %v2903_v6 }
 0x25f   :  { %1366 = vmatprep.subr.bf16.mxu1 %v2909_v7 }
 0x262   :  { %1367 = vmatpush1.bf16.msra.mxu1 %v2915_v10 }
 0x263   :  { %1368 = vmatprep.subr.bf16.mxu1 %v2921_v12 }
 0x266   :  { %1369 = vmatpush1.bf16.msra.mxu1 %v2927_v16 }
 0x267   :  { %1370 = vmatprep.subr.bf16.mxu1 %v2933_v54 }
 0x26a   :  { %1371 = vmatpush1.bf16.msra.mxu1 %v2939_v17 }
 0x26b   :  { %1372 = vmatprep.subr.bf16.mxu1 %v2945_v23 }
 0x26e   :  { %1373 = vmatpush1.bf16.msra.mxu1 %v2951_v62 }
 0x26f   :  { %1374 = vmatprep.subr.bf16.mxu1 %v2957_v20 }
 0x272   :  { %1375 = vmatpush1.bf16.msra.mxu1 %v2963_v25 }
 0x273   :  { %1376 = vmatprep.subr.bf16.mxu1 %v2969_v5 }
 0x276   :  { %1377 = vmatpush1.bf16.msra.mxu1 %v2975_v58 }
 0x279   :  { %1379 = vmatmul.mubr.bf16.vlgmr.msra.gmra.mrb[8].mxu1 %v1289_v9 }
 0x27a   :  { %1388 = vmatprep.mubr.bf16.mxu1 %v1292_v33 }
 0x281   :  { %1389 = vmatmul.mubr.bf16.gmra.mrb[0].mxu1 %v3001_v30 }
 0x314   :  { %v1337_v38 = vpop.f32.mrb[4].mxu1 }
 0x315   :  { %v1339_v40 = vpop.f32.mrb[5].mxu1 }
 0x316   :  { %v1341_v43 = vpop.f32.mrb[6].mxu1 }
 0x317   :  { %v1343_v42 = vpop.f32.mrb[7].mxu1 }
 0x34c   :  { %v1380_v13 = vpop.f32.mrb[8].mxu1 }
 0x34d   :  { %v1403_v51 = vsub.f32 %v1337_v38, %v1380_v13  ;;  %v1382_v56 = vpop.f32.mrb[9].mxu1 }
 0x34e   :  { %v1404_v61 = vsub.f32 %v1339_v40, %v1382_v56  ;;  %v1384_v55 = vpop.f32.mrb[10].mxu1 }
 0x34f   :  { %v1386_v47 = vpop.f32.mrb[11].mxu1  ;;  %v1409_v1 = vmul.f32 %v1403_v51, %v2705_v52  ;;  %v1452_v4 = vmul.f32 %v1403_v51, %v2700_v21  ;;  %v1405_v6 = vsub.f32 %v1341_v43, %v1384_v55  ;;  %v1499_v10 = vmul.f32 %v3054_v57, %v1403_v51 }
 0x350   :  { %v3061_v7 = vsub.f32 %v1343_v42, %v1386_v47  ;;  %v1544_v12 = vmul.f32 %v3050_v45, %v1403_v51  ;;  %v1410_v16 = vmul.f32 %v1404_v61, %v2717_v53  ;;  %v1453_v54 = vmul.f32 %v1404_v61, %v2713_v39 }
 0x351   :  { %v1500_v17 = vmul.f32 %v1404_v61, %v2705_v52  ;;  %v1545_v19 = vmul.f32 %v1404_v61, %v2700_v21  ;;  %v3070_v23 = vmul.f32 %v1405_v6, %v2705_v52  ;;  %v3073_v62 = vmul.f32 %v1405_v6, %v2700_v21 }
 0x352   :  { %v3076_v20 = vmul.f32 %v3054_v57, %v1405_v6  ;;  %v3079_v25 = vmul.f32 %v3050_v45, %v1405_v6  ;;  %v3083_v58 = vmul.f32 %v3061_v7, %v2717_v53  ;;  %v3087_v60 = vmul.f32 %v3061_v7, %v2713_v39 }
 0x354   :  { %v1390_v5 = vpop.f32.mrb[0].mxu1 }
 0x355   :  { %v1407_v59 = vmul.f32 %v1390_v5, %v2700_v21  ;;  %v1454_v22 = vmul.f32 %v1390_v5, %v2705_v52  ;;  %v1495_v2 = vmul.f32 %v3050_v45, %v1390_v5  ;;  %v1546_v30 = vmul.f32 %v3054_v57, %v1390_v5  ;;  %v1392_v33 = vpop.f32.mrb[1].mxu1 }
 0x356   :  { %v1408_v34 = vmul.f32 %v1392_v33, %v2713_v39  ;;  %v1455_v3 = vmul.f32 %v1392_v33, %v2717_v53  ;;  %v1496_v24 = vmul.f32 %v1392_v33, %v2700_v21  ;;  %v1547_v8 = vmul.f32 %v1392_v33, %v2705_v52  ;;  %v3097_v11 = vpop.f32.mrb[2].mxu1 }
 0x357   :  { %v1411_v35 = vadd.f32 %v1409_v1, %v1407_v59  ;;  %v1456_v14 = vsub.f32 %v1452_v4, %v1454_v22  ;;  %v1501_v26 = vadd.f32 %v1499_v10, %v1495_v2  ;;  %v1548_v36 = vsub.f32 %v1544_v12, %v1546_v30  ;;  %v3099_v37 = vpop.f32.mrb[3].mxu1 }
 0x358   :  { %v1412_v29 = vadd.f32 %v1410_v16, %v1408_v34  ;;  %v1457_v41 = vsub.f32 %v1453_v54, %v1455_v3  ;;  %v1502_v27 = vadd.f32 %v1500_v17, %v1496_v24  ;;  %v1549_v44 = vsub.f32 %v1545_v19, %v1547_v8 }
 0x359   :  { %v1414_v48 = vsel %vm1413_vm4, %v1411_v35, 0.0  ;;  %v1458_v28 = vsel %vm1413_vm4, %v1456_v14, 0.0  ;;  %v1505_v31 = vrot.slane %v1501_v26, 4  ;;  %v1552_v9 = vrot.slane %v1548_v36, 4 }
 0x35a   :  { %v1415_v32 = vrot.slane %v1414_v48, 4  ;;  %v1459_v38 = vrot.slane %v1458_v28, 4  ;;  %v1421_v40 = vsel %vm1413_vm4, %v1412_v29, 0.0  ;;  %v1465_v43 = vsel %vm1413_vm4, %v1457_v41, 0.0 }
 0x35b   :  { %v1509_v42 = vsel %vm1413_vm4, %v1505_v31, 0.0  ;;  %v1556_v46 = vsel %vm1413_vm4, %v1552_v9, 0.0  ;;  %v1422_v49 = vrot.slane %v1421_v40, 4  ;;  %v1466_v50 = vrot.slane %v1465_v43, 4 }
 0x35c   :  { %v1416_v13 = vadd.f32 %v1415_v32, %v1414_v48  ;;  %v1460_v51 = vadd.f32 %v1459_v38, %v1458_v28  ;;  %v1510_v56 = vrot.slane %v1509_v42, 4  ;;  %v1557_v61 = vrot.slane %v1556_v46, 4 }
 0x35d   :  { %v1423_v55 = vadd.f32 %v1422_v49, %v1421_v40  ;;  %v1467_v47 = vadd.f32 %v1466_v50, %v1465_v43  ;;  %v1506_v1 = vrot.slane %v1502_v27, 4  ;;  %v1553_v4 = vrot.slane %v1549_v44, 4 }
 0x35e   :  { %v1417_v6 = vrot.slane %v1416_v13, 2  ;;  %v1461_v10 = vrot.slane %v1460_v51, 2  ;;  %v1511_v12 = vadd.f32 %v1510_v56, %v1509_v42  ;;  %v1558_v16 = vadd.f32 %v1557_v61, %v1556_v46 }
 0x35f   :  { %v1424_v54 = vrot.slane %v1423_v55, 2  ;;  %v1468_v17 = vrot.slane %v1467_v47, 2  ;;  %v1516_v19 = vsel %vm1413_vm4, %v1506_v1, 0.0  ;;  %v1563_v5 = vsel %vm1413_vm4, %v1553_v4, 0.0 }
 0x360   :  { %v1418_v59 = vadd.f32 %v1417_v6, %v1416_v13  ;;  %v1462_v22 = vadd.f32 %v1461_v10, %v1460_v51  ;;  %v1512_v2 = vrot.slane %v1511_v12, 2  ;;  %v1559_v30 = vrot.slane %v1558_v16, 2 }
 0x361   :  { %v1425_v33 = vadd.f32 %v1424_v54, %v1423_v55  ;;  %v1469_v34 = vadd.f32 %v1468_v17, %v1467_v47  ;;  %v1517_v3 = vrot.slane %v1516_v19, 4  ;;  %v1564_v24 = vrot.slane %v1563_v5, 4 }
 0x362   :  { %v1419_v35 = vrot.slane %v1418_v59, 1  ;;  %v1463_v14 = vrot.slane %v1462_v22, 1  ;;  %v1513_v26 = vadd.f32 %v1512_v2, %v1511_v12  ;;  %v1560_v36 = vadd.f32 %v1559_v30, %v1558_v16 }
 0x363   :  { %v1426_v29 = vrot.slane %v1425_v33, 1  ;;  %v1470_v41 = vrot.slane %v1469_v34, 1  ;;  %v1518_v27 = vadd.f32 %v1517_v3, %v1516_v19  ;;  %v1565_v44 = vadd.f32 %v1564_v24, %v1563_v5 }
 0x364   :  { %v1420_v48 = vadd.f32 %v1419_v35, %v1418_v59  ;;  %v1464_v28 = vadd.f32 %v1463_v14, %v1462_v22  ;;  %v1514_v31 = vrot.slane %v1513_v26, 1  ;;  %v1561_v9 = vrot.slane %v1560_v36, 1 }
 0x365   :  { %v1427_v32 = vadd.f32 %v1426_v29, %v1425_v33  ;;  %v1471_v38 = vadd.f32 %v1470_v41, %v1469_v34  ;;  %v1519_v40 = vrot.slane %v1518_v27, 2  ;;  %v1566_v43 = vrot.slane %v1565_v44, 2 }
 0x366   :  { %v1515_v42 = vadd.f32 %v1514_v31, %v1513_v26  ;;  %v1562_v46 = vadd.f32 %v1561_v9, %v1560_v36  ;;  %v1591_v49 = vmul.f32 %v3097_v11, %v2700_v21  ;;  %v1634_v50 = vmul.f32 %v3097_v11, %v2705_v52 }
 0x367   :  { %v1430_v13 = vcombine.low %v1420_v48, %v1427_v32  ;;  %v1474_v51 = vcombine.low %v1464_v28, %v1471_v38  ;;  %v1520_v56 = vadd.f32 %v1519_v40, %v1518_v27  ;;  %v1567_v61 = vadd.f32 %v1566_v43, %v1565_v44 }
 0x368   :  { %v1595_v55 = vadd.f32 %v3070_v23, %v1591_v49  ;;  %v1636_v47 = vsub.f32 %v3073_v62, %v1634_v50  ;;  %v1673_v1 = vmul.f32 %v3050_v45, %v3097_v11  ;;  %v1722_v4 = vmul.f32 %v3054_v57, %v3097_v11 }
 0x369   :  { %v1437_v6 = vrot.slane %v1430_v13, %v3057_v0  ;;  %v1481_v10 = vrot.slane %v1474_v51, %v3057_v0  ;;  %v1521_v12 = vrot.slane %v1520_v56, 1  ;;  %v1568_v16 = vrot.slane %v1567_v61, 1 }
 0x36a   :  { %v1597_v54 = vsel %vm1413_vm4, %v1595_v55, 0.0  ;;  %v1638_v17 = vsel %vm1413_vm4, %v1636_v47, 0.0  ;;  %v1677_v23 = vadd.f32 %v3076_v20, %v1673_v1  ;;  %v1724_v62 = vsub.f32 %v3079_v25, %v1722_v4 }
 0x36b   :  { %v1444_v19 = vrot.slane %v1437_v6, %v3057_v0  ;;  %v1488_v45 = vrot.slane %v1481_v10, %v3057_v0  ;;  %v1522_v5 = vadd.f32 %v1521_v12, %v1520_v56  ;;  %v1569_v57 = vadd.f32 %v1568_v16, %v1567_v61 }
 0x36c   :  { %v1598_v11 = vrot.slane %v1597_v54, 4  ;;  %v1639_v59 = vrot.slane %v1638_v17, 4  ;;  %v1681_v22 = vrot.slane %v1677_v23, 4  ;;  %v1728_v2 = vrot.slane %v1724_v62, 4 }
 0x36d   :  { %1450 = vst.msk [vmem:[#allocation3] ss:$8 sm:$0x3] %vm3110_vm5, %v1444_v19  ;;  %1491 = vst.msk [vmem:[#allocation3 + $0x4] ss:$8 sm:$0x3] %vm3110_vm5, %v1488_v45  ;;  %v1525_v30 = vcombine.low %v1515_v42, %v1522_v5  ;;  %v1572_v20 = vcombine.low %v1562_v46, %v1569_v57  ;;  %v1592_v25 = vmul.f32 %v3099_v37, %v2713_v39 }
 0x36e   :  { %v1635_v33 = vmul.f32 %v3099_v37, %v2717_v53  ;;  %v1599_v34 = vadd.f32 %v1598_v11, %v1597_v54  ;;  %v1640_v3 = vadd.f32 %v1639_v59, %v1638_v17  ;;  %v1685_v24 = vsel %vm1413_vm4, %v1681_v22, 0.0 }
 0x36f   :  { %v1732_v35 = vsel %vm1413_vm4, %v1728_v2, 0.0  ;;  %v1532_v14 = vrot.slane %v1525_v30, %v3057_v0  ;;  %v1579_v26 = vrot.slane %v1572_v20, %v3057_v0  ;;  %v1686_v36 = vrot.slane %v1685_v24, 4 }
 0x370   :  { %v1733_v29 = vrot.slane %v1732_v35, 4  ;;  %v1600_v41 = vrot.slane %v1599_v34, 2  ;;  %v1641_v27 = vrot.slane %v1640_v3, 2  ;;  %v1596_v44 = vadd.f32 %v3083_v58, %v1592_v25 }
 0x371   :  { %v1637_v39 = vsub.f32 %v3087_v60, %v1635_v33  ;;  %v1539_v53 = vrot.slane %v1532_v14, %v3057_v0  ;;  %v1586_v48 = vrot.slane %v1579_v26, %v3057_v0  ;;  %v1687_v28 = vadd.f32 %v1686_v36, %v1685_v24 }
 0x372   :  { %v1734_v31 = vadd.f32 %v1733_v29, %v1732_v35  ;;  %v1601_v9 = vadd.f32 %v1600_v41, %v1599_v34  ;;  %v1642_v32 = vadd.f32 %v1641_v27, %v1640_v3  ;;  %v1604_v38 = vsel %vm1413_vm4, %v1596_v44, 0.0 }
 0x373   :  { %v1645_v40 = vsel %vm1413_vm4, %v1637_v39, 0.0  ;;  %1542 = vst.msk [vmem:[#allocation3 + $0x1] ss:$8 sm:$0x3] %vm3110_vm5, %v1539_v53  ;;  %v1605_v58 = vrot.slane %v1604_v38, 4  ;;  %v1674_v43 = vmul.f32 %v3099_v37, %v2700_v21  ;;  %v1676_v42 = vmul.f32 %v3061_v7, %v2705_v52 }
 0x374   :  { %1589 = vst.msk [vmem:[#allocation3 + $0x5] ss:$8 sm:$0x3] %vm3110_vm5, %v1586_v48  ;;  %v1646_v60 = vrot.slane %v1645_v40, 4  ;;  %v1721_v46 = vmul.f32 %v3061_v7, %v2700_v21  ;;  %v1723_v49 = vmul.f32 %v3099_v37, %v2705_v52  ;;  %v1688_v50 = vrot.slane %v1687_v28, 2 }
 0x375   :  { %v1735_v13 = vrot.slane %v1734_v31, 2  ;;  %v1606_v51 = vadd.f32 %v1605_v58, %v1604_v38  ;;  %v1602_v61 = vrot.slane %v1601_v9, 1  ;;  %v1643_v55 = vrot.slane %v1642_v32, 1 }
 0x376   :  { %v1647_v56 = vadd.f32 %v1646_v60, %v1645_v40  ;;  %v1678_v47 = vadd.f32 %v1676_v42, %v1674_v43  ;;  %v1725_v1 = vsub.f32 %v1721_v46, %v1723_v49  ;;  %v1689_v16 = vadd.f32 %v1688_v50, %v1687_v28  ;;  %v1983_v43 = vld [vmem:[%s3297_s12] sm:$0xff] }
 0x377   :  { %v1607_v4 = vrot.slane %v1606_v51, 2  ;;  %v1736_v54 = vadd.f32 %v1735_v13, %v1734_v31  ;;  %v1603_v21 = vadd.f32 %v1602_v61, %v1601_v9  ;;  %v1644_v7 = vadd.f32 %v1643_v55, %v1642_v32  ;;  %v1778_v46 = vld [vmem:[%s3295_s10] ss:$8 sm:$0x3] }
 0x378   :  { %v1648_v6 = vrot.slane %v1647_v56, 2  ;;  %v1682_v10 = vrot.slane %v1678_v47, 4  ;;  %v1729_v12 = vrot.slane %v1725_v1, 4  ;;  %v1690_v2 = vrot.slane %v1689_v16, 1 }
 0x379   :  { %v1608_v17 = vadd.f32 %v1607_v4, %v1606_v51  ;;  %v1737_v30 = vrot.slane %v1736_v54, 1  ;;  %v2401_v60 = vmov 0.0   ;;  %v3204_v42 = vand.u32 127, %v87_v15  ;;  %v2199_v49 = vld [vmem:[%s3295_s10 + $0x1] ss:$8 sm:$0x3] }
 0x37a   :  { %v1649_v23 = vadd.f32 %v1648_v6, %v1647_v56  ;;  %v1692_v52 = vsel %vm1413_vm4, %v1682_v10, 0.0  ;;  %v1739_v37 = vsel %vm1413_vm4, %v1729_v12, 0.0  ;;  %v1691_v26 = vadd.f32 %v1690_v2, %v1689_v16  ;;  %2057 = vmatprep.mubr.f32.mxu0 %v2401_v60 }
 0x37b   :  { %v1609_v62 = vrot.slane %v1608_v17, 1  ;;  %v1693_v45 = vrot.slane %v1692_v52, 4  ;;  %v1740_v5 = vrot.slane %v1739_v37, 4  ;;  %v1738_v36 = vadd.f32 %v1737_v30, %v1736_v54 }
 0x37c   :  { %v1650_v19 = vrot.slane %v1649_v23, 1  ;;  %vm1775_vm6 = vcmp.lt.s32.totalorder %v3204_v42, 17  ;;  %v1783_v51 = vrot.slane %v1778_v46, %v2669_v18  ;;  %v1787_v56 = vrot.slane %v1778_v46, %v2686_v63 }
 0x37d   :  { %v1610_v57 = vadd.f32 %v1609_v62, %v1608_v17  ;;  %v1694_v59 = vadd.f32 %v1693_v45, %v1692_v52  ;;  %v1741_v22 = vadd.f32 %v1740_v5, %v1739_v37  ;;  %vm1798_vm7 = vcmp.lt.s32.totalorder %v3204_v42, 16 }
 0x37e   :  { %v1651_v11 = vadd.f32 %v1650_v19, %v1649_v23  ;;  %v1807_v15 = vrot.slane %v2199_v49, %v2669_v18  ;;  %v1811_v61 = vrot.slane %v2199_v49, %v2686_v63  ;;  %v2200_v23 = vld [vmem:[%s3295_s10 + $0x2] ss:$8 sm:$0x3]  ;;  %vm1822_vm8 = vcmp.lt.s32.totalorder %v3204_v42, 15 }
 0x37f   :  { %v1613_v20 = vcombine.low %v1603_v21, %v1610_v57  ;;  %v1695_v33 = vrot.slane %v1694_v59, 2  ;;  %v1742_v34 = vrot.slane %v1741_v22, 2  ;;  %v2201_v21 = vld [vmem:[%s3295_s10 + $0x3] ss:$8 sm:$0x3]  ;;  %v1831_v19 = vrot.slane %v2200_v23, %v2669_v18 }
 0x380   :  { %v1654_v25 = vcombine.low %v1644_v7, %v1651_v11  ;;  %v1835_v45 = vrot.slane %v2200_v23, %v2686_v63  ;;  %vm1846_vm9 = vcmp.lt.s32.totalorder %v3204_v42, 1  ;;  %v1855_v5 = vrot.slane %v2201_v21, %v2669_v18  ;;  %v2202_v11 = vld [vmem:[%s3295_s10 + $0x5] ss:$8 sm:$0x3] }
 0x381   :  { %v1620_v3 = vrot.slane %v1613_v20, %v3057_v0  ;;  %v1696_v35 = vadd.f32 %v1695_v33, %v1694_v59  ;;  %v1743_v14 = vadd.f32 %v1742_v34, %v1741_v22  ;;  %v1859_v57 = vrot.slane %v2201_v21, %v2686_v63 }
 0x382   :  { %v1661_v24 = vrot.slane %v1654_v25, %v3057_v0  ;;  %vm1872_vm10 = vcmp.lt.s32.totalorder %v3204_v42, 127  ;;  %v1881_v33 = vrot.slane %v2202_v11, %v2669_v18  ;;  %v1885_v34 = vrot.slane %v2202_v11, %v2686_v63 }
 0x383   :  { %v1627_v29 = vrot.slane %v1620_v3, %v3057_v0  ;;  %v1697_v27 = vrot.slane %v1696_v35, 1  ;;  %v1744_v44 = vrot.slane %v1743_v14, 1  ;;  %vm1896_vm11 = vcmp.lt.s32.totalorder %v3204_v42, 113 }
 0x384   :  { %v1668_v41 = vrot.slane %v1661_v24, %v3057_v0  ;;  %vm1920_vm12 = vcmp.lt.s32.totalorder %v3204_v42, 112  ;;  %vm1944_vm13 = vcmp.lt.s32.totalorder %v3204_v42, 111 }
 0x385   :  { %1630 = vst.msk [vmem:[#allocation3 + $0x2] ss:$8 sm:$0x3] %vm3110_vm5, %v1627_v29  ;;  %v1698_v39 = vadd.f32 %v1697_v27, %v1696_v35  ;;  %v1745_v53 = vadd.f32 %v1744_v44, %v1743_v14 }
 0x386   :  { %1671 = vst.msk [vmem:[#allocation3 + $0x6] ss:$8 sm:$0x3] %vm3110_vm5, %v1668_v41 }
 0x387   :  { %v1701_v48 = vcombine.low %v1691_v26, %v1698_v39  ;;  %v1748_v28 = vcombine.low %v1738_v36, %v1745_v53 }
 0x389   :  { %v1708_v31 = vrot.slane %v1701_v48, %v3057_v0  ;;  %v1755_v9 = vrot.slane %v1748_v28, %v3057_v0  ;;  %v2203_v48 = vld [vmem:[%s3295_s10 + $0x6] ss:$8 sm:$0x3]  ;;  %v2204_v28 = vld [vmem:[%s3295_s10 + $0x7] ss:$8 sm:$0x3] }
 0x38a   :  { %v1905_v60 = vrot.slane %v2203_v48, %v2669_v18  ;;  %v1929_v46 = vrot.slane %v2204_v28, %v2669_v18  ;;  %v1933_v49 = vrot.slane %v2204_v28, %v2686_v63 }
 0x38b   :  { %v1715_v32 = vrot.slane %v1708_v31, %v3057_v0  ;;  %v1762_v38 = vrot.slane %v1755_v9, %v3057_v0 }
 0x38d   :  { %1718 = vst.msk [vmem:[#allocation3 + $0x3] ss:$8 sm:$0x3] %vm3110_vm5, %v1715_v32  ;;  %1765 = vst.msk [vmem:[#allocation3 + $0x7] ss:$8 sm:$0x3] %vm3110_vm5, %v1762_v38 }
 0x394   :  { %v3180_v40 = vld [vmem:[#allocation3 + $0x8] sm:$0xff]  ;;  %v3182_v58 = vld [vmem:[#allocation3] sm:$0xff] }
 0x395   :  { %1771 = vrot.lane.b32.xlu1 %v3180_v40, %s2395_s6  ;;  %1769 = vrot.lane.b32.xlu0 %v3182_v58, %s2395_s6 }
 0x399   :  { %1794 = vrot.lane.b32.xlu1 %v3182_v58, %s2396_s14  ;;  %1796 = vrot.lane.b32.xlu0 %v3180_v40, %s2396_s14 }
 0x39d   :  { %1818 = vrot.lane.b32.xlu1 %v3182_v58, %s2397_s0  ;;  %1820 = vrot.lane.b32.xlu0 %v3180_v40, %s2397_s0 }
 0x3a1   :  { %1842 = vrot.lane.b32.xlu1 %v3182_v58, %s2398_s15  ;;  %1844 = vrot.lane.b32.xlu0 %v3180_v40, %s2398_s15 }
 0x3a5   :  { %1868 = vrot.lane.b32.xlu1 %v3182_v58, %s2399_s16  ;;  %1870 = vrot.lane.b32.xlu0 %v3180_v40, %s2399_s16 }
 0x3a9   :  { %1892 = vrot.lane.b32.xlu1 %v3182_v58, %s2400_s17  ;;  %1894 = vrot.lane.b32.xlu0 %v3180_v40, %s2400_s17 }
 0x3ad   :  { %1916 = vrot.lane.b32.xlu1 %v3182_v58, %s2402_s4  ;;  %1918 = vrot.lane.b32.xlu0 %v3180_v40, %s2402_s4 }
 0x3b1   :  { %1940 = vrot.lane.b32.xlu1 %v3182_v58, %s2403_s5  ;;  %1942 = vrot.lane.b32.xlu0 %v3180_v40, %s2403_s5 }
 0x3b5   :  { %1986 = vperm.xlu1 %2259, %v1983_v43   ;;  %v1909_v43 = vrot.slane %v2203_v48, %v2686_v63 }
 0x407   :  { %v1772_v50 = vpop.permute.xlu1 %1771  ;;  %v1770_v13 = vpop.permute.xlu0 %1769 }
 0x408   :  { %v1776_v55 = vsel %vm1775_vm6, %v1770_v13, %v1772_v50  ;;  %v1777_v47 = vsel %vm1775_vm6, %v1772_v50, %v1770_v13 }
 0x409   :  { %v1790_v12 = vmul.f32 %v1783_v51, %v1777_v47  ;;  %v1791_v16 = vmul.f32 %v1787_v56, %v1776_v55 }
 0x40b   :  { %v1795_v1 = vpop.permute.xlu1 %1794  ;;  %v1797_v4 = vpop.permute.xlu0 %1796 }
 0x40c   :  { %v1799_v6 = vsel %vm1798_vm7, %v1795_v1, %v1797_v4  ;;  %v1800_v10 = vsel %vm1798_vm7, %v1797_v4, %v1795_v1 }
 0x40d   :  { %v1814_v54 = vmul.f32 %v1807_v15, %v1800_v10  ;;  %v1815_v17 = vmul.f32 %v1811_v61, %v1799_v6 }
 0x40f   :  { %v2210_v7 = vpack.c.bf16 %v1814_v54, %v1790_v12  ;;  %v1819_v52 = vpop.permute.xlu1 %1818  ;;  %v1821_v37 = vpop.permute.xlu0 %1820  ;;  %v2208_v62 = vpack.c.bf16 %v1815_v17, %v1791_v16 }
 0x410   :  { %v1823_v59 = vsel %vm1822_vm8, %v1819_v52, %v1821_v37  ;;  %v1824_v22 = vsel %vm1822_vm8, %v1821_v37, %v1819_v52 }
 0x411   :  { %2209 = vmatprep.subr.bf16.mxu0 %v2208_v62  ;;  %v1838_v3 = vmul.f32 %v1831_v19, %v1824_v22  ;;  %v1839_v24 = vmul.f32 %v1835_v45, %v1823_v59  ;;  %v2065_v19 = vld [vmem:[%s3288_s3 + $0x8] sm:$0xff] }
 0x412   :  { %2211 = vmatpush1.bf16.msra.mxu0 %v2210_v7 }
 0x413   :  { %v1843_v2 = vpop.permute.xlu1 %1842  ;;  %v1845_v30 = vpop.permute.xlu0 %1844 }
 0x414   :  { %v1847_v20 = vsel %vm1846_vm9, %v1843_v2, %v1845_v30  ;;  %v1848_v25 = vsel %vm1846_vm9, %v1845_v30, %v1843_v2 }
 0x415   :  { %v1862_v35 = vmul.f32 %v1855_v5, %v1848_v25  ;;  %v1863_v14 = vmul.f32 %v1859_v57, %v1847_v20 }
 0x417   :  { %v2214_v26 = vpack.c.bf16 %v1862_v35, %v1838_v3  ;;  %v1869_v36 = vpop.permute.xlu1 %1868  ;;  %v1871_v29 = vpop.permute.xlu0 %1870  ;;  %v2212_v41 = vpack.c.bf16 %v1863_v14, %v1839_v24 }
 0x418   :  { %v1873_v27 = vsel %vm1872_vm10, %v1869_v36, %v1871_v29  ;;  %v1874_v44 = vsel %vm1872_vm10, %v1871_v29, %v1869_v36 }
 0x419   :  { %v1888_v39 = vmul.f32 %v1881_v33, %v1873_v27  ;;  %v1889_v53 = vmul.f32 %v1885_v34, %v1874_v44  ;;  %2213 = vmatprep.subr.bf16.mxu0 %v2212_v41 }
 0x41a   :  { %2215 = vmatpush1.bf16.msra.mxu0 %v2214_v26 }
 0x41b   :  { %v2218_v31 = vpack.c.bf16 %v1888_v39, %v3182_v58  ;;  %v1893_v9 = vpop.permute.xlu1 %1892  ;;  %v1895_v32 = vpop.permute.xlu0 %1894  ;;  %v2216_v38 = vpack.c.bf16 %v1889_v53, %v3180_v40  ;;  %v2205_v58 = vld [vmem:[%s3295_s10 + $0x10] ss:$8 sm:$0x3] }
 0x41c   :  { %v1897_v50 = vsel %vm1896_vm11, %v1893_v9, %v1895_v32  ;;  %v1898_v13 = vsel %vm1896_vm11, %v1895_v32, %v1893_v9  ;;  %v1957_v61 = vrot.slane %v2205_v58, %v2686_v63  ;;  %v1953_v54 = vrot.slane %v2205_v58, %v2669_v18  ;;  %v1964_v63 = vld [vmem:[%s3296_s11] sm:$0xff] }
 0x41d   :  { %2217 = vmatprep.subr.bf16.mxu0 %v2216_v38  ;;  %v1912_v55 = vmul.f32 %v1905_v60, %v1897_v50  ;;  %v1913_v47 = vmul.f32 %v1909_v43, %v1898_v13  ;;  %v2064_v18 = vld [vmem:[%s3288_s3] sm:$0xff] }
 0x41e   :  { %2219 = vmatpush1.bf16.msra.mxu0 %v2218_v31 }
 0x41f   :  { %v1917_v51 = vpop.permute.xlu1 %1916  ;;  %v1919_v40 = vpop.permute.xlu0 %1918 }
 0x420   :  { %v1921_v56 = vsel %vm1920_vm12, %v1917_v51, %v1919_v40  ;;  %v1922_v15 = vsel %vm1920_vm12, %v1919_v40, %v1917_v51 }
 0x421   :  { %v1936_v1 = vmul.f32 %v1929_v46, %v1921_v56  ;;  %v1937_v4 = vmul.f32 %v1933_v49, %v1922_v15 }
 0x423   :  { %v2222_v6 = vpack.c.bf16 %v1936_v1, %v1912_v55  ;;  %v1941_v10 = vpop.permute.xlu1 %1940  ;;  %v1943_v12 = vpop.permute.xlu0 %1942  ;;  %v2220_v16 = vpack.c.bf16 %v1937_v4, %v1913_v47 }
 0x424   :  { %v1946_v17 = vsel %vm1944_vm13, %v1943_v12, %v1941_v10  ;;  %v1945_v23 = vsel %vm1944_vm13, %v1941_v10, %v1943_v12 }
 0x425   :  { %v1961_v21 = vmul.f32 %v1957_v61, %v1946_v17  ;;  %2221 = vmatprep.subr.bf16.mxu0 %v2220_v16  ;;  %v1960_v7 = vmul.f32 %v1953_v54, %v1945_v23 }
 0x426   :  { %2223 = vmatpush1.bf16.msra.mxu0 %v2222_v6 }
 0x427   :  { %2009 = vmatprep.subr.mxu0 %v1961_v21 }
 0x42a   :  { %2010 = vmatpush1.msra.mxu0 %v1960_v7 }
 0x42b   :  { %2206 = vmatmul.mubr.msk.f32.vlgmr.msra.gmra.mrb[12].mxu0 %vm1989_vm14, %v1964_v63 }
 0x434   :  { %v1987_v42 = vpop.permute.xlu1 %1986 }
 0x4fe   :  { %v2059_v52 = vpop.f32.mrb[12].mxu0 }
 0x4ff   :  { %v2060_v37 = vadd.f32 %v2059_v52, %v1987_v42  ;;  %v2061_v62 = vpop.f32.mrb[13].mxu0 }
 0x500   :  { %v2062_v45 = vadd.f32 %v2061_v62, %v1987_v42 }
 0x501   :  { %v2066_v5 = vadd.f32 %v2064_v18, %v2060_v37 }
 0x502   :  { %v2067_v57 = vadd.f32 %v2065_v19, %v2062_v45 }
 0x503   :  { %2068 = vst [vmem:[%s3298_s13] sm:$0xff] %v2066_v5  ;;  %v2070_v11 = vmax.f32 %v2066_v5, 0.0 }
 0x504   :  { %2069 = vst [vmem:[%s3298_s13 + $0x8] sm:$0xff] %v2067_v57  ;;  %v2071_v59 = vmax.f32 %v2067_v57, 0.0 }
 0x506   :  { %v2074_v22 = vcombine.low %v2070_v11, %v2071_v59  ;;  %v2092_v2 = vcombine.high %v2070_v11, %v2071_v59 }
 0x508   :  { %v2081_v30 = vrot.slane %v2074_v22, %v3057_v0  ;;  %v2099_v20 = vrot.slane %v2092_v2, %v3057_v0 }
 0x50a   :  { %v2088_v25 = vrot.slane %v2081_v30, %v3057_v0  ;;  %v2106_v33 = vrot.slane %v2099_v20, %v3057_v0 }
 0x50c   :  { %2090 = vst.msk [vmem:[%s3298_s13] ss:$8 sm:$0x3] %vm3110_vm5, %v2088_v25  ;;  %2207 = vst.msk [vmem:[%s3298_s13 + $0x4] ss:$8 sm:$0x3] %vm3110_vm5, %v2106_v33 }
 0x50d   :  { %2115 = vsyncpa [#allocation7], 1 }

</bundles_post_ra>
